<compile_context>
chip_gen: v5e
topology: v5e:2x2
jax: 0.10.0
libtpu: 0.0.40
codegen_flags: <defaults>
</compile_context>

<pallas_src>
import functools

import jax
import jax.numpy as jnp
from jax.experimental import pallas as pl
from jax.experimental.pallas import tpu as pltpu


_COMPUTE_DTYPE = jnp.bfloat16      # MXU-native; halves DMA bytes for W and P.


def _ceil_div(a, b):
    return -(-a // b)


# ---------------------------------------------------------------------------
# Pallas kernel: fused (W @ P + b) -> activation -> cast at store
# ---------------------------------------------------------------------------
def _mm_bias_act_kernel(w_ref, p_ref, b_ref, o_ref, *, act):
    # (Cpad, K) @ (K, Mt) on the MXU, f32 accumulate, fused bias + activation.
    acc = jnp.dot(w_ref[...], p_ref[...], preferred_element_type=jnp.float32)
    acc = acc + b_ref[...]                          # (Cpad, Mt) + (Cpad, 1)
    if act == "relu":
        acc = jnp.maximum(acc, 0.0)
    elif act == "sigmoid":
        acc = jax.nn.sigmoid(acc)
    o_ref[...] = acc.astype(o_ref.dtype)            # cast only at the store


def matmul_bias_act(w, p, b, act, out_dtype=jnp.float32):
    """act(w @ p + b[:, None]).  w:(Cout,K)  p:(K,M)  b:(Cout,) -> (Cout,M)."""
    cout, k = w.shape
    _, m = p.shape

    # Sublane padding for Cout (16 for bf16 outputs so stores stay tile-aligned).
    crow = 16 if out_dtype == jnp.bfloat16 else 8
    cpad = crow * _ceil_div(cout, crow)

    # Minimal lane padding: one grid step per layer unless M is huge.
    mpad = 256 * _ceil_div(m, 256)
    if mpad <= 2048:
        mt = mpad                                   # single step, minimal padding
    else:
        mt = 2048
        mpad = mt * _ceil_div(m, mt)

    w_p = jnp.pad(w.astype(_COMPUTE_DTYPE), ((0, cpad - cout), (0, 0)))
    b_p = jnp.pad(b.astype(jnp.float32), (0, cpad - cout))[:, None]
    p_p = jnp.pad(p.astype(_COMPUTE_DTYPE), ((0, 0), (0, mpad - m)))

    out = pl.pallas_call(
        functools.partial(_mm_bias_act_kernel, act=act),
        out_shape=jax.ShapeDtypeStruct((cpad, mpad), out_dtype),
        grid=(mpad // mt,),
        in_specs=[
            pl.BlockSpec((cpad, k), lambda i: (0, 0)),      # weights resident
            pl.BlockSpec((k, mt), lambda i: (0, i)),        # patch columns
            pl.BlockSpec((cpad, 1), lambda i: (0, 0)),      # bias resident
        ],
        out_specs=pl.BlockSpec((cpad, mt), lambda i: (0, i)),
        compiler_params=pltpu.CompilerParams(
            dimension_semantics=("parallel",)),             # M tiles across TCs
    )(w_p, p_p, b_p)
    return out[:cout, :m]


# ---------------------------------------------------------------------------
# Pooling / upsample (XLA glue on tiny tensors; a Pallas kernel here was
# measured as pure launch + masked-store overhead)
# ---------------------------------------------------------------------------
def maxpool_2x2(x, padding=0):
    """nn.MaxPool2d(kernel_size=2, stride=2, padding=padding), floor mode."""
    n, c, h, w = x.shape
    if padding:
        x = jnp.pad(x, ((0, 0), (0, 0), (padding, padding), (padding, padding)),
                    constant_values=-jnp.inf)
        h += 2 * padding
        w += 2 * padding
    ho, wo = h // 2, w // 2
    xr = x[:, :, : 2 * ho, : 2 * wo].reshape(n, c, ho, 2, wo, 2)
    return jnp.max(xr, axis=(3, 5))


def upsample_nearest_2x(x):
    # nn.Upsample(scale_factor=2, mode='nearest') — pure index duplication.
    return jnp.repeat(jnp.repeat(x, 2, axis=2), 2, axis=3)


# ---------------------------------------------------------------------------
# Conv / ConvTranspose via im2col + Pallas matmul
# ---------------------------------------------------------------------------
def _im2col(x, kh, kw, sh, sw, ph, pw):
    """Patch matrix P:(Cin*kh*kw, N*Ho*Wo) without gathers."""
    n, c, h, w = x.shape
    ho = (h + 2 * ph - kh) // sh + 1
    wo = (w + 2 * pw - kw) // sw + 1
    patches = jax.lax.conv_general_dilated_patches(
        x, (kh, kw), (sh, sw), [(ph, ph), (pw, pw)])
    # (N, Cin*kh*kw, Ho, Wo); feature order = cin-major, (kh,kw) row-major
    # minor, matching w.reshape(Cout, Cin*kh*kw).  Pinned by the reference
    # check in __main__.
    p = patches.transpose(1, 0, 2, 3).reshape(c * kh * kw, n * ho * wo)
    return p, ho, wo


def conv2d(x, w, b, stride, padding, act, out_dtype=jnp.float32):
    """PyTorch nn.Conv2d.  x:(N,Cin,H,W)  w:(Cout,Cin,kh,kw) -> (N,Cout,Ho,Wo)."""
    sh, sw = stride
    ph, pw = padding
    cout, cin, kh, kw = w.shape
    n = x.shape[0]
    p, ho, wo = _im2col(x.astype(_COMPUTE_DTYPE), kh, kw, sh, sw, ph, pw)
    out = matmul_bias_act(w.reshape(cout, cin * kh * kw), p, b, act, out_dtype)
    # TODO(synk): fold this slice/reshape/transpose into the next layer's patch
    # extraction (keep (Cout, N*Ho*Wo) layout end-to-end) to shave the last few
    # XLA data-movement launches.
    return out.reshape(cout, n, ho, wo).transpose(1, 0, 2, 3)


def conv_transpose2d(x, w, b, stride, padding, act, out_dtype=jnp.float32):
    """PyTorch nn.ConvTranspose2d, phase-decomposed along H into ONE stride-1 conv.

    out[:, :, q*sh + r - ph, :] (phase r in [0, sh)) is a stride-1 correlation of
    the lightly zero-padded input with the phase-r sub-kernel; all sh phases are
    batched as Cout*sh output channels of a single conv, then interleaved back
    onto the H axis.  Avoids the ~sh*kw-times-larger, mostly-zero dilated patch
    matrix of the naive formulation.  Requires stride_w == 1 (true here).
    """
    sh, sw = stride
    ph, pw = padding
    cin, cout, kh, kw = w.shape
    n, _, h, wd = x.shape
    assert sw == 1 and pw <= kw - 1, "phase decomposition implemented for stride_w == 1"

    hout = (h - 1) * sh - 2 * ph + kh
    wout = (wd - 1) * sw - 2 * pw + kw

    taps = _ceil_div(kh, sh)                   # taps per H phase
    khp = taps * sh
    if khp != kh:                              # pad kernel H so every phase has `taps` taps
        w = jnp.pad(w, ((0, 0), (0, 0), (0, khp - kh), (0, 0)))
    q_count = _ceil_div(hout + ph, sh)         # phase rows computed (edges sliced off)

    # Equivalent stride-1 conv weights:
    #   W_eff[co*sh + r, ci, m', j'] = w[ci, co, sh*(taps-1-m') + r, kw-1-j']
    w5 = w.reshape(cin, cout, taps, sh, kw)
    w_eff = jnp.flip(w5, axis=(2, 4)).transpose(1, 3, 0, 2, 4).reshape(
        cout * sh, cin, taps, kw)
    b_eff = jnp.repeat(b, sh)

    pad_w = kw - 1 - pw
    xp = jnp.pad(x, ((0, 0), (0, 0), (taps - 1, q_count - h), (pad_w, pad_w)))
    y = conv2d(xp, w_eff, b_eff, (1, 1), (0, 0), act, out_dtype)   # (N, Cout*sh, Q, Wout)

    # Interleave phases back onto the H axis: row q*sh + r == y_out + ph.
    y = y.reshape(n, cout, sh, q_count, wout).transpose(0, 1, 3, 2, 4)
    y = y.reshape(n, cout, q_count * sh, wout)
    return y[:, :, ph:ph + hout, :]


# ---------------------------------------------------------------------------
# Parameters (deterministic init, PyTorch-like uniform(+-1/sqrt(fan_in)))
# ---------------------------------------------------------------------------
def _uniform(key, shape, bound):
    return jax.random.uniform(key, shape, jnp.float32, -bound, bound)


def init_params(key):
    ks = jax.random.split(key, 8)
    params = {}
    fi = 1 * 200 * 3
    params["enc1_w"] = _uniform(ks[0], (5, 1, 200, 3), fi ** -0.5)     # Conv2d(1,5,(200,3))
    params["enc1_b"] = _uniform(ks[1], (5,), fi ** -0.5)
    fi = 5 * 20 * 2
    params["enc2_w"] = _uniform(ks[2], (10, 5, 20, 2), fi ** -0.5)     # Conv2d(5,10,(20,2))
    params["enc2_b"] = _uniform(ks[3], (10,), fi ** -0.5)
    fi = 5 * 20 * 2
    params["dec1_w"] = _uniform(ks[4], (10, 5, 20, 2), fi ** -0.5)     # ConvT(10,5,(20,2))
    params["dec1_b"] = _uniform(ks[5], (5,), fi ** -0.5)
    fi = 1 * 200 * 3
    params["dec2_w"] = _uniform(ks[6], (5, 1, 200, 3), fi ** -0.5)     # ConvT(5,1,(200,3))
    params["dec2_b"] = _uniform(ks[7], (1,), fi ** -0.5)
    return params


# ---------------------------------------------------------------------------
# Forward pass (== ShallowerAutoencoder.forward)
# ---------------------------------------------------------------------------
def shallower_autoencoder_forward(params, x):
    # encoder (hidden layers kept in bf16; epilogue math stays f32 in-kernel)
    h = conv2d(x, params["enc1_w"], params["enc1_b"], (50, 1), (1, 1),
               act="relu", out_dtype=_COMPUTE_DTYPE)
    h = maxpool_2x2(h, padding=1)
    h = conv2d(h, params["enc2_w"], params["enc2_b"], (4, 1), (1, 1),
               act="relu", out_dtype=_COMPUTE_DTYPE)
    h = maxpool_2x2(h, padding=0)
    # decoder
    h = conv_transpose2d(h, params["dec1_w"], params["dec1_b"], (4, 1), (1, 1),
                         act="relu", out_dtype=_COMPUTE_DTYPE)
    h = upsample_nearest_2x(h)
    h = conv_transpose2d(h, params["dec2_w"], params["dec2_b"], (50, 1), (1, 1),
                         act="sigmoid", out_dtype=jnp.float32)       # final layer f32
    return h


# ---------------------------------------------------------------------------
# Pure-JAX f32 reference (pins im2col ordering + phase-decomposition math)
# ---------------------------------------------------------------------------
def _ref_conv2d(x, w, b, stride, padding):
    out = jax.lax.conv_general_dilated(
        x, w, window_strides=stride,
        padding=((padding[0], padding[0]), (padding[1], padding[1])),
        dimension_numbers=("NCHW", "OIHW", "NCHW"),
        precision=jax.lax.Precision.HIGHEST)
    return out + b[None, :, None, None]


def _ref_conv_transpose2d(x, w, b, stride, padding):
    kh, kw = w.shape[2], w.shape[3]
    wc = jnp.flip(w, axis=(2, 3)).transpose(1, 0, 2, 3)       # (Cout,Cin,kh,kw)
    out = jax.lax.conv_general_dilated(
        x, wc, window_strides=(1, 1),
        padding=((kh - 1 - padding[0], kh - 1 - padding[0]),
                 (kw - 1 - padding[1], kw - 1 - padding[1])),
        lhs_dilation=stride,
        dimension_numbers=("NCHW", "OIHW", "NCHW"),
        precision=jax.lax.Precision.HIGHEST)
    return out + b[None, :, None, None]


def _ref_maxpool(x, padding):
    return jax.lax.reduce_window(
        x, -jnp.inf, jax.lax.max,
        window_dimensions=(1, 1, 2, 2), window_strides=(1, 1, 2, 2),
        padding=((0, 0), (0, 0), (padding, padding), (padding, padding)))


def reference_forward(params, x):
    h = jax.nn.relu(_ref_conv2d(x, params["enc1_w"], params["enc1_b"], (50, 1), (1, 1)))
    h = _ref_maxpool(h, 1)
    h = jax.nn.relu(_ref_conv2d(h, params["enc2_w"], params["enc2_b"], (4, 1), (1, 1)))
    h = _ref_maxpool(h, 0)
    h = jax.nn.relu(_ref_conv_transpose2d(h, params["dec1_w"], params["dec1_b"], (4, 1), (1, 1)))
    h = jnp.repeat(jnp.repeat(h, 2, axis=2), 2, axis=3)
    h = jax.nn.sigmoid(_ref_conv_transpose2d(h, params["dec2_w"], params["dec2_b"], (50, 1), (1, 1)))
    return h


if __name__ == "__main__":
    key = jax.random.PRNGKey(0)
    kx, kp = jax.random.split(key)
    params = init_params(kp)

    # Smallest spectrogram-like input that survives the encoder:
    # H >= 2248 given Conv(200,3)/s(50,1) -> pool(pad=1) -> Conv(20,2)/s(4,1) -> pool.
    x = jax.random.uniform(kx, (2, 1, 2248, 8), jnp.float32)

    fwd = jax.jit(shallower_autoencoder_forward)
    y = jax.block_until_ready(fwd(params, x))

    assert y.shape == (2, 1, 1948, 4), y.shape
    assert bool(jnp.all(jnp.isfinite(y)))
    assert bool(jnp.all((y >= 0.0) & (y <= 1.0)))   # sigmoid output

    # Tolerance check vs f32 reference (bf16 MXU operands -> ~1e-3 drift).
    y_ref = jax.block_until_ready(jax.jit(reference_forward)(params, x))
    max_err = float(jnp.max(jnp.abs(y.astype(jnp.float32) - y_ref)))
    assert max_err < 2e-2, f"max abs error vs f32 reference: {max_err}"

    print("KERNEL_OK")
</pallas_src>

<mosaic_0001>
module attributes {stable_mosaic.version = 11 : i64} {
  func.func @_mm_bias_act_kernel(%arg0: i32, %arg1: memref<16x600xbf16, #tpu.memory_space<vmem>>, %arg2: memref<600x768xbf16, #tpu.memory_space<vmem>>, %arg3: memref<16x1xf32, #tpu.memory_space<vmem>>, %arg4: memref<16x768xbf16, #tpu.memory_space<vmem>>) attributes {dimension_semantics = [#tpu.dimension_semantics<parallel>], iteration_bounds = array<i64: 1>, scalar_prefetch = 0 : i64, scratch_operands = 0 : i64, tpu.core_type = #tpu.core_type<tc>, window_params = [{pipeline_mode = #tpu.pipeline_mode<synchronous>, transform_indices = @transform_0, window_bounds = array<i64: 16, 600>}, {transform_indices = @transform_1, window_bounds = array<i64: 600, 768>}, {pipeline_mode = #tpu.pipeline_mode<synchronous>, transform_indices = @transform_2, window_bounds = array<i64: 16, 1>}, {transform_indices = @transform_3, window_bounds = array<i64: 16, 768>}]} {
    %c0 = arith.constant 0 : index
    %c0_0 = arith.constant 0 : index
    %0 = vector.load %arg1[%c0, %c0_0] : memref<16x600xbf16, #tpu.memory_space<vmem>>, vector<16x600xbf16>
    %c0_1 = arith.constant 0 : index
    %c0_2 = arith.constant 0 : index
    %1 = vector.load %arg2[%c0_1, %c0_2] : memref<600x768xbf16, #tpu.memory_space<vmem>>, vector<600x768xbf16>
    %cst = arith.constant dense<0.000000e+00> : vector<16x768xf32>
    %2 = tpu.matmul %0, %1, %cst {dimension_numbers = #tpu.dot_dimension_numbers<[1], [0], [0], [1], [0, 0, 1, 1], [], []>} : vector<16x600xbf16>, vector<600x768xbf16>, vector<16x768xf32> -> vector<16x768xf32>
    %c0_3 = arith.constant 0 : index
    %c0_4 = arith.constant 0 : index
    %3 = vector.load %arg3[%c0_3, %c0_4] : memref<16x1xf32, #tpu.memory_space<vmem>>, vector<16x1xf32>
    %4 = vector.broadcast %3 : vector<16x1xf32> to vector<16x768xf32>
    %5 = arith.addf %2, %4 : vector<16x768xf32>
    %cst_5 = arith.constant 0.000000e+00 : f32
    %6 = vector.broadcast %cst_5 : f32 to vector<16x768xf32>
    %7 = arith.maximumf %5, %6 : vector<16x768xf32>
    %8 = arith.truncf %7 : vector<16x768xf32> to vector<16x768xbf16>
    %c0_6 = arith.constant 0 : index
    %c0_7 = arith.constant 0 : index
    %9 = vector.load %arg4[%c0_6, %c0_7] : memref<16x768xbf16, #tpu.memory_space<vmem>>, vector<16x768xbf16>
    tpu.vector_store %arg4[%c0_6, %c0_7], %8 {strides = array<i32>} : memref<16x768xbf16, #tpu.memory_space<vmem>>, vector<16x768xbf16>,
    return
  }
  func.func @transform_0(%arg0: i32) -> (i32, i32) {
    %c0_i32 = arith.constant 0 : i32
    %c0_i32_0 = arith.constant 0 : i32
    %c0_i32_1 = arith.constant 0 : i32
    return %c0_i32, %c0_i32_0 : i32, i32
  }
  func.func @transform_1(%arg0: i32) -> (i32, i32) {
    %c0_i32 = arith.constant 0 : i32
    %c0_i32_0 = arith.constant 0 : i32
    return %c0_i32, %arg0 : i32, i32
  }
  func.func @transform_2(%arg0: i32) -> (i32, i32) {
    %c0_i32 = arith.constant 0 : i32
    %c0_i32_0 = arith.constant 0 : i32
    %c0_i32_1 = arith.constant 0 : i32
    return %c0_i32, %c0_i32_0 : i32, i32
  }
  func.func @transform_3(%arg0: i32) -> (i32, i32) {
    %c0_i32 = arith.constant 0 : i32
    %c0_i32_0 = arith.constant 0 : i32
    return %c0_i32, %arg0 : i32, i32
  }
}

module attributes {stable_mosaic.version = 11 : i64} {
  func.func @_mm_bias_act_kernel(%arg0: i32, %arg1: memref<16x200xbf16, #tpu.memory_space<vmem>>, %arg2: memref<200x256xbf16, #tpu.memory_space<vmem>>, %arg3: memref<16x1xf32, #tpu.memory_space<vmem>>, %arg4: memref<16x256xbf16, #tpu.memory_space<vmem>>) attributes {dimension_semantics = [#tpu.dimension_semantics<parallel>], iteration_bounds = array<i64: 1>, scalar_prefetch = 0 : i64, scratch_operands = 0 : i64, tpu.core_type = #tpu.core_type<tc>, window_params = [{pipeline_mode = #tpu.pipeline_mode<synchronous>, transform_indices = @transform_0, window_bounds = array<i64: 16, 200>}, {transform_indices = @transform_1, window_bounds = array<i64: 200, 256>}, {pipeline_mode = #tpu.pipeline_mode<synchronous>, transform_indices = @transform_2, window_bounds = array<i64: 16, 1>}, {transform_indices = @transform_3, window_bounds = array<i64: 16, 256>}]} {
    %c0 = arith.constant 0 : index
    %c0_0 = arith.constant 0 : index
    %0 = vector.load %arg1[%c0, %c0_0] : memref<16x200xbf16, #tpu.memory_space<vmem>>, vector<16x200xbf16>
    %c0_1 = arith.constant 0 : index
    %c0_2 = arith.constant 0 : index
    %1 = vector.load %arg2[%c0_1, %c0_2] : memref<200x256xbf16, #tpu.memory_space<vmem>>, vector<200x256xbf16>
    %cst = arith.constant dense<0.000000e+00> : vector<16x256xf32>
    %2 = tpu.matmul %0, %1, %cst {dimension_numbers = #tpu.dot_dimension_numbers<[1], [0], [0], [1], [0, 0, 1, 1], [], []>} : vector<16x200xbf16>, vector<200x256xbf16>, vector<16x256xf32> -> vector<16x256xf32>
    %c0_3 = arith.constant 0 : index
    %c0_4 = arith.constant 0 : index
    %3 = vector.load %arg3[%c0_3, %c0_4] : memref<16x1xf32, #tpu.memory_space<vmem>>, vector<16x1xf32>
    %4 = vector.broadcast %3 : vector<16x1xf32> to vector<16x256xf32>
    %5 = arith.addf %2, %4 : vector<16x256xf32>
    %cst_5 = arith.constant 0.000000e+00 : f32
    %6 = vector.broadcast %cst_5 : f32 to vector<16x256xf32>
    %7 = arith.maximumf %5, %6 : vector<16x256xf32>
    %8 = arith.truncf %7 : vector<16x256xf32> to vector<16x256xbf16>
    %c0_6 = arith.constant 0 : index
    %c0_7 = arith.constant 0 : index
    %9 = vector.load %arg4[%c0_6, %c0_7] : memref<16x256xbf16, #tpu.memory_space<vmem>>, vector<16x256xbf16>
    tpu.vector_store %arg4[%c0_6, %c0_7], %8 {strides = array<i32>} : memref<16x256xbf16, #tpu.memory_space<vmem>>, vector<16x256xbf16>,
    return
  }
  func.func @transform_0(%arg0: i32) -> (i32, i32) {
    %c0_i32 = arith.constant 0 : i32
    %c0_i32_0 = arith.constant 0 : i32
    %c0_i32_1 = arith.constant 0 : i32
    return %c0_i32, %c0_i32_0 : i32, i32
  }
  func.func @transform_1(%arg0: i32) -> (i32, i32) {
    %c0_i32 = arith.constant 0 : i32
    %c0_i32_0 = arith.constant 0 : i32
    return %c0_i32, %arg0 : i32, i32
  }
  func.func @transform_2(%arg0: i32) -> (i32, i32) {
    %c0_i32 = arith.constant 0 : i32
    %c0_i32_0 = arith.constant 0 : i32
    %c0_i32_1 = arith.constant 0 : i32
    return %c0_i32, %c0_i32_0 : i32, i32
  }
  func.func @transform_3(%arg0: i32) -> (i32, i32) {
    %c0_i32 = arith.constant 0 : i32
    %c0_i32_0 = arith.constant 0 : i32
    return %c0_i32, %arg0 : i32, i32
  }
}

module attributes {stable_mosaic.version = 11 : i64} {
  func.func @_mm_bias_act_kernel(%arg0: i32, %arg1: memref<32x100xbf16, #tpu.memory_space<vmem>>, %arg2: memref<100x256xbf16, #tpu.memory_space<vmem>>, %arg3: memref<32x1xf32, #tpu.memory_space<vmem>>, %arg4: memref<32x256xbf16, #tpu.memory_space<vmem>>) attributes {dimension_semantics = [#tpu.dimension_semantics<parallel>], iteration_bounds = array<i64: 1>, scalar_prefetch = 0 : i64, scratch_operands = 0 : i64, tpu.core_type = #tpu.core_type<tc>, window_params = [{pipeline_mode = #tpu.pipeline_mode<synchronous>, transform_indices = @transform_0, window_bounds = array<i64: 32, 100>}, {transform_indices = @transform_1, window_bounds = array<i64: 100, 256>}, {pipeline_mode = #tpu.pipeline_mode<synchronous>, transform_indices = @transform_2, window_bounds = array<i64: 32, 1>}, {transform_indices = @transform_3, window_bounds = array<i64: 32, 256>}]} {
    %c0 = arith.constant 0 : index
    %c0_0 = arith.constant 0 : index
    %0 = vector.load %arg1[%c0, %c0_0] : memref<32x100xbf16, #tpu.memory_space<vmem>>, vector<32x100xbf16>
    %c0_1 = arith.constant 0 : index
    %c0_2 = arith.constant 0 : index
    %1 = vector.load %arg2[%c0_1, %c0_2] : memref<100x256xbf16, #tpu.memory_space<vmem>>, vector<100x256xbf16>
    %cst = arith.constant dense<0.000000e+00> : vector<32x256xf32>
    %2 = tpu.matmul %0, %1, %cst {dimension_numbers = #tpu.dot_dimension_numbers<[1], [0], [0], [1], [0, 0, 1, 1], [], []>} : vector<32x100xbf16>, vector<100x256xbf16>, vector<32x256xf32> -> vector<32x256xf32>
    %c0_3 = arith.constant 0 : index
    %c0_4 = arith.constant 0 : index
    %3 = vector.load %arg3[%c0_3, %c0_4] : memref<32x1xf32, #tpu.memory_space<vmem>>, vector<32x1xf32>
    %4 = vector.broadcast %3 : vector<32x1xf32> to vector<32x256xf32>
    %5 = arith.addf %2, %4 : vector<32x256xf32>
    %cst_5 = arith.constant 0.000000e+00 : f32
    %6 = vector.broadcast %cst_5 : f32 to vector<32x256xf32>
    %7 = arith.maximumf %5, %6 : vector<32x256xf32>
    %8 = arith.truncf %7 : vector<32x256xf32> to vector<32x256xbf16>
    %c0_6 = arith.constant 0 : index
    %c0_7 = arith.constant 0 : index
    %9 = vector.load %arg4[%c0_6, %c0_7] : memref<32x256xbf16, #tpu.memory_space<vmem>>, vector<32x256xbf16>
    tpu.vector_store %arg4[%c0_6, %c0_7], %8 {strides = array<i32>} : memref<32x256xbf16, #tpu.memory_space<vmem>>, vector<32x256xbf16>,
    return
  }
  func.func @transform_0(%arg0: i32) -> (i32, i32) {
    %c0_i32 = arith.constant 0 : i32
    %c0_i32_0 = arith.constant 0 : i32
    %c0_i32_1 = arith.constant 0 : i32
    return %c0_i32, %c0_i32_0 : i32, i32
  }
  func.func @transform_1(%arg0: i32) -> (i32, i32) {
    %c0_i32 = arith.constant 0 : i32
    %c0_i32_0 = arith.constant 0 : i32
    return %c0_i32, %arg0 : i32, i32
  }
  func.func @transform_2(%arg0: i32) -> (i32, i32) {
    %c0_i32 = arith.constant 0 : i32
    %c0_i32_0 = arith.constant 0 : i32
    %c0_i32_1 = arith.constant 0 : i32
    return %c0_i32, %c0_i32_0 : i32, i32
  }
  func.func @transform_3(%arg0: i32) -> (i32, i32) {
    %c0_i32 = arith.constant 0 : i32
    %c0_i32_0 = arith.constant 0 : i32
    return %c0_i32, %arg0 : i32, i32
  }
}

module attributes {stable_mosaic.version = 11 : i64} {
  func.func @_mm_bias_act_kernel(%arg0: i32, %arg1: memref<56x60xbf16, #tpu.memory_space<vmem>>, %arg2: memref<60x512xbf16, #tpu.memory_space<vmem>>, %arg3: memref<56x1xf32, #tpu.memory_space<vmem>>, %arg4: memref<56x512xf32, #tpu.memory_space<vmem>>) attributes {dimension_semantics = [#tpu.dimension_semantics<parallel>], iteration_bounds = array<i64: 1>, scalar_prefetch = 0 : i64, scratch_operands = 0 : i64, tpu.core_type = #tpu.core_type<tc>, window_params = [{pipeline_mode = #tpu.pipeline_mode<synchronous>, transform_indices = @transform_0, window_bounds = array<i64: 56, 60>}, {transform_indices = @transform_1, window_bounds = array<i64: 60, 512>}, {pipeline_mode = #tpu.pipeline_mode<synchronous>, transform_indices = @transform_2, window_bounds = array<i64: 56, 1>}, {transform_indices = @transform_3, window_bounds = array<i64: 56, 512>}]} {
    %c0 = arith.constant 0 : index
    %c0_0 = arith.constant 0 : index
    %0 = vector.load %arg1[%c0, %c0_0] : memref<56x60xbf16, #tpu.memory_space<vmem>>, vector<56x60xbf16>
    %c0_1 = arith.constant 0 : index
    %c0_2 = arith.constant 0 : index
    %1 = vector.load %arg2[%c0_1, %c0_2] : memref<60x512xbf16, #tpu.memory_space<vmem>>, vector<60x512xbf16>
    %cst = arith.constant dense<0.000000e+00> : vector<56x512xf32>
    %2 = tpu.matmul %0, %1, %cst {dimension_numbers = #tpu.dot_dimension_numbers<[1], [0], [0], [1], [0, 0, 1, 1], [], []>} : vector<56x60xbf16>, vector<60x512xbf16>, vector<56x512xf32> -> vector<56x512xf32>
    %c0_3 = arith.constant 0 : index
    %c0_4 = arith.constant 0 : index
    %3 = vector.load %arg3[%c0_3, %c0_4] : memref<56x1xf32, #tpu.memory_space<vmem>>, vector<56x1xf32>
    %4 = vector.broadcast %3 : vector<56x1xf32> to vector<56x512xf32>
    %5 = arith.addf %2, %4 : vector<56x512xf32>
    %6 = arith.negf %5 : vector<56x512xf32>
    %7 = math.exp %6 : vector<56x512xf32>
    %cst_5 = arith.constant 1.000000e+00 : f32
    %8 = vector.broadcast %cst_5 : f32 to vector<56x512xf32>
    %9 = arith.addf %8, %7 : vector<56x512xf32>
    %10 = arith.divf %8, %9 : vector<56x512xf32>
    %c0_6 = arith.constant 0 : index
    %c0_7 = arith.constant 0 : index
    %11 = vector.load %arg4[%c0_6, %c0_7] : memref<56x512xf32, #tpu.memory_space<vmem>>, vector<56x512xf32>
    tpu.vector_store %arg4[%c0_6, %c0_7], %10 {strides = array<i32>} : memref<56x512xf32, #tpu.memory_space<vmem>>, vector<56x512xf32>,
    return
  }
  func.func @transform_0(%arg0: i32) -> (i32, i32) {
    %c0_i32 = arith.constant 0 : i32
    %c0_i32_0 = arith.constant 0 : i32
    %c0_i32_1 = arith.constant 0 : i32
    return %c0_i32, %c0_i32_0 : i32, i32
  }
  func.func @transform_1(%arg0: i32) -> (i32, i32) {
    %c0_i32 = arith.constant 0 : i32
    %c0_i32_0 = arith.constant 0 : i32
    return %c0_i32, %arg0 : i32, i32
  }
  func.func @transform_2(%arg0: i32) -> (i32, i32) {
    %c0_i32 = arith.constant 0 : i32
    %c0_i32_0 = arith.constant 0 : i32
    %c0_i32_1 = arith.constant 0 : i32
    return %c0_i32, %c0_i32_0 : i32, i32
  }
  func.func @transform_3(%arg0: i32) -> (i32, i32) {
    %c0_i32 = arith.constant 0 : i32
    %c0_i32_0 = arith.constant 0 : i32
    return %c0_i32, %arg0 : i32, i32
  }
}

</mosaic_0001>

<bundles_post_ra>
// kernel: shallower_autoencoder_forward.4
= control target key start
LH: loop header
LB: loop body
LE: loop exit
PB: predicated region body
PF: predicated region fallthrough
CT: control target
= control target key end

     0   :  { %vm1412_vm0 = vcmask 1043456   ;;  %vm1408_vm1 = vcmask 719872   ;;  %s4548_s1 = inlined_call_operand.vmem [shape: bf16[600,768], index: 1, kind: input, shape index: {}]   ;;  %s4549_s0 = inlined_call_operand.vmem [shape: bf16[16,600], index: 0, kind: input, shape index: {}]   ;;  %s4550_s2 = inlined_call_operand.vmem [shape: f32[16,1], index: 2, kind: input, shape index: {}]   ;;  %s4551_s3 = inlined_call_operand.vmem [shape: bf16[16,768], index: 3, kind: output, shape index: {}]  }
   0x1   :  { %v2069_v0 = vld [vmem:[%s4548_s1 + $0x150] sm:$0xf]  ;;  %v2843_v1 = vld [vmem:[%s4548_s1 + $0x164] sm:$0xf0]  ;;  %v2045_v11 = vld [vmem:[%s4548_s1 + $0x120] sm:$0xf] }
   0x2   :  { %v2261_v2 = vld [vmem:[%s4548_s1 + $0x2d0] sm:$0xf]  ;;  %v2070_v3 = vor.u32 %v2843_v1, %v2069_v0  ;;  %v2891_v4 = vld [vmem:[%s4548_s1 + $0x2e4] sm:$0xf0]  ;;  %v2837_v13 = vld [vmem:[%s4548_s1 + $0x134] sm:$0xf0] }
   0x3   :  { %v2453_v5 = vld [vmem:[%s4548_s1 + $0x450] sm:$0xf]  ;;  %v2939_v6 = vld [vmem:[%s4548_s1 + $0x464] sm:$0xf0]  ;;  %v2262_v7 = vor.u32 %v2891_v4, %v2261_v2  ;;  %v2237_v14 = vld [vmem:[%s4548_s1 + $0x2a0] sm:$0xf]  ;;  %v2046_v16 = vor.u32 %v2837_v13, %v2045_v11 }
   0x4   :  { %v2454_v8 = vor.u32 %v2939_v6, %v2453_v5  ;;  %v2645_v9 = vld [vmem:[%s4548_s1 + $0x5d0] sm:$0xf]  ;;  %v2987_v10 = vld [vmem:[%s4548_s1 + $0x5e4] sm:$0xf0]  ;;  %1431 = vmatpush.bf16.msra.mxu0 %v2070_v3  ;;  %v2885_v15 = vld [vmem:[%s4548_s1 + $0x2b4] sm:$0xf0] }
   0x5   :  { %v2646_v12 = vor.u32 %v2987_v10, %v2645_v9  ;;  %1445 = vmatpush.bf16.msra.mxu1 %v2262_v7  ;;  %v2238_v17 = vor.u32 %v2885_v15, %v2237_v14  ;;  %v2429_v18 = vld [vmem:[%s4548_s1 + $0x420] sm:$0xf]  ;;  %v2933_v19 = vld [vmem:[%s4548_s1 + $0x434] sm:$0xf0]  ;;  %v2021_v23 = vld [vmem:[%s4548_s1 + $0xf0] sm:$0xf] }
   0x6   :  { %1459 = vmatpush.bf16.msra.mxu2 %v2454_v8  ;;  %v2621_v20 = vld [vmem:[%s4548_s1 + $0x5a0] sm:$0xf]  ;;  %v2430_v21 = vor.u32 %v2933_v19, %v2429_v18  ;;  %v2981_v22 = vld [vmem:[%s4548_s1 + $0x5b4] sm:$0xf0]  ;;  %v2831_v24 = vld [vmem:[%s4548_s1 + $0x104] sm:$0xf0] }
   0x7   :  { %1473 = vmatpush.bf16.msra.mxu3 %v2646_v12  ;;  %v2622_v25 = vor.u32 %v2981_v22, %v2621_v20  ;;  %v2213_v26 = vld [vmem:[%s4548_s1 + $0x270] sm:$0xf]  ;;  %v2879_v27 = vld [vmem:[%s4548_s1 + $0x284] sm:$0xf0]  ;;  %v2022_v29 = vor.u32 %v2831_v24, %v2021_v23  ;;  %v1997_v35 = vld [vmem:[%s4548_s1 + $0xc0] sm:$0xf] }
   0x8   :  { %v2405_v28 = vld [vmem:[%s4548_s1 + $0x3f0] sm:$0xf]  ;;  %1432 = vmatpush.bf16.msra.mxu0 %v2046_v16  ;;  %v2927_v30 = vld [vmem:[%s4548_s1 + $0x404] sm:$0xf0]  ;;  %v2214_v33 = vor.u32 %v2879_v27, %v2213_v26  ;;  %v2825_v36 = vld [vmem:[%s4548_s1 + $0xd4] sm:$0xf0] }
   0x9   :  { %v2597_v31 = vld [vmem:[%s4548_s1 + $0x570] sm:$0xf]  ;;  %v2975_v32 = vld [vmem:[%s4548_s1 + $0x584] sm:$0xf0]  ;;  %1446 = vmatpush.bf16.msra.mxu1 %v2238_v17  ;;  %v2406_v34 = vor.u32 %v2927_v30, %v2405_v28  ;;  %v2189_v37 = vld [vmem:[%s4548_s1 + $0x240] sm:$0xf]  ;;  %v1998_v44 = vor.u32 %v2825_v36, %v1997_v35 }
   0xa   :  { %1460 = vmatpush.bf16.msra.mxu2 %v2430_v21  ;;  %v2598_v38 = vor.u32 %v2975_v32, %v2597_v31  ;;  %v2873_v39 = vld [vmem:[%s4548_s1 + $0x254] sm:$0xf0]  ;;  %v2381_v40 = vld [vmem:[%s4548_s1 + $0x3c0] sm:$0xf]  ;;  %v1973_v47 = vld [vmem:[%s4548_s1 + $0x90] sm:$0xf] }
   0xb   :  { %1474 = vmatpush.bf16.msra.mxu3 %v2622_v25  ;;  %v2921_v41 = vld [vmem:[%s4548_s1 + $0x3d4] sm:$0xf0]  ;;  %v2573_v42 = vld [vmem:[%s4548_s1 + $0x540] sm:$0xf]  ;;  %v2190_v45 = vor.u32 %v2873_v39, %v2189_v37  ;;  %v2819_v48 = vld [vmem:[%s4548_s1 + $0xa4] sm:$0xf0] }
   0xc   :  { %v2969_v43 = vld [vmem:[%s4548_s1 + $0x554] sm:$0xf0]  ;;  %1433 = vmatpush.bf16.msra.mxu0 %v2022_v29  ;;  %v2382_v46 = vor.u32 %v2921_v41, %v2381_v40  ;;  %v2165_v49 = vld [vmem:[%s4548_s1 + $0x210] sm:$0xf]  ;;  %v2867_v51 = vld [vmem:[%s4548_s1 + $0x224] sm:$0xf0]  ;;  %v1974_v56 = vor.u32 %v2819_v48, %v1973_v47 }
   0xd   :  { %1447 = vmatpush.bf16.msra.mxu1 %v2214_v33  ;;  %v2574_v50 = vor.u32 %v2969_v43, %v2573_v42  ;;  %v2357_v52 = vld [vmem:[%s4548_s1 + $0x390] sm:$0xf]  ;;  %v2915_v53 = vld [vmem:[%s4548_s1 + $0x3a4] sm:$0xf0]  ;;  %v2166_v57 = vor.u32 %v2867_v51, %v2165_v49  ;;  %v1949_v59 = vld [vmem:[%s4548_s1 + $0x60] sm:$0xf] }
   0xe   :  { %1461 = vmatpush.bf16.msra.mxu2 %v2406_v34  ;;  %v2549_v54 = vld [vmem:[%s4548_s1 + $0x510] sm:$0xf]  ;;  %v2963_v55 = vld [vmem:[%s4548_s1 + $0x524] sm:$0xf0]  ;;  %v2358_v58 = vor.u32 %v2915_v53, %v2357_v52  ;;  %v2813_v60 = vld [vmem:[%s4548_s1 + $0x74] sm:$0xf0] }
   0xf   :  { %1475 = vmatpush.bf16.msra.mxu3 %v2598_v38  ;;  %v2141_v61 = vld [vmem:[%s4548_s1 + $0x1e0] sm:$0xf]  ;;  %v2550_v62 = vor.u32 %v2963_v55, %v2549_v54  ;;  %v2861_v63 = vld [vmem:[%s4548_s1 + $0x1f4] sm:$0xf0]  ;;  %v1950_v4 = vor.u32 %v2813_v60, %v1949_v59  ;;  %v1925_v5 = vld [vmem:[%s4548_s1 + $0x30] sm:$0xf] }
  0x10   :  { %1434 = vmatpush.bf16.msra.mxu0 %v1998_v44  ;;  %v2333_v0 = vld [vmem:[%s4548_s1 + $0x360] sm:$0xf]  ;;  %v2909_v1 = vld [vmem:[%s4548_s1 + $0x374] sm:$0xf0]  ;;  %v2142_v6 = vor.u32 %v2861_v63, %v2141_v61  ;;  %v2807_v8 = vld [vmem:[%s4548_s1 + $0x44] sm:$0xf0] }
  0x11   :  { %1448 = vmatpush.bf16.msra.mxu1 %v2190_v45  ;;  %v2525_v2 = vld [vmem:[%s4548_s1 + $0x4e0] sm:$0xf]  ;;  %v2957_v3 = vld [vmem:[%s4548_s1 + $0x4f4] sm:$0xf0]  ;;  %v2334_v7 = vor.u32 %v2909_v1, %v2333_v0  ;;  %v2117_v9 = vld [vmem:[%s4548_s1 + $0x1b0] sm:$0xf]  ;;  %v1926_v18 = vor.u32 %v2807_v8, %v1925_v5 }
  0x12   :  { %1462 = vmatpush.bf16.msra.mxu2 %v2382_v46  ;;  %v3199_v10 = vld [vmem:[%s4548_s1 + $0x6f0] sm:$0xff]  ;;  %v2526_v11 = vor.u32 %v2957_v3, %v2525_v2  ;;  %v2855_v12 = vld [vmem:[%s4548_s1 + $0x1c4] sm:$0xf0]  ;;  %v1901_v19 = vld [vmem:[%s4548_s1] sm:$0xf]  ;;  %v3022_v34 = vmov 0  }
  0x13   :  { %1476 = vmatpush.bf16.msra.mxu3 %v2574_v50  ;;  %v2309_v13 = vld [vmem:[%s4548_s1 + $0x330] sm:$0xf]  ;;  %v2903_v14 = vld [vmem:[%s4548_s1 + $0x344] sm:$0xf0]  ;;  %v952_v17 = vunpack.c.l.b16 %v3199_v10  ;;  %v2801_v20 = vld [vmem:[%s4548_s1 + $0x14] sm:$0xf0]  ;;  %v2118_v22 = vor.u32 %v2855_v12, %v2117_v9  ;;  %3021 = vset.pattern.permute.xlu0 %v3022_v34 }
  0x14   :  { %1435 = vmatpush.bf16.msra.mxu0 %v1974_v56  ;;  %v2501_v15 = vld [vmem:[%s4548_s1 + $0x4b0] sm:$0xf]  ;;  %v2951_v16 = vld [vmem:[%s4548_s1 + $0x4c4] sm:$0xf0]  ;;  %v2093_v21 = vld [vmem:[%s4548_s1 + $0x180] sm:$0xf]  ;;  %v2310_v23 = vor.u32 %v2903_v14, %v2309_v13  ;;  %v1902_v35 = vor.u32 %v2801_v20, %v1901_v19 }
  0x15   :  { %1449 = vmatpush.bf16.msra.mxu1 %v2166_v57  ;;  %v2849_v24 = vld [vmem:[%s4548_s1 + $0x194] sm:$0xf0]  ;;  %v2285_v25 = vld [vmem:[%s4548_s1 + $0x300] sm:$0xf]  ;;  %v2502_v27 = vor.u32 %v2951_v16, %v2501_v15  ;;  %v2840_v28 = vld [vmem:[%s4548_s1 + $0x154] sm:$0xf]  ;;  %v1180_v30 = vpack.c.b16 %v952_v17, %v952_v17 }
  0x16   :  { %1463 = vmatpush.bf16.msra.mxu2 %v2358_v58  ;;  %v2897_v26 = vld [vmem:[%s4548_s1 + $0x314] sm:$0xf0]  ;;  %v2071_v29 = vld [vmem:[%s4548_s1 + $0x168] sm:$0xf0]  ;;  %v2888_v31 = vld [vmem:[%s4548_s1 + $0x2d4] sm:$0xf]  ;;  %v2094_v39 = vor.u32 %v2849_v24, %v2093_v21 }
  0x17   :  { %1477 = vmatpush.bf16.msra.mxu3 %v2550_v62  ;;  %v2263_v32 = vld [vmem:[%s4548_s1 + $0x2e8] sm:$0xf0]  ;;  %v2477_v33 = vld [vmem:[%s4548_s1 + $0x480] sm:$0xf]  ;;  %v2945_v36 = vld [vmem:[%s4548_s1 + $0x494] sm:$0xf0]  ;;  %v2286_v40 = vor.u32 %v2897_v26, %v2285_v25  ;;  %v2074_v44 = vor.u32 %v2840_v28, %v2071_v29 }
  0x18   :  { %1436 = vmatpush.bf16.msra.mxu0 %v1950_v4  ;;  %v2936_v37 = vld [vmem:[%s4548_s1 + $0x454] sm:$0xf]  ;;  %v2455_v38 = vld [vmem:[%s4548_s1 + $0x468] sm:$0xf0]  ;;  %v2765_v41 = vld [vmem:[%s4548_s1 + $0x6c0] sm:$0xf]  ;;  %v2266_v49 = vor.u32 %v2888_v31, %v2263_v32  ;;  %v2478_v50 = vor.u32 %v2945_v36, %v2477_v33 }
  0x19   :  { %1450 = vmatpush.bf16.msra.mxu1 %v2142_v6  ;;  %v1881_v42 = vld [vmem:[%s4549_s0] sm:$0xf]  ;;  %v2795_v43 = vld [vmem:[%s4549_s0 + $0x10] sm:$0xf0]  ;;  %v3017_v45 = vld [vmem:[%s4548_s1 + $0x6d4] sm:$0xf0]  ;;  %v2458_v53 = vor.u32 %v2936_v37, %v2455_v38 }
  0x1a   :  { %1464 = vmatpush.bf16.msra.mxu2 %v2334_v7  ;;  %v2834_v46 = vld [vmem:[%s4548_s1 + $0x124] sm:$0xf]  ;;  %v2047_v47 = vld [vmem:[%s4548_s1 + $0x138] sm:$0xf0]  ;;  %v1414_v48 = vsel %vm1412_vm0, %v1180_v30, 0  ;;  %v3293_v57 = vor.u32 %v2795_v43, %v1881_v42  ;;  %v2766_v62 = vor.u32 %v3017_v45, %v2765_v41 }
  0x1b   :  { %1478 = vmatpush.bf16.msra.mxu3 %v2526_v11  ;;  %v1889_v51 = vld [vmem:[%s4549_s0 + $0x8] sm:$0xf]  ;;  %v2796_v52 = vld [vmem:[%s4549_s0 + $0x18] sm:$0xf0]  ;;  %v2882_v54 = vld [vmem:[%s4548_s1 + $0x2a4] sm:$0xf]  ;;  %v2050_v63 = vor.u32 %v2834_v46, %v2047_v47 }
  0x1c   :  { %1437 = vmatpush.bf16.msra.mxu0 %v1926_v18  ;;  %v2239_v55 = vld [vmem:[%s4548_s1 + $0x2b8] sm:$0xf0]  ;;  %v2930_v56 = vld [vmem:[%s4548_s1 + $0x424] sm:$0xf]  ;;  %v2741_v59 = vld [vmem:[%s4548_s1 + $0x690] sm:$0xf]  ;;  %v3301_v60 = vor.u32 %v2796_v52, %v1889_v51 }
  0x1d   :  { %1451 = vmatpush.bf16.msra.mxu1 %v2118_v22  ;;  %v2431_v58 = vld [vmem:[%s4548_s1 + $0x438] sm:$0xf0]  ;;  %v2794_v61 = vld [vmem:[%s4549_s0 + $0xc] sm:$0xf]  ;;  %v3011_v0 = vld [vmem:[%s4548_s1 + $0x6a4] sm:$0xf0]  ;;  %v2242_v3 = vor.u32 %v2882_v54, %v2239_v55 }
  0x1e   :  { %1465 = vmatpush.bf16.msra.mxu2 %v2310_v23  ;;  %v2828_v1 = vld [vmem:[%s4548_s1 + $0xf4] sm:$0xf]  ;;  %v1891_v2 = vld [vmem:[%s4549_s0 + $0x1c] sm:$0xf0]  ;;  %v2023_v4 = vld [vmem:[%s4548_s1 + $0x108] sm:$0xf0]  ;;  %v2434_v8 = vor.u32 %v2930_v56, %v2431_v58  ;;  %v2742_v15 = vor.u32 %v3011_v0, %v2741_v59 }
  0x1f   :  { %1479 = vmatpush.bf16.msra.mxu3 %v2502_v27  ;;  %v3318_v5 = vor.u32 %v2794_v61, %v1891_v2  ;;  %v2793_v6 = vld [vmem:[%s4549_s0 + $0x4] sm:$0xf]  ;;  %v1883_v7 = vld [vmem:[%s4549_s0 + $0x14] sm:$0xf0]  ;;  %v2876_v9 = vld [vmem:[%s4548_s1 + $0x274] sm:$0xf]  ;;  %v2026_v16 = vor.u32 %v2828_v1, %v2023_v4  ;;  %v953_v61 = vunpack.c.h.b16 %v3199_v10 }
  0x20   :  { %1438 = vmatpush.bf16.msra.mxu0 %v1902_v35  ;;  %v2215_v11 = vld [vmem:[%s4548_s1 + $0x288] sm:$0xf0]  ;;  %v3333_v12 = vor.u32 %v2793_v6, %v1883_v7  ;;  %v2924_v13 = vld [vmem:[%s4548_s1 + $0x3f4] sm:$0xf]  ;;  %v2717_v17 = vld [vmem:[%s4548_s1 + $0x660] sm:$0xf] }
  0x21   :  { %1452 = vmatpush.bf16.msra.mxu1 %v2094_v39  ;;  %v2407_v14 = vld [vmem:[%s4548_s1 + $0x408] sm:$0xf0]  ;;  %v2218_v18 = vor.u32 %v2876_v9, %v2215_v11  ;;  %v3005_v19 = vld [vmem:[%s4548_s1 + $0x674] sm:$0xf0]  ;;  %v2822_v20 = vld [vmem:[%s4548_s1 + $0xc4] sm:$0xf] }
  0x22   :  { %1466 = vmatpush.bf16.msra.mxu2 %v2286_v40  ;;  %v1999_v21 = vld [vmem:[%s4548_s1 + $0xd8] sm:$0xf0]  ;;  %v2410_v22 = vor.u32 %v2924_v13, %v2407_v14  ;;  %v2870_v23 = vld [vmem:[%s4548_s1 + $0x244] sm:$0xf]  ;;  %v2718_v27 = vor.u32 %v3005_v19, %v2717_v17  ;;  %v2693_v29 = vld [vmem:[%s4548_s1 + $0x630] sm:$0xf] }
  0x23   :  { %1480 = vmatpush.bf16.msra.mxu3 %v2478_v50  ;;  %1439 = vmatmul.bf16.vlgmr.msra.gmra.mxu0 %v3293_v57  ;;  %v2191_v24 = vld [vmem:[%s4548_s1 + $0x258] sm:$0xf0]  ;;  %v2918_v25 = vld [vmem:[%s4548_s1 + $0x3c4] sm:$0xf]  ;;  %v2002_v28 = vor.u32 %v2822_v20, %v1999_v21  ;;  %v2999_v32 = vld [vmem:[%s4548_s1 + $0x644] sm:$0xf0] }
  0x24   :  { %1489 = vmatpush.bf16.msrb.mxu0 %v1414_v48  ;;  %1453 = vmatmul.bf16.vlgmr.msra.gmra.mxu1 %v3333_v12  ;;  %v2383_v26 = vld [vmem:[%s4548_s1 + $0x3d8] sm:$0xf0]  ;;  %v246_v30 = vld [vmem:[%s4550_s2] sm:$0xff]  ;;  %v2194_v31 = vor.u32 %v2870_v23, %v2191_v24  ;;  %v2816_v33 = vld [vmem:[%s4548_s1 + $0x94] sm:$0xf]  ;;  %v2694_v40 = vor.u32 %v2999_v32, %v2693_v29 }
  0x25   :  { %1501 = vmatpush.bf16.msrb.mxu1 %v2074_v44  ;;  %1467 = vmatmul.bf16.vlgmr.msra.gmra.mxu2 %v3301_v60  ;;  %v1975_v34 = vld [vmem:[%s4548_s1 + $0xa8] sm:$0xf0]  ;;  %v2386_v35 = vor.u32 %v2918_v25, %v2383_v26  ;;  %v2864_v36 = vld [vmem:[%s4548_s1 + $0x214] sm:$0xf]  ;;  %v2669_v42 = vld [vmem:[%s4548_s1 + $0x600] sm:$0xf] }
  0x26   :  { %1515 = vmatpush.bf16.msrb.mxu2 %v2266_v49  ;;  %1481 = vmatmul.bf16.vlgmr.msra.gmra.mxu3 %v3318_v5  ;;  %v2167_v37 = vld [vmem:[%s4548_s1 + $0x228] sm:$0xf0]  ;;  %v2912_v38 = vld [vmem:[%s4548_s1 + $0x394] sm:$0xf]  ;;  %v1978_v41 = vor.u32 %v2816_v33, %v1975_v34  ;;  %v2993_v43 = vld [vmem:[%s4548_s1 + $0x614] sm:$0xf0] }
  0x27   :  { %1529 = vmatpush.bf16.msrb.mxu3 %v2458_v53  ;;  %250 = vperm.xlu0 %3021, %v246_v30   ;;  %v2359_v39 = vld [vmem:[%s4548_s1 + $0x3a8] sm:$0xf0]  ;;  %v2810_v44 = vld [vmem:[%s4548_s1 + $0x64] sm:$0xf]  ;;  %v2170_v45 = vor.u32 %v2864_v36, %v2167_v37  ;;  %v1951_v46 = vld [vmem:[%s4548_s1 + $0x78] sm:$0xf0]  ;;  %v2670_v55 = vor.u32 %v2993_v43, %v2669_v42 }
  0x28   :  { %1490 = vmatpush.bf16.msrb.mxu0 %v2766_v62  ;;  %v2858_v47 = vld [vmem:[%s4548_s1 + $0x1e4] sm:$0xf]  ;;  %v2143_v48 = vld [vmem:[%s4548_s1 + $0x1f8] sm:$0xf0]  ;;  %v2362_v49 = vor.u32 %v2912_v38, %v2359_v39  ;;  %v2984_v50 = vld [vmem:[%s4548_s1 + $0x5d4] sm:$0xf]  ;;  %v1954_v56 = vor.u32 %v2810_v44, %v1951_v46 }
  0x29   :  { %1502 = vmatpush.bf16.msrb.mxu1 %v2050_v63  ;;  %v2647_v51 = vld [vmem:[%s4548_s1 + $0x5e8] sm:$0xf0]  ;;  %v2906_v53 = vld [vmem:[%s4548_s1 + $0x364] sm:$0xf]  ;;  %v2335_v54 = vld [vmem:[%s4548_s1 + $0x378] sm:$0xf0]  ;;  %v2146_v62 = vor.u32 %v2858_v47, %v2143_v48 }
  0x2a   :  { %1516 = vmatpush.bf16.msrb.mxu2 %v2242_v3  ;;  %v247_v52 = vld [vmem:[%s4550_s2 + $0x8] sm:$0xff]  ;;  %v1897_v58 = vld [vmem:[%s4549_s0 + $0x10] sm:$0xf]  ;;  %v2797_v59 = vld [vmem:[%s4549_s0 + $0x20] sm:$0xf0]  ;;  %v2650_v63 = vor.u32 %v2984_v50, %v2647_v51  ;;  %v2338_v3 = vor.u32 %v2906_v53, %v2335_v54 }
  0x2b   :  { %1530 = vmatpush.bf16.msrb.mxu3 %v2434_v8  ;;  %v2804_v0 = vld [vmem:[%s4548_s1 + $0x34] sm:$0xf]  ;;  %v1927_v1 = vld [vmem:[%s4548_s1 + $0x48] sm:$0xf0]  ;;  %v2978_v4 = vld [vmem:[%s4548_s1 + $0x5a4] sm:$0xf]  ;;  %v3453_v7 = vor.u32 %v2797_v59, %v1897_v58 }
  0x2c   :  { %1491 = vmatpush.bf16.msrb.mxu0 %v2742_v15  ;;  %v2852_v2 = vld [vmem:[%s4548_s1 + $0x1b4] sm:$0xf]  ;;  %v2119_v10 = vld [vmem:[%s4548_s1 + $0x1c8] sm:$0xf0]  ;;  %v2623_v6 = vld [vmem:[%s4548_s1 + $0x5b8] sm:$0xf0]  ;;  %v1930_v11 = vor.u32 %v2804_v0, %v1927_v1 }
  0x2d   :  { %1503 = vmatpush.bf16.msrb.mxu1 %v2026_v16  ;;  %v2900_v8 = vld [vmem:[%s4548_s1 + $0x334] sm:$0xf]  ;;  %v2311_v9 = vld [vmem:[%s4548_s1 + $0x348] sm:$0xf0]  ;;  %v2122_v13 = vor.u32 %v2852_v2, %v2119_v10  ;;  %v2626_v14 = vor.u32 %v2978_v4, %v2623_v6  ;;  %v2798_v15 = vld [vmem:[%s4548_s1 + $0x4] sm:$0xf] }
  0x2e   :  { %1517 = vmatpush.bf16.msrb.mxu2 %v2218_v18  ;;  %v1903_v16 = vld [vmem:[%s4548_s1 + $0x18] sm:$0xf0]  ;;  %v2846_v17 = vld [vmem:[%s4548_s1 + $0x184] sm:$0xf]  ;;  %v1181_v18 = vpack.c.b16 %v953_v61, %v953_v61  ;;  %v2314_v19 = vor.u32 %v2900_v8, %v2311_v9  ;;  %v2972_v21 = vld [vmem:[%s4548_s1 + $0x574] sm:$0xf] }
  0x2f   :  { %1531 = vmatpush.bf16.msrb.mxu3 %v2410_v22  ;;  %255 = vperm.xlu0 %3021, %v247_v52   ;;  %v2095_v20 = vld [vmem:[%s4548_s1 + $0x198] sm:$0xf0]  ;;  %v2599_v22 = vld [vmem:[%s4548_s1 + $0x588] sm:$0xf0]  ;;  %v2077_v23 = vld [vmem:[%s4548_s1 + $0x158] sm:$0xf]  ;;  %v1906_v25 = vor.u32 %v2798_v15, %v1903_v16 }
  0x30   :  { %1492 = vmatpush.bf16.msrb.mxu0 %v2718_v27  ;;  %v2844_v24 = vld [vmem:[%s4548_s1 + $0x16c] sm:$0xf0]  ;;  %v2894_v26 = vld [vmem:[%s4548_s1 + $0x304] sm:$0xf]  ;;  %v2287_v27 = vld [vmem:[%s4548_s1 + $0x318] sm:$0xf0]  ;;  %v2602_v29 = vor.u32 %v2972_v21, %v2599_v22 }
  0x31   :  { %1504 = vmatpush.bf16.msrb.mxu1 %v2002_v28  ;;  %v2098_v28 = vor.u32 %v2846_v17, %v2095_v20  ;;  %v1417_v30 = vsel %vm1412_vm0, %v1181_v18, 0  ;;  %v2892_v32 = vld [vmem:[%s4548_s1 + $0x2ec] sm:$0xf0]  ;;  %v2078_v33 = vor.u32 %v2844_v24, %v2077_v23  ;;  %v2966_v34 = vld [vmem:[%s4548_s1 + $0x544] sm:$0xf]  ;;  %v2290_v37 = vor.u32 %v2894_v26, %v2287_v27 }
  0x32   :  { %1518 = vmatpush.bf16.msrb.mxu2 %v2194_v31  ;;  %v2269_v31 = vld [vmem:[%s4548_s1 + $0x2d8] sm:$0xf]  ;;  %v3014_v36 = vld [vmem:[%s4548_s1 + $0x6c4] sm:$0xf]  ;;  %v2767_v38 = vld [vmem:[%s4548_s1 + $0x6d8] sm:$0xf0] }
  0x33   :  { %1532 = vmatpush.bf16.msrb.mxu3 %v2386_v35  ;;  %v2575_v35 = vld [vmem:[%s4548_s1 + $0x558] sm:$0xf0]  ;;  %v2053_v39 = vld [vmem:[%s4548_s1 + $0x128] sm:$0xf]  ;;  %v2886_v44 = vld [vmem:[%s4548_s1 + $0x2bc] sm:$0xf0] }
  0x34   :  { %1493 = vmatpush.bf16.msrb.mxu0 %v2694_v40  ;;  %v2838_v40 = vld [vmem:[%s4548_s1 + $0x13c] sm:$0xf0]  ;;  %v2578_v42 = vor.u32 %v2966_v34, %v2575_v35  ;;  %v2245_v43 = vld [vmem:[%s4548_s1 + $0x2a8] sm:$0xf]  ;;  %v2960_v47 = vld [vmem:[%s4548_s1 + $0x514] sm:$0xf] }
  0x35   :  { %1505 = vmatpush.bf16.msrb.mxu1 %v1978_v41  ;;  %v2270_v41 = vor.u32 %v2892_v32, %v2269_v31  ;;  %v2054_v46 = vor.u32 %v2838_v40, %v2053_v39  ;;  %v2551_v48 = vld [vmem:[%s4548_s1 + $0x528] sm:$0xf0]  ;;  %v2029_v51 = vld [vmem:[%s4548_s1 + $0xf8] sm:$0xf]  ;;  %v2832_v52 = vld [vmem:[%s4548_s1 + $0x10c] sm:$0xf0]  ;;  %v2246_v53 = vor.u32 %v2886_v44, %v2245_v43 }
  0x36   :  { %1519 = vmatpush.bf16.msrb.mxu2 %v2170_v45  ;;  %v2770_v45 = vor.u32 %v3014_v36, %v2767_v38  ;;  %v2743_v50 = vld [vmem:[%s4548_s1 + $0x6a8] sm:$0xf0]  ;;  %v2554_v54 = vor.u32 %v2960_v47, %v2551_v48  ;;  %v2030_v59 = vor.u32 %v2832_v52, %v2029_v51  ;;  %v2954_v61 = vld [vmem:[%s4548_s1 + $0x4e4] sm:$0xf]  ;;  %v2719_v0 = vld [vmem:[%s4548_s1 + $0x678] sm:$0xf0] }
  0x37   :  { %1533 = vmatpush.bf16.msrb.mxu3 %v2362_v49  ;;  %v3008_v49 = vld [vmem:[%s4548_s1 + $0x694] sm:$0xf]  ;;  %v2005_v1 = vld [vmem:[%s4548_s1 + $0xc8] sm:$0xf]  ;;  %v2826_v2 = vld [vmem:[%s4548_s1 + $0xdc] sm:$0xf0] }
  0x38   :  { %1494 = vmatpush.bf16.msrb.mxu0 %v2670_v55  ;;  %v2221_v55 = vld [vmem:[%s4548_s1 + $0x278] sm:$0xf]  ;;  %v2746_v58 = vor.u32 %v3008_v49, %v2743_v50  ;;  %v2197_v4 = vld [vmem:[%s4548_s1 + $0x248] sm:$0xf]  ;;  %v2874_v6 = vld [vmem:[%s4548_s1 + $0x25c] sm:$0xf0]  ;;  %v2006_v9 = vor.u32 %v2826_v2, %v2005_v1 }
  0x39   :  { %1506 = vmatpush.bf16.msrb.mxu1 %v1954_v56  ;;  %v2880_v56 = vld [vmem:[%s4548_s1 + $0x28c] sm:$0xf0]  ;;  %v2695_v15 = vld [vmem:[%s4548_s1 + $0x648] sm:$0xf0]  ;;  %v1981_v16 = vld [vmem:[%s4548_s1 + $0x98] sm:$0xf]  ;;  %v2198_v18 = vor.u32 %v2874_v6, %v2197_v4 }
  0x3a   :  { %1520 = vmatpush.bf16.msrb.mxu2 %v2146_v62  ;;  %v2527_v62 = vld [vmem:[%s4548_s1 + $0x4f8] sm:$0xf0]  ;;  %v2820_v17 = vld [vmem:[%s4548_s1 + $0xac] sm:$0xf0]  ;;  %v2173_v20 = vld [vmem:[%s4548_s1 + $0x218] sm:$0xf] }
  0x3b   :  { %1534 = vmatpush.bf16.msrb.mxu3 %v2338_v3  ;;  %2787 = vmatmul.msk.bf16.vlgmr.msrb.gmra.mxu0 %vm1408_vm1, %v3453_v7  ;;  %v2222_v3 = vor.u32 %v2880_v56, %v2221_v55  ;;  %v2530_v10 = vor.u32 %v2954_v61, %v2527_v62  ;;  %v2868_v21 = vld [vmem:[%s4548_s1 + $0x22c] sm:$0xf0]  ;;  %v2942_v22 = vld [vmem:[%s4548_s1 + $0x484] sm:$0xf]  ;;  %v1982_v24 = vor.u32 %v2820_v17, %v1981_v16  ;;  %v2671_v27 = vld [vmem:[%s4548_s1 + $0x618] sm:$0xf0] }
  0x3c   :  { %1543 = vmatpush.bf16.msra.mxu0 %v2650_v63  ;;  %v3002_v63 = vld [vmem:[%s4548_s1 + $0x664] sm:$0xf]  ;;  %v2174_v31 = vor.u32 %v2868_v21, %v2173_v20  ;;  %v2940_v32 = vld [vmem:[%s4548_s1 + $0x46c] sm:$0xf0]  ;;  %v2149_v36 = vld [vmem:[%s4548_s1 + $0x1e8] sm:$0xf] }
  0x3d   :  { %1507 = vmatpush.bf16.msrb.mxu1 %v1930_v11  ;;  %v2722_v8 = vor.u32 %v3002_v63, %v2719_v0  ;;  %v2948_v11 = vld [vmem:[%s4548_s1 + $0x4b4] sm:$0xf]  ;;  %v2990_v26 = vld [vmem:[%s4548_s1 + $0x604] sm:$0xf]  ;;  %v2988_v34 = vld [vmem:[%s4548_s1 + $0x5ec] sm:$0xf0] }
  0x3e   :  { %1521 = vmatpush.bf16.msrb.mxu2 %v2122_v13  ;;  %v2503_v13 = vld [vmem:[%s4548_s1 + $0x4c8] sm:$0xf0]  ;;  %v2674_v38 = vor.u32 %v2990_v26, %v2671_v27  ;;  %v3638_v40 = vld [vmem:[%s4548_s1 + $0x6f8] sm:$0xff]  ;;  %v2808_v44 = vld [vmem:[%s4548_s1 + $0x4c] sm:$0xf0] }
  0x3f   :  { %1535 = vmatpush.bf16.msrb.mxu3 %v2314_v19  ;;  %v2506_v19 = vor.u32 %v2948_v11, %v2503_v13  ;;  %v1933_v43 = vld [vmem:[%s4548_s1 + $0x38] sm:$0xf]  ;;  %v2934_v47 = vld [vmem:[%s4548_s1 + $0x43c] sm:$0xf0]  ;;  %v2629_v48 = vld [vmem:[%s4548_s1 + $0x5a8] sm:$0xf]  ;;  %v954_v52 = vunpack.c.l.b16 %v3638_v40 }
  0x40   :  { %1544 = vmatpush.bf16.msra.mxu0 %v2626_v14  ;;  %v2996_v14 = vld [vmem:[%s4548_s1 + $0x634] sm:$0xf]  ;;  %v2982_v49 = vld [vmem:[%s4548_s1 + $0x5bc] sm:$0xf0]  ;;  %v2125_v50 = vld [vmem:[%s4548_s1 + $0x1b8] sm:$0xf] }
  0x41   :  { %1508 = vmatpush.bf16.msrb.mxu1 %v1906_v25  ;;  %v2698_v23 = vor.u32 %v2996_v14, %v2695_v15  ;;  %v2479_v25 = vld [vmem:[%s4548_s1 + $0x498] sm:$0xf0]  ;;  %v2856_v51 = vld [vmem:[%s4548_s1 + $0x1cc] sm:$0xf0]  ;;  %v2630_v55 = vor.u32 %v2982_v49, %v2629_v48  ;;  %v1909_v56 = vld [vmem:[%s4548_s1 + $0x8] sm:$0xf]  ;;  %v1182_v1 = vpack.c.b16 %v954_v52, %v954_v52 }
  0x42   :  { %1522 = vmatpush.bf16.msrb.mxu2 %v2098_v28  ;;  %v1957_v28 = vld [vmem:[%s4548_s1 + $0x68] sm:$0xf]  ;;  %v2482_v35 = vor.u32 %v2942_v22, %v2479_v25  ;;  %v2126_v61 = vor.u32 %v2856_v51, %v2125_v50  ;;  %v2928_v62 = vld [vmem:[%s4548_s1 + $0x40c] sm:$0xf0]  ;;  %v2605_v63 = vld [vmem:[%s4548_s1 + $0x578] sm:$0xf] }
  0x43   :  { %1536 = vmatpush.bf16.msrb.mxu3 %v2290_v37  ;;  %v2862_v37 = vld [vmem:[%s4548_s1 + $0x1fc] sm:$0xf0]  ;;  %v2976_v0 = vld [vmem:[%s4548_s1 + $0x58c] sm:$0xf0]  ;;  %v2101_v2 = vld [vmem:[%s4548_s1 + $0x188] sm:$0xf] }
  0x44   :  { %1545 = vmatpush.bf16.msra.mxu0 %v2602_v29  ;;  %1509 = vmatmul.bf16.vlgmr.msrb.gmra.mxu1 %v3293_v57  ;;  %v2814_v29 = vld [vmem:[%s4548_s1 + $0x7c] sm:$0xf0]  ;;  %v2841_v4 = vld [vmem:[%s4548_s1 + $0x15c] sm:$0xf]  ;;  %v2079_v6 = vld [vmem:[%s4548_s1 + $0x170] sm:$0xf0] }
  0x45   :  { %1559 = vmatpush.bf16.msra.mxu1 %v1417_v30  ;;  %1523 = vmatmul.bf16.vlgmr.msrb.gmra.mxu2 %v3333_v12  ;;  %v2461_v30 = vld [vmem:[%s4548_s1 + $0x458] sm:$0xf]  ;;  %v1958_v39 = vor.u32 %v2814_v29, %v1957_v28  ;;  %v2389_v11 = vld [vmem:[%s4548_s1 + $0x3c8] sm:$0xf]  ;;  %v2922_v14 = vld [vmem:[%s4548_s1 + $0x3dc] sm:$0xf0] }
  0x46   :  { %1571 = vmatpush.bf16.msra.mxu2 %v2078_v33  ;;  %1537 = vmatmul.bf16.vlgmr.msrb.gmra.mxu3 %v3301_v60  ;;  %v2653_v33 = vld [vmem:[%s4548_s1 + $0x5d8] sm:$0xf]  ;;  %v2581_v15 = vld [vmem:[%s4548_s1 + $0x548] sm:$0xf]  ;;  %v2970_v16 = vld [vmem:[%s4548_s1 + $0x55c] sm:$0xf0] }
  0x47   :  { %1585 = vmatpush.bf16.msra.mxu3 %v2270_v41  ;;  %v2462_v41 = vor.u32 %v2940_v32, %v2461_v30  ;;  %v1420_v17 = vsel %vm1412_vm0, %v1182_v1, 0  ;;  %v3018_v20 = vld [vmem:[%s4548_s1 + $0x6dc] sm:$0xf0]  ;;  %v2835_v21 = vld [vmem:[%s4548_s1 + $0x12c] sm:$0xf] }
  0x48   :  { %1546 = vmatpush.bf16.msra.mxu0 %v2578_v42  ;;  %v2654_v42 = vor.u32 %v2988_v34, %v2653_v33  ;;  %v2055_v22 = vld [vmem:[%s4548_s1 + $0x140] sm:$0xf0]  ;;  %v2365_v25 = vld [vmem:[%s4548_s1 + $0x398] sm:$0xf]  ;;  %v2916_v27 = vld [vmem:[%s4548_s1 + $0x3ac] sm:$0xf0] }
  0x49   :  { %1560 = vmatpush.bf16.msra.mxu1 %v2770_v45  ;;  %v2437_v45 = vld [vmem:[%s4548_s1 + $0x428] sm:$0xf]  ;;  %v2557_v28 = vld [vmem:[%s4548_s1 + $0x518] sm:$0xf]  ;;  %v2964_v29 = vld [vmem:[%s4548_s1 + $0x52c] sm:$0xf0]  ;;  %v2058_v30 = vor.u32 %v2835_v21, %v2055_v22 }
  0x4a   :  { %1572 = vmatpush.bf16.msra.mxu2 %v2054_v46  ;;  %v2150_v46 = vor.u32 %v2862_v37, %v2149_v36  ;;  %v3012_v32 = vld [vmem:[%s4548_s1 + $0x6ac] sm:$0xf0]  ;;  %v2829_v33 = vld [vmem:[%s4548_s1 + $0xfc] sm:$0xf]  ;;  %v2031_v34 = vld [vmem:[%s4548_s1 + $0x110] sm:$0xf0]  ;;  %v2558_v36 = vor.u32 %v2964_v29, %v2557_v28 }
  0x4b   :  { %1586 = vmatpush.bf16.msra.mxu3 %v2246_v53  ;;  %v1934_v53 = vor.u32 %v2808_v44, %v1933_v43  ;;  %v2341_v37 = vld [vmem:[%s4548_s1 + $0x368] sm:$0xf]  ;;  %v2034_v43 = vor.u32 %v2829_v33, %v2031_v34  ;;  %v2317_v50 = vld [vmem:[%s4548_s1 + $0x338] sm:$0xf]  ;;  %v2904_v52 = vld [vmem:[%s4548_s1 + $0x34c] sm:$0xf0] }
  0x4c   :  { %1547 = vmatpush.bf16.msra.mxu0 %v2554_v54  ;;  %v2438_v54 = vor.u32 %v2934_v47, %v2437_v45  ;;  %v2725_v44 = vld [vmem:[%s4548_s1 + $0x668] sm:$0xf]  ;;  %v3006_v45 = vld [vmem:[%s4548_s1 + $0x67c] sm:$0xf0]  ;;  %v2007_v47 = vld [vmem:[%s4548_s1 + $0xe0] sm:$0xf0] }
  0x4d   :  { %1561 = vmatpush.bf16.msra.mxu1 %v2746_v58  ;;  %v2802_v58 = vld [vmem:[%s4548_s1 + $0x1c] sm:$0xf0]  ;;  %v2726_v51 = vor.u32 %v3006_v45, %v2725_v44  ;;  %v2439_v29 = vld [vmem:[%s4548_s1 + $0x440] sm:$0xf0]  ;;  %v1935_v33 = vld [vmem:[%s4548_s1 + $0x50] sm:$0xf0] }
  0x4e   :  { %1573 = vmatpush.bf16.msra.mxu2 %v2030_v59  ;;  %v2413_v59 = vld [vmem:[%s4548_s1 + $0x3f8] sm:$0xf]  ;;  %v2898_v1 = vld [vmem:[%s4548_s1 + $0x31c] sm:$0xf0]  ;;  %v2607_v44 = vld [vmem:[%s4548_s1 + $0x590] sm:$0xf0] }
  0x4f   :  { %1587 = vmatpush.bf16.msra.mxu3 %v2222_v3  ;;  %v2850_v3 = vld [vmem:[%s4548_s1 + $0x19c] sm:$0xf0]  ;;  %v2799_v45 = vld [vmem:[%s4548_s1 + $0xc] sm:$0xf] }
  0x50   :  { %1548 = vmatpush.bf16.msra.mxu0 %v2530_v10  ;;  %v1910_v10 = vor.u32 %v2802_v58, %v1909_v56  ;;  %v2102_v13 = vor.u32 %v2850_v3, %v2101_v2  ;;  %v2701_v56 = vld [vmem:[%s4548_s1 + $0x638] sm:$0xf]  ;;  %v3000_v58 = vld [vmem:[%s4548_s1 + $0x64c] sm:$0xf0]  ;;  %v2485_v2 = vld [vmem:[%s4548_s1 + $0x488] sm:$0xf] }
  0x51   :  { %1562 = vmatpush.bf16.msra.mxu1 %v2722_v8  ;;  %v2414_v8 = vor.u32 %v2928_v62, %v2413_v59  ;;  %v2817_v59 = vld [vmem:[%s4548_s1 + $0x9c] sm:$0xf]  ;;  %v2318_v62 = vor.u32 %v2904_v52, %v2317_v50  ;;  %v2702_v3 = vor.u32 %v3000_v58, %v2701_v56  ;;  %v2199_v52 = vld [vmem:[%s4548_s1 + $0x260] sm:$0xf0]  ;;  %v2967_v56 = vld [vmem:[%s4548_s1 + $0x54c] sm:$0xf] }
  0x52   :  { %1574 = vmatpush.bf16.msra.mxu2 %v2006_v9  ;;  %v2606_v9 = vor.u32 %v2976_v0, %v2605_v63  ;;  %v2293_v0 = vld [vmem:[%s4548_s1 + $0x308] sm:$0xf]  ;;  %v2583_v58 = vld [vmem:[%s4548_s1 + $0x560] sm:$0xf0] }
  0x53   :  { %1588 = vmatpush.bf16.msra.mxu3 %v2198_v18  ;;  %v2082_v18 = vor.u32 %v2841_v4, %v2079_v6  ;;  %v2677_v4 = vld [vmem:[%s4548_s1 + $0x608] sm:$0xf]  ;;  %v2994_v6 = vld [vmem:[%s4548_s1 + $0x61c] sm:$0xf0] }
  0x54   :  { %1549 = vmatpush.bf16.msra.mxu0 %v2506_v19  ;;  %v2773_v19 = vld [vmem:[%s4548_s1 + $0x6c8] sm:$0xf]  ;;  %v2678_v21 = vor.u32 %v2994_v6, %v2677_v4  ;;  %v2367_v4 = vld [vmem:[%s4548_s1 + $0x3b0] sm:$0xf0]  ;;  %v2961_v6 = vld [vmem:[%s4548_s1 + $0x51c] sm:$0xf] }
  0x55   :  { %1563 = vmatpush.bf16.msra.mxu1 %v2698_v23  ;;  %v2390_v23 = vor.u32 %v2922_v14, %v2389_v11  ;;  %v2774_v26 = vor.u32 %v3018_v20, %v2773_v19  ;;  %v2271_v11 = vld [vmem:[%s4548_s1 + $0x2f0] sm:$0xf0]  ;;  %v2811_v19 = vld [vmem:[%s4548_s1 + $0x6c] sm:$0xf]  ;;  %v1959_v20 = vld [vmem:[%s4548_s1 + $0x80] sm:$0xf0] }
  0x56   :  { %1575 = vmatpush.bf16.msra.mxu2 %v1982_v24  ;;  %v2582_v24 = vor.u32 %v2970_v16, %v2581_v15  ;;  %v2463_v14 = vld [vmem:[%s4548_s1 + $0x470] sm:$0xf0]  ;;  %v2985_v15 = vld [vmem:[%s4548_s1 + $0x5dc] sm:$0xf]  ;;  %v1962_v28 = vor.u32 %v2811_v19, %v1959_v20  ;;  %v2907_v19 = vld [vmem:[%s4548_s1 + $0x36c] sm:$0xf] }
  0x57   :  { %1589 = vmatpush.bf16.msra.mxu3 %v2174_v31  ;;  %v2749_v31 = vld [vmem:[%s4548_s1 + $0x698] sm:$0xf]  ;;  %v2655_v16 = vld [vmem:[%s4548_s1 + $0x5f0] sm:$0xf0]  ;;  %v2343_v20 = vld [vmem:[%s4548_s1 + $0x380] sm:$0xf0] }
  0x58   :  { %1550 = vmatpush.bf16.msra.mxu0 %v2482_v35  ;;  %v2366_v35 = vor.u32 %v2916_v27, %v2365_v25  ;;  %v2883_v25 = vld [vmem:[%s4548_s1 + $0x2ac] sm:$0xf] }
  0x59   :  { %1564 = vmatpush.bf16.msra.mxu1 %v2674_v38  ;;  %v2750_v38 = vor.u32 %v3012_v32, %v2749_v31  ;;  %v2931_v27 = vld [vmem:[%s4548_s1 + $0x42c] sm:$0xf]  ;;  %v2631_v31 = vld [vmem:[%s4548_s1 + $0x5c0] sm:$0xf0]  ;;  %v2805_v32 = vld [vmem:[%s4548_s1 + $0x3c] sm:$0xf] }
  0x5a   :  { %1576 = vmatpush.bf16.msra.mxu2 %v1958_v39  ;;  %v2910_v39 = vld [vmem:[%s4548_s1 + $0x37c] sm:$0xf0] }
  0x5b   :  { %1590 = vmatpush.bf16.msra.mxu3 %v2150_v46  ;;  %1551 = vmatmul.bf16.vlgmr.msra.gmra.mxu0 %v3318_v5  ;;  %v2823_v46 = vld [vmem:[%s4548_s1 + $0xcc] sm:$0xf]  ;;  %v2342_v48 = vor.u32 %v2910_v39, %v2341_v37  ;;  %v2223_v39 = vld [vmem:[%s4548_s1 + $0x290] sm:$0xf0] }
  0x5c   :  { %1599 = vmatpush.bf16.msrb.mxu0 %v2462_v41  ;;  %2788 = vmatmul.msk.bf16.vlgmr.msra.gmra.mxu1 %vm1408_vm1, %v3453_v7  ;;  %v2533_v41 = vld [vmem:[%s4548_s1 + $0x4e8] sm:$0xf] }
  0x5d   :  { %1613 = vmatpush.bf16.msrb.mxu1 %v2654_v42  ;;  %v2958_v42 = vld [vmem:[%s4548_s1 + $0x4fc] sm:$0xf0] }
  0x5e   :  { %1577 = vmatpush.bf16.msra.mxu2 %v1934_v53  ;;  %v2534_v49 = vor.u32 %v2958_v42, %v2533_v41  ;;  %v2509_v53 = vld [vmem:[%s4548_s1 + $0x4b8] sm:$0xf]  ;;  %v2925_v41 = vld [vmem:[%s4548_s1 + $0x3fc] sm:$0xf]  ;;  %v1938_v42 = vor.u32 %v2805_v32, %v1935_v33  ;;  %v2319_v32 = vld [vmem:[%s4548_s1 + $0x350] sm:$0xf0] }
  0x5f   :  { %1591 = vmatpush.bf16.msra.mxu3 %v2126_v61  ;;  %v1983_v61 = vld [vmem:[%s4548_s1 + $0xb0] sm:$0xf0]  ;;  %v2949_v33 = vld [vmem:[%s4548_s1 + $0x4bc] sm:$0xf] }
  0x60   :  { %1600 = vmatpush.bf16.msrb.mxu0 %v2438_v54  ;;  %v2952_v54 = vld [vmem:[%s4548_s1 + $0x4cc] sm:$0xf0] }
  0x61   :  { %1614 = vmatpush.bf16.msrb.mxu1 %v2630_v55  ;;  %v2010_v55 = vor.u32 %v2823_v46, %v2007_v47  ;;  %v2510_v63 = vor.u32 %v2952_v54, %v2509_v53  ;;  %v1911_v46 = vld [vmem:[%s4548_s1 + $0x20] sm:$0xf0]  ;;  %v2919_v53 = vld [vmem:[%s4548_s1 + $0x3cc] sm:$0xf] }
  0x62   :  { %1578 = vmatpush.bf16.msra.mxu2 %v1910_v10  ;;  %v2946_v10 = vld [vmem:[%s4548_s1 + $0x49c] sm:$0xf0]  ;;  %v1914_v54 = vor.u32 %v2799_v45, %v1911_v46  ;;  %v2943_v45 = vld [vmem:[%s4548_s1 + $0x48c] sm:$0xf]  ;;  %v2487_v46 = vld [vmem:[%s4548_s1 + $0x4a0] sm:$0xf0] }
  0x63   :  { %1592 = vmatpush.bf16.msra.mxu3 %v2102_v13  ;;  %v2937_v13 = vld [vmem:[%s4548_s1 + $0x45c] sm:$0xf] }
  0x64   :  { %1601 = vmatpush.bf16.msrb.mxu0 %v2414_v8  ;;  %v1986_v8 = vor.u32 %v2817_v59, %v1983_v61 }
  0x65   :  { %1615 = vmatpush.bf16.msrb.mxu1 %v2606_v9  ;;  %1579 = vmatmul.bf16.vlgmr.msra.gmra.mxu2 %v3293_v57  ;;  %v2889_v9 = vld [vmem:[%s4548_s1 + $0x2dc] sm:$0xf] }
  0x66   :  { %1629 = vmatpush.bf16.msrb.mxu2 %v1420_v17  ;;  %1593 = vmatmul.bf16.vlgmr.msra.gmra.mxu3 %v3333_v12  ;;  %v2294_v17 = vor.u32 %v2898_v1, %v2293_v0  ;;  %v2274_v22 = vor.u32 %v2889_v9, %v2271_v11  ;;  %v2586_v1 = vor.u32 %v2967_v56, %v2583_v58  ;;  %v2679_v56 = vld [vmem:[%s4548_s1 + $0x620] sm:$0xf0] }
  0x67   :  { %1641 = vmatpush.bf16.msrb.mxu3 %v2082_v18  ;;  %v2486_v18 = vor.u32 %v2946_v10, %v2485_v2  ;;  %v2865_v2 = vld [vmem:[%s4548_s1 + $0x21c] sm:$0xf] }
  0x68   :  { %1602 = vmatpush.bf16.msrb.mxu0 %v2390_v23  ;;  %v2466_v23 = vor.u32 %v2937_v13, %v2463_v14  ;;  %v2913_v10 = vld [vmem:[%s4548_s1 + $0x39c] sm:$0xf]  ;;  %v2751_v14 = vld [vmem:[%s4548_s1 + $0x6b0] sm:$0xf0] }
  0x69   :  { %1616 = vmatpush.bf16.msrb.mxu1 %v2582_v24  ;;  %v2658_v24 = vor.u32 %v2985_v15, %v2655_v16  ;;  %v3009_v13 = vld [vmem:[%s4548_s1 + $0x69c] sm:$0xf]  ;;  %v2370_v15 = vor.u32 %v2913_v10, %v2367_v4  ;;  %v2839_v10 = vld [vmem:[%s4548_s1 + $0x144] sm:$0xf0]  ;;  %v2253_v4 = vld [vmem:[%s4548_s1 + $0x2b0] sm:$0xf] }
  0x6a   :  { %1630 = vmatpush.bf16.msrb.mxu2 %v2774_v26  ;;  %v2247_v26 = vld [vmem:[%s4548_s1 + $0x2c0] sm:$0xf0] }
  0x6b   :  { %1642 = vmatpush.bf16.msrb.mxu3 %v2058_v30  ;;  %v2979_v30 = vld [vmem:[%s4548_s1 + $0x5ac] sm:$0xf]  ;;  %v2250_v34 = vor.u32 %v2883_v25, %v2247_v26  ;;  %v2727_v26 = vld [vmem:[%s4548_s1 + $0x680] sm:$0xf0] }
  0x6c   :  { %1603 = vmatpush.bf16.msrb.mxu0 %v2366_v35  ;;  %v955_v35 = vunpack.c.h.b16 %v3638_v40  ;;  %v2634_v37 = vor.u32 %v2979_v30, %v2631_v31  ;;  %v2415_v40 = vld [vmem:[%s4548_s1 + $0x410] sm:$0xf0]  ;;  %v3003_v25 = vld [vmem:[%s4548_s1 + $0x66c] sm:$0xf]  ;;  %v2901_v31 = vld [vmem:[%s4548_s1 + $0x33c] sm:$0xf] }
  0x6d   :  { %1617 = vmatpush.bf16.msrb.mxu1 %v2558_v36  ;;  %v2442_v36 = vor.u32 %v2931_v27, %v2439_v29  ;;  %v2346_v27 = vor.u32 %v2907_v19, %v2343_v20  ;;  %v2853_v29 = vld [vmem:[%s4548_s1 + $0x1bc] sm:$0xf]  ;;  %v2127_v30 = vld [vmem:[%s4548_s1 + $0x1d0] sm:$0xf0]  ;;  %v2833_v19 = vld [vmem:[%s4548_s1 + $0x114] sm:$0xf0] }
  0x6e   :  { %1631 = vmatpush.bf16.msrb.mxu2 %v2750_v38  ;;  %v2877_v38 = vld [vmem:[%s4548_s1 + $0x27c] sm:$0xf]  ;;  %v2229_v20 = vld [vmem:[%s4548_s1 + $0x280] sm:$0xf] }
  0x6f   :  { %1643 = vmatpush.bf16.msrb.mxu3 %v2034_v43  ;;  %v2973_v43 = vld [vmem:[%s4548_s1 + $0x57c] sm:$0xf]  ;;  %v2226_v47 = vor.u32 %v2877_v38, %v2223_v39  ;;  %v2703_v38 = vld [vmem:[%s4548_s1 + $0x650] sm:$0xf0]  ;;  %v2847_v39 = vld [vmem:[%s4548_s1 + $0x18c] sm:$0xf] }
  0x70   :  { %1604 = vmatpush.bf16.msrb.mxu0 %v2342_v48  ;;  %v1183_v48 = vpack.c.b16 %v955_v35, %v955_v35  ;;  %v2610_v50 = vor.u32 %v2973_v43, %v2607_v44  ;;  %v2730_v35 = vor.u32 %v3003_v25, %v2727_v26  ;;  %v2895_v43 = vld [vmem:[%s4548_s1 + $0x30c] sm:$0xf]  ;;  %v2295_v44 = vld [vmem:[%s4548_s1 + $0x320] sm:$0xf0]  ;;  %v2613_v25 = vld [vmem:[%s4548_s1 + $0x580] sm:$0xf] }
  0x71   :  { %1618 = vmatpush.bf16.msrb.mxu1 %v2534_v49  ;;  %v2418_v49 = vor.u32 %v2925_v41, %v2415_v40  ;;  %v2103_v41 = vld [vmem:[%s4548_s1 + $0x1a0] sm:$0xf0]  ;;  %v2298_v58 = vor.u32 %v2895_v43, %v2295_v44  ;;  %v2977_v26 = vld [vmem:[%s4548_s1 + $0x594] sm:$0xf0]  ;;  %v2181_v44 = vld [vmem:[%s4548_s1 + $0x220] sm:$0xf] }
  0x72   :  { %1632 = vmatpush.bf16.msrb.mxu2 %v2726_v51  ;;  %v2871_v51 = vld [vmem:[%s4548_s1 + $0x24c] sm:$0xf]  ;;  %v1423_v59 = vsel %vm1412_vm0, %v1183_v48, 0  ;;  %v2845_v48 = vld [vmem:[%s4548_s1 + $0x174] sm:$0xf0] }
  0x73   :  { %1644 = vmatpush.bf16.msrb.mxu3 %v2010_v55  ;;  %v2391_v55 = vld [vmem:[%s4548_s1 + $0x3e0] sm:$0xf0]  ;;  %v2202_v61 = vor.u32 %v2871_v51, %v2199_v52  ;;  %v2893_v51 = vld [vmem:[%s4548_s1 + $0x2f4] sm:$0xf0]  ;;  %v2469_v52 = vld [vmem:[%s4548_s1 + $0x460] sm:$0xf] }
  0x74   :  { %1605 = vmatpush.bf16.msrb.mxu0 %v2318_v62  ;;  %v3015_v62 = vld [vmem:[%s4548_s1 + $0x6cc] sm:$0xf]  ;;  %v2394_v0 = vor.u32 %v2919_v53, %v2391_v55  ;;  %v2106_v53 = vor.u32 %v2847_v39, %v2103_v41  ;;  %v2821_v43 = vld [vmem:[%s4548_s1 + $0xb4] sm:$0xf0] }
  0x75   :  { %1619 = vmatpush.bf16.msrb.mxu1 %v2510_v63  ;;  %v2775_v63 = vld [vmem:[%s4548_s1 + $0x6e0] sm:$0xf0]  ;;  %v2991_v55 = vld [vmem:[%s4548_s1 + $0x60c] sm:$0xf] }
  0x76   :  { %1633 = vmatpush.bf16.msrb.mxu2 %v2702_v3  ;;  %v2175_v3 = vld [vmem:[%s4548_s1 + $0x230] sm:$0xf0]  ;;  %v2778_v9 = vor.u32 %v3015_v62, %v2775_v63  ;;  %v2989_v62 = vld [vmem:[%s4548_s1 + $0x5f4] sm:$0xf0] }
  0x77   :  { %1645 = vmatpush.bf16.msrb.mxu3 %v1986_v8  ;;  %v2559_v8 = vld [vmem:[%s4548_s1 + $0x530] sm:$0xf0]  ;;  %v2178_v11 = vor.u32 %v2865_v2, %v2175_v3  ;;  %v2682_v2 = vor.u32 %v2991_v55, %v2679_v56  ;;  %v2061_v3 = vld [vmem:[%s4548_s1 + $0x130] sm:$0xf]  ;;  %v2815_v55 = vld [vmem:[%s4548_s1 + $0x84] sm:$0xf0] }
  0x78   :  { %1606 = vmatpush.bf16.msrb.mxu0 %v2294_v17  ;;  %v2562_v16 = vor.u32 %v2961_v6, %v2559_v8  ;;  %v2859_v17 = vld [vmem:[%s4548_s1 + $0x1ec] sm:$0xf]  ;;  %v2887_v8 = vld [vmem:[%s4548_s1 + $0x2c4] sm:$0xf0]  ;;  %v2157_v56 = vld [vmem:[%s4548_s1 + $0x1f0] sm:$0xf] }
  0x79   :  { %1620 = vmatpush.bf16.msrb.mxu1 %v2486_v18  ;;  %v2151_v18 = vld [vmem:[%s4548_s1 + $0x200] sm:$0xf0] }
  0x7a   :  { %1634 = vmatpush.bf16.msrb.mxu2 %v2678_v21  ;;  %v2955_v21 = vld [vmem:[%s4548_s1 + $0x4ec] sm:$0xf] }
  0x7b   :  { %1646 = vmatpush.bf16.msrb.mxu3 %v1962_v28  ;;  %1607 = vmatmul.bf16.vlgmr.msrb.gmra.mxu0 %v3301_v60 }
  0x7c   :  { %1655 = vmatpush.bf16.msra.mxu0 %v2274_v22  ;;  %1621 = vmatmul.bf16.vlgmr.msrb.gmra.mxu1 %v3318_v5  ;;  %v2535_v22 = vld [vmem:[%s4548_s1 + $0x500] sm:$0xf0] }
  0x7d   :  { %1669 = vmatpush.bf16.msra.mxu1 %v2466_v23  ;;  %2789 = vmatmul.msk.bf16.vlgmr.msrb.gmra.mxu2 %vm1408_vm1, %v3453_v7  ;;  %v2754_v23 = vor.u32 %v3009_v13, %v2751_v14  ;;  %v2538_v28 = vor.u32 %v2955_v21, %v2535_v22  ;;  %v2637_v13 = vld [vmem:[%s4548_s1 + $0x5b0] sm:$0xf]  ;;  %v2983_v14 = vld [vmem:[%s4548_s1 + $0x5c4] sm:$0xf0]  ;;  %v2881_v22 = vld [vmem:[%s4548_s1 + $0x294] sm:$0xf0] }
  0x7e   :  { %1683 = vmatpush.bf16.msra.mxu2 %v2658_v24  ;;  %v2154_v24 = vor.u32 %v2859_v17, %v2151_v18  ;;  %v2037_v18 = vld [vmem:[%s4548_s1 + $0x100] sm:$0xf]  ;;  %v2638_v21 = vor.u32 %v2983_v14, %v2637_v13  ;;  %v2905_v14 = vld [vmem:[%s4548_s1 + $0x354] sm:$0xf0] }
  0x7f   :  { %1647 = vmatpush.bf16.msrb.mxu3 %v1938_v42  ;;  %v2322_v42 = vor.u32 %v2901_v31, %v2319_v32  ;;  %v2827_v31 = vld [vmem:[%s4548_s1 + $0xe4] sm:$0xf0]  ;;  %v2205_v32 = vld [vmem:[%s4548_s1 + $0x250] sm:$0xf]  ;;  %v2325_v13 = vld [vmem:[%s4548_s1 + $0x340] sm:$0xf] }
  0x80   :  { %1656 = vmatpush.bf16.msra.mxu0 %v2250_v34  ;;  %v2511_v34 = vld [vmem:[%s4548_s1 + $0x4d0] sm:$0xf0] }
  0x81   :  { %1670 = vmatpush.bf16.msra.mxu1 %v2442_v36  ;;  %v2997_v36 = vld [vmem:[%s4548_s1 + $0x63c] sm:$0xf]  ;;  %v2514_v40 = vor.u32 %v2949_v33, %v2511_v34  ;;  %v2614_v33 = vor.u32 %v2977_v26, %v2613_v25  ;;  %v2875_v34 = vld [vmem:[%s4548_s1 + $0x264] sm:$0xf0]  ;;  %v2301_v26 = vld [vmem:[%s4548_s1 + $0x310] sm:$0xf] }
  0x82   :  { %1684 = vmatpush.bf16.msra.mxu2 %v2634_v37  ;;  %v2130_v37 = vor.u32 %v2853_v29, %v2127_v30  ;;  %v2013_v30 = vld [vmem:[%s4548_s1 + $0xd0] sm:$0xf]  ;;  %v2206_v41 = vor.u32 %v2875_v34, %v2205_v32  ;;  %v2851_v25 = vld [vmem:[%s4548_s1 + $0x1a4] sm:$0xf0] }
  0x83   :  { %1648 = vmatpush.bf16.msrb.mxu3 %v1914_v54  ;;  %v2941_v54 = vld [vmem:[%s4548_s1 + $0x474] sm:$0xf0]  ;;  %v2014_v39 = vor.u32 %v2827_v31, %v2013_v30  ;;  %v2087_v30 = vld [vmem:[%s4548_s1 + $0x178] sm:$0xf0]  ;;  %v2890_v31 = vld [vmem:[%s4548_s1 + $0x2e4] sm:$0xf] }
  0x84   :  { %1657 = vmatpush.bf16.msra.mxu0 %v2226_v47  ;;  %v2085_v47 = vld [vmem:[%s4548_s1 + $0x160] sm:$0xf]  ;;  %v2493_v34 = vld [vmem:[%s4548_s1 + $0x490] sm:$0xf] }
  0x85   :  { %1671 = vmatpush.bf16.msra.mxu1 %v2418_v49  ;;  %v2706_v49 = vor.u32 %v2997_v36, %v2703_v38  ;;  %v2086_v63 = vor.u32 %v2845_v48, %v2085_v47  ;;  %v2923_v36 = vld [vmem:[%s4548_s1 + $0x3e4] sm:$0xf0]  ;;  %v2373_v47 = vld [vmem:[%s4548_s1 + $0x3a0] sm:$0xf]  ;;  %v2917_v48 = vld [vmem:[%s4548_s1 + $0x3b4] sm:$0xf0] }
  0x86   :  { %1685 = vmatpush.bf16.msra.mxu2 %v2610_v50  ;;  %1649 = vmatmul.bf16.vlgmr.msrb.gmra.mxu3 %v3293_v57  ;;  %v2277_v50 = vld [vmem:[%s4548_s1 + $0x2e0] sm:$0xf]  ;;  %v2971_v38 = vld [vmem:[%s4548_s1 + $0x564] sm:$0xf0] }
  0x87   :  { %1699 = vmatpush.bf16.msra.mxu3 %v1423_v59  ;;  %v2490_v59 = vor.u32 %v2943_v45, %v2487_v46  ;;  %v2869_v46 = vld [vmem:[%s4548_s1 + $0x234] sm:$0xf0] }
  0x88   :  { %1658 = vmatpush.bf16.msra.mxu0 %v2202_v61  ;;  %v2661_v61 = vld [vmem:[%s4548_s1 + $0x5e0] sm:$0xf] }
  0x89   :  { %1672 = vmatpush.bf16.msra.mxu1 %v2394_v0  ;;  %v2278_v0 = vor.u32 %v2893_v51, %v2277_v50  ;;  %v2662_v6 = vor.u32 %v2989_v62, %v2661_v61  ;;  %v2965_v50 = vld [vmem:[%s4548_s1 + $0x534] sm:$0xf0]  ;;  %v2349_v61 = vld [vmem:[%s4548_s1 + $0x370] sm:$0xf]  ;;  %v2911_v62 = vld [vmem:[%s4548_s1 + $0x384] sm:$0xf0] }
  0x8a   :  { %1686 = vmatpush.bf16.msra.mxu2 %v2586_v1  ;;  %v2470_v1 = vor.u32 %v2941_v54, %v2469_v52  ;;  %v2182_v52 = vor.u32 %v2869_v46, %v2181_v44  ;;  %v1965_v54 = vld [vmem:[%s4548_s1 + $0x70] sm:$0xf]  ;;  %v2836_v46 = vld [vmem:[%s4548_s1 + $0x134] sm:$0xf] }
  0x8b   :  { %1700 = vmatpush.bf16.msra.mxu3 %v2778_v9  ;;  %v2445_v9 = vld [vmem:[%s4548_s1 + $0x430] sm:$0xf] }
  0x8c   :  { %1659 = vmatpush.bf16.msra.mxu0 %v2178_v11  ;;  %v2935_v11 = vld [vmem:[%s4548_s1 + $0x444] sm:$0xf0] }
  0x8d   :  { %1673 = vmatpush.bf16.msra.mxu1 %v2370_v15  ;;  %v2062_v15 = vor.u32 %v2839_v10, %v2061_v3  ;;  %v2446_v17 = vor.u32 %v2935_v11, %v2445_v9  ;;  %v2350_v10 = vor.u32 %v2911_v62, %v2349_v61  ;;  %v2857_v11 = vld [vmem:[%s4548_s1 + $0x1d4] sm:$0xf0]  ;;  %v2830_v62 = vld [vmem:[%s4548_s1 + $0x104] sm:$0xf] }
  0x8e   :  { %1687 = vmatpush.bf16.msra.mxu2 %v2562_v16  ;;  %v2254_v16 = vor.u32 %v2887_v8, %v2253_v4  ;;  %v1941_v4 = vld [vmem:[%s4548_s1 + $0x40] sm:$0xf]  ;;  %v3013_v61 = vld [vmem:[%s4548_s1 + $0x6b4] sm:$0xf0] }
  0x8f   :  { %1701 = vmatpush.bf16.msra.mxu3 %v2754_v23  ;;  %v2421_v23 = vld [vmem:[%s4548_s1 + $0x400] sm:$0xf] }
  0x90   :  { %1660 = vmatpush.bf16.msra.mxu0 %v2154_v24  ;;  %v2929_v24 = vld [vmem:[%s4548_s1 + $0x414] sm:$0xf0]  ;;  %v2133_v8 = vld [vmem:[%s4548_s1 + $0x1c0] sm:$0xf] }
  0x91   :  { %1674 = vmatpush.bf16.msra.mxu1 %v2346_v27  ;;  %v2038_v27 = vor.u32 %v2833_v19, %v2037_v18  ;;  %v2422_v29 = vor.u32 %v2929_v24, %v2421_v23  ;;  %v2134_v19 = vor.u32 %v2857_v11, %v2133_v8  ;;  %v2109_v23 = vld [vmem:[%s4548_s1 + $0x190] sm:$0xf] }
  0x92   :  { %1688 = vmatpush.bf16.msra.mxu2 %v2538_v28  ;;  %v2230_v28 = vor.u32 %v2881_v22, %v2229_v20  ;;  %v2326_v20 = vor.u32 %v2905_v14, %v2325_v13  ;;  %v2803_v22 = vld [vmem:[%s4548_s1 + $0x24] sm:$0xf0]  ;;  %v2824_v14 = vld [vmem:[%s4548_s1 + $0xd4] sm:$0xf] }
  0x93   :  { %1702 = vmatpush.bf16.msra.mxu3 %v2730_v35  ;;  %v2397_v35 = vld [vmem:[%s4548_s1 + $0x3d0] sm:$0xf]  ;;  %v3007_v13 = vld [vmem:[%s4548_s1 + $0x684] sm:$0xf0] }
  0x94   :  { %1661 = vmatpush.bf16.msra.mxu0 %v2130_v37  ;;  %v2589_v37 = vld [vmem:[%s4548_s1 + $0x550] sm:$0xf] }
  0x95   :  { %1675 = vmatpush.bf16.msra.mxu1 %v2322_v42  ;;  %v2398_v42 = vor.u32 %v2923_v36, %v2397_v35  ;;  %v2590_v45 = vor.u32 %v2971_v38, %v2589_v37  ;;  %v2947_v35 = vld [vmem:[%s4548_s1 + $0x4a4] sm:$0xf0]  ;;  %v2110_v36 = vor.u32 %v2851_v25, %v2109_v23  ;;  %v2938_v38 = vld [vmem:[%s4548_s1 + $0x464] sm:$0xf]  ;;  %v2709_v23 = vld [vmem:[%s4548_s1 + $0x640] sm:$0xf] }
  0x96   :  { %1689 = vmatpush.bf16.msra.mxu2 %v2514_v40  ;;  %v1989_v40 = vld [vmem:[%s4548_s1 + $0xa0] sm:$0xf]  ;;  %v2494_v44 = vor.u32 %v2947_v35, %v2493_v34  ;;  %v2914_v34 = vld [vmem:[%s4548_s1 + $0x3a4] sm:$0xf]  ;;  %v2375_v35 = vld [vmem:[%s4548_s1 + $0x3b8] sm:$0xf0] }
  0x97   :  { %1703 = vmatpush.bf16.msra.mxu3 %v2706_v49  ;;  %v2565_v49 = vld [vmem:[%s4548_s1 + $0x520] sm:$0xf]  ;;  %v1990_v51 = vor.u32 %v2821_v43, %v1989_v40  ;;  %v2781_v40 = vld [vmem:[%s4548_s1 + $0x6d0] sm:$0xf] }
  0x98   :  { %1662 = vmatpush.bf16.msra.mxu0 %v2106_v53  ;;  %v2374_v53 = vor.u32 %v2917_v48, %v2373_v47  ;;  %v2063_v47 = vld [vmem:[%s4548_s1 + $0x148] sm:$0xf0] }
  0x99   :  { %1676 = vmatpush.bf16.msra.mxu1 %v2298_v58  ;;  %v2566_v58 = vor.u32 %v2965_v50, %v2565_v49  ;;  %v2884_v49 = vld [vmem:[%s4548_s1 + $0x2b4] sm:$0xf]  ;;  %v2255_v50 = vld [vmem:[%s4548_s1 + $0x2c8] sm:$0xf0] }
  0x9a   :  { %1690 = vmatpush.bf16.msra.mxu2 %v2490_v59  ;;  %v2863_v59 = vld [vmem:[%s4548_s1 + $0x204] sm:$0xf0] }
  0x9b   :  { %1704 = vmatpush.bf16.msra.mxu3 %v2682_v2  ;;  %1663 = vmatmul.bf16.vlgmr.msra.gmra.mxu0 %v3333_v12  ;;  %v1966_v2 = vor.u32 %v2815_v55, %v1965_v54  ;;  %v2158_v3 = vor.u32 %v2863_v59, %v2157_v56  ;;  %v2066_v56 = vor.u32 %v2836_v46, %v2063_v47  ;;  %v2159_v46 = vld [vmem:[%s4548_s1 + $0x208] sm:$0xf0]  ;;  %v2986_v47 = vld [vmem:[%s4548_s1 + $0x5e4] sm:$0xf] }
  0x9c   :  { %1711 = vmatpush.bf16.msrb.mxu0 %v2086_v63  ;;  %1677 = vmatmul.bf16.vlgmr.msra.gmra.mxu1 %v3301_v60  ;;  %v2541_v63 = vld [vmem:[%s4548_s1 + $0x4f0] sm:$0xf]  ;;  %v2258_v59 = vor.u32 %v2884_v49, %v2255_v50  ;;  %v2908_v49 = vld [vmem:[%s4548_s1 + $0x374] sm:$0xf]  ;;  %v2351_v50 = vld [vmem:[%s4548_s1 + $0x388] sm:$0xf0] }
  0x9d   :  { %1725 = vmatpush.bf16.msrb.mxu1 %v2278_v0  ;;  %1691 = vmatmul.bf16.vlgmr.msra.gmra.mxu2 %v3318_v5  ;;  %v2959_v0 = vld [vmem:[%s4548_s1 + $0x504] sm:$0xf0] }
  0x9e   :  { %1739 = vmatpush.bf16.msrb.mxu2 %v2470_v1  ;;  %2790 = vmatmul.msk.bf16.vlgmr.msra.gmra.mxu3 %vm1408_vm1, %v3453_v7  ;;  %v4166_v1 = vld [vmem:[%s4548_s1 + $0x700] sm:$0xff]  ;;  %v2542_v9 = vor.u32 %v2959_v0, %v2541_v63  ;;  %v2039_v63 = vld [vmem:[%s4548_s1 + $0x118] sm:$0xf0] }
  0x9f   :  { %1753 = vmatpush.bf16.msrb.mxu3 %v2662_v6  ;;  %v2809_v6 = vld [vmem:[%s4548_s1 + $0x54] sm:$0xf0]  ;;  %v2042_v8 = vor.u32 %v2830_v62, %v2039_v63  ;;  %v4387_v62 = vpop.permute.xlu0 %250  ;;  %v2354_v63 = vor.u32 %v2908_v49, %v2351_v50  ;;  %v2567_v49 = vld [vmem:[%s4548_s1 + $0x538] sm:$0xf0] }
  0xa0   :  { %1712 = vmatpush.bf16.msrb.mxu0 %v2062_v15  ;;  %v956_v15 = vunpack.c.l.b16 %v4166_v1  ;;  %v1942_v18 = vor.u32 %v2809_v6, %v1941_v4  ;;  %v2423_v4 = vld [vmem:[%s4548_s1 + $0x418] sm:$0xf0] }
  0xa1   :  { %1726 = vmatpush.bf16.msrb.mxu1 %v2254_v16  ;;  %v2517_v16 = vld [vmem:[%s4548_s1 + $0x4c0] sm:$0xf]  ;;  %v4262_v54 = vpop.f32.mrf.mxu1 }
  0xa2   :  { %1740 = vmatpush.bf16.msrb.mxu2 %v2446_v17  ;;  %v2953_v17 = vld [vmem:[%s4548_s1 + $0x4d4] sm:$0xf0] }
  0xa3   :  { %1754 = vmatpush.bf16.msrb.mxu3 %v2638_v21  ;;  %v1917_v21 = vld [vmem:[%s4548_s1 + $0x10] sm:$0xf]  ;;  %v2518_v24 = vor.u32 %v2953_v17, %v2517_v16  ;;  %v2872_v17 = vld [vmem:[%s4548_s1 + $0x254] sm:$0xf] }
  0xa4   :  { %1713 = vmatpush.bf16.msrb.mxu0 %v2038_v27  ;;  %v2899_v27 = vld [vmem:[%s4548_s1 + $0x324] sm:$0xf0]  ;;  %v1918_v32 = vor.u32 %v2803_v22, %v1917_v21 }
  0xa5   :  { %1727 = vmatpush.bf16.msrb.mxu1 %v2230_v28  ;;  %v1184_v28 = vpack.c.b16 %v956_v15, %v956_v15  ;;  %v2302_v37 = vor.u32 %v2899_v27, %v2301_v26  ;;  %v2015_v15 = vld [vmem:[%s4548_s1 + $0xe8] sm:$0xf0]  ;;  %v3001_v27 = vld [vmem:[%s4548_s1 + $0x654] sm:$0xf0] }
  0xa6   :  { %1741 = vmatpush.bf16.msrb.mxu2 %v2422_v29  ;;  %v2842_v29 = vld [vmem:[%s4548_s1 + $0x164] sm:$0xf]  ;;  %v2018_v22 = vor.u32 %v2824_v14, %v2015_v15 }
  0xa7   :  { %1755 = vmatpush.bf16.msrb.mxu3 %v2614_v33  ;;  %v2279_v33 = vld [vmem:[%s4548_s1 + $0x2f8] sm:$0xf0] }
  0xa8   :  { %1714 = vmatpush.bf16.msrb.mxu0 %v2014_v39  ;;  %v2471_v39 = vld [vmem:[%s4548_s1 + $0x478] sm:$0xf0]  ;;  %v2282_v43 = vor.u32 %v2890_v31, %v2279_v33  ;;  %v4321_v25 = vpop.f32.mrf.mxu2 }
  0xa9   :  { %1728 = vmatpush.bf16.msrb.mxu1 %v2206_v41  ;;  %v1426_v41 = vsel %vm1412_vm0, %v1184_v28, 0  ;;  %v2474_v48 = vor.u32 %v2938_v38, %v2471_v39  ;;  %v2818_v28 = vld [vmem:[%s4548_s1 + $0xa4] sm:$0xf]  ;;  %v2183_v33 = vld [vmem:[%s4548_s1 + $0x238] sm:$0xf0] }
  0xaa   :  { %1742 = vmatpush.bf16.msrb.mxu2 %v2398_v42  ;;  %v2090_v42 = vor.u32 %v2842_v29, %v2087_v30  ;;  %v1991_v29 = vld [vmem:[%s4548_s1 + $0xb8] sm:$0xf0]  ;;  %v4332_v30 = vpop.f32.mrf.mxu1  ;;  %v2685_v38 = vld [vmem:[%s4548_s1 + $0x610] sm:$0xf]  ;;  %v2995_v39 = vld [vmem:[%s4548_s1 + $0x624] sm:$0xf0] }
  0xab   :  { %1756 = vmatpush.bf16.msrb.mxu3 %v2590_v45  ;;  %v3019_v45 = vld [vmem:[%s4548_s1 + $0x6e4] sm:$0xf0] }
  0xac   :  { %1715 = vmatpush.bf16.msrb.mxu0 %v1990_v51  ;;  %v4254_v51 = vpop.f32.mrf.mxu0  ;;  %v2782_v55 = vor.u32 %v3019_v45, %v2781_v40  ;;  %v2812_v40 = vld [vmem:[%s4548_s1 + $0x74] sm:$0xf]  ;;  %v2378_v45 = vor.u32 %v2914_v34, %v2375_v35 }
  0xad   :  { %1729 = vmatpush.bf16.msrb.mxu1 %v2182_v52  ;;  %v2932_v52 = vld [vmem:[%s4548_s1 + $0x434] sm:$0xf] }
  0xae   :  { %1743 = vmatpush.bf16.msrb.mxu2 %v2374_v53  ;;  %v2447_v53 = vld [vmem:[%s4548_s1 + $0x448] sm:$0xf0]  ;;  %v2968_v35 = vld [vmem:[%s4548_s1 + $0x554] sm:$0xf] }
  0xaf   :  { %1757 = vmatpush.bf16.msrb.mxu3 %v2566_v58  ;;  %v2757_v58 = vld [vmem:[%s4548_s1 + $0x6a0] sm:$0xf]  ;;  %v2450_v0 = vor.u32 %v2932_v52, %v2447_v53  ;;  %v2686_v52 = vor.u32 %v2995_v39, %v2685_v38  ;;  %v3016_v38 = vld [vmem:[%s4548_s1 + $0x6d4] sm:$0xf] }
  0xb0   :  { %1716 = vmatpush.bf16.msrb.mxu0 %v1966_v2  ;;  %v2878_v2 = vld [vmem:[%s4548_s1 + $0x284] sm:$0xf]  ;;  %v2758_v6 = vor.u32 %v3013_v61, %v2757_v58 }
  0xb1   :  { %1730 = vmatpush.bf16.msrb.mxu1 %v2158_v3  ;;  %v2231_v3 = vld [vmem:[%s4548_s1 + $0x298] sm:$0xf0]  ;;  %v2806_v58 = vld [vmem:[%s4548_s1 + $0x44] sm:$0xf] }
  0xb2   :  { %1744 = vmatpush.bf16.msrb.mxu2 %v2350_v10  ;;  %v2926_v10 = vld [vmem:[%s4548_s1 + $0x404] sm:$0xf]  ;;  %v2234_v11 = vor.u32 %v2878_v2, %v2231_v3  ;;  %v2980_v2 = vld [vmem:[%s4548_s1 + $0x5b4] sm:$0xf]  ;;  %v2639_v3 = vld [vmem:[%s4548_s1 + $0x5c8] sm:$0xf0] }
  0xb3   :  { %1758 = vmatpush.bf16.msrb.mxu3 %v2542_v9  ;;  %v2733_v9 = vld [vmem:[%s4548_s1 + $0x670] sm:$0xf]  ;;  %v2426_v16 = vor.u32 %v2926_v10, %v2423_v4  ;;  %v2854_v61 = vld [vmem:[%s4548_s1 + $0x1c4] sm:$0xf]  ;;  %v2642_v15 = vor.u32 %v2980_v2, %v2639_v3 }
  0xb4   :  { %1717 = vmatpush.bf16.msrb.mxu0 %v1942_v18  ;;  %v2207_v18 = vld [vmem:[%s4548_s1 + $0x268] sm:$0xf0]  ;;  %v2734_v21 = vor.u32 %v3007_v13, %v2733_v9  ;;  %v2327_v9 = vld [vmem:[%s4548_s1 + $0x358] sm:$0xf0] }
  0xb5   :  { %1731 = vmatpush.bf16.msrb.mxu1 %v2134_v19  ;;  %v2920_v19 = vld [vmem:[%s4548_s1 + $0x3d4] sm:$0xf]  ;;  %v2210_v26 = vor.u32 %v2872_v17, %v2207_v18  ;;  %v1919_v17 = vld [vmem:[%s4548_s1 + $0x28] sm:$0xf0] }
  0xb6   :  { %1745 = vmatpush.bf16.msrb.mxu2 %v2326_v20  ;;  %v2399_v20 = vld [vmem:[%s4548_s1 + $0x3e8] sm:$0xf0]  ;;  %v2848_v18 = vld [vmem:[%s4548_s1 + $0x194] sm:$0xf] }
  0xb7   :  { %1759 = vmatpush.bf16.msrb.mxu3 %v2518_v24  ;;  %v4319_v24 = vpop.f32.mrf.mxu0  ;;  %v2402_v31 = vor.u32 %v2920_v19, %v2399_v20  ;;  %v2111_v20 = vld [vmem:[%s4548_s1 + $0x1a8] sm:$0xf0] }
  0xb8   :  { %1718 = vmatpush.bf16.msrb.mxu0 %v1918_v32  ;;  %v2866_v32 = vld [vmem:[%s4548_s1 + $0x224] sm:$0xf] }
  0xb9   :  { %1732 = vmatpush.bf16.msrb.mxu1 %v2110_v36  ;;  %v2710_v36 = vor.u32 %v3001_v27, %v2709_v23  ;;  %v2303_v27 = vld [vmem:[%s4548_s1 + $0x328] sm:$0xf0] }
  0xba   :  { %1746 = vmatpush.bf16.msrb.mxu2 %v2302_v37  ;;  %v1994_v37 = vor.u32 %v2818_v28, %v1991_v29  ;;  %v2114_v29 = vor.u32 %v2848_v18, %v2111_v20 }
  0xbb   :  { %1760 = vmatpush.bf16.msrb.mxu3 %v2494_v44  ;;  %1719 = vmatmul.bf16.vlgmr.msrb.gmra.mxu0 %v3293_v57  ;;  %v2860_v44 = vld [vmem:[%s4548_s1 + $0x1f4] sm:$0xf] }
  0xbc   :  { %1769 = vmatpush.bf16.msra.mxu0 %v1426_v41  ;;  %1733 = vmatmul.bf16.vlgmr.msrb.gmra.mxu1 %v3333_v12  ;;  %v4352_v41 = vpop.f32.mrf.mxu3 }
  0xbd   :  { %1781 = vmatpush.bf16.msra.mxu1 %v2090_v42  ;;  %1747 = vmatmul.bf16.vlgmr.msrb.gmra.mxu2 %v3301_v60  ;;  %v2186_v42 = vor.u32 %v2866_v32, %v2183_v33 }
  0xbe   :  { %1795 = vmatpush.bf16.msra.mxu2 %v2282_v43  ;;  %1761 = vmatmul.bf16.vlgmr.msrb.gmra.mxu3 %v3318_v5  ;;  %v1967_v43 = vld [vmem:[%s4548_s1 + $0x88] sm:$0xf0] }
  0xbf   :  { %1809 = vmatpush.bf16.msra.mxu3 %v2474_v48  ;;  %v2663_v48 = vld [vmem:[%s4548_s1 + $0x5f8] sm:$0xf0]  ;;  %v1970_v53 = vor.u32 %v2812_v40, %v1967_v43  ;;  %v4398_v4 = vpop.f32.mrf.mxu0  ;;  %v4454_v40 = vpop.permute.xlu0 %255 }
  0xc0   :  { %1770 = vmatpush.bf16.msra.mxu0 %v2782_v55  ;;  %v2162_v55 = vor.u32 %v2860_v44, %v2159_v46 }
  0xc1   :  { %1782 = vmatpush.bf16.msra.mxu1 %v2066_v56  ;;  %v2666_v56 = vor.u32 %v2986_v47, %v2663_v48  ;;  %v1510_v10 = vpop.f32.mrf.mxu1  ;;  %v2962_v48 = vld [vmem:[%s4548_s1 + $0x524] sm:$0xf] }
  0xc2   :  { %1796 = vmatpush.bf16.msra.mxu2 %v2258_v59  ;;  %v1943_v59 = vld [vmem:[%s4548_s1 + $0x58] sm:$0xf0]  ;;  %v1511_v33 = vadd.f32 %v1510_v10, %v4387_v62 }
  0xc3   :  { %1810 = vmatpush.bf16.msra.mxu3 %v2450_v0  ;;  %v2135_v0 = vld [vmem:[%s4548_s1 + $0x1d8] sm:$0xf0]  ;;  %v1946_v13 = vor.u32 %v2806_v58, %v1943_v59  ;;  %v2956_v59 = vld [vmem:[%s4548_s1 + $0x4f4] sm:$0xf] }
  0xc4   :  { %1771 = vmatpush.bf16.msra.mxu0 %v2758_v6  ;;  %v4400_v6 = vpop.f32.mrf.mxu2  ;;  %v2138_v14 = vor.u32 %v2854_v61, %v2135_v0  ;;  %v4429_v23 = vpop.f32.mrf.mxu3  ;;  %v2543_v61 = vld [vmem:[%s4548_s1 + $0x508] sm:$0xf0] }
  0xc5   :  { %1783 = vmatpush.bf16.msra.mxu1 %v2042_v8  ;;  %v2902_v8 = vld [vmem:[%s4548_s1 + $0x344] sm:$0xf]  ;;  %v2546_v0 = vor.u32 %v2956_v59, %v2543_v61 }
  0xc6   :  { %1797 = vmatpush.bf16.msra.mxu2 %v2234_v11  ;;  %v957_v11 = vunpack.c.h.b16 %v4166_v1  ;;  %v1441_v1 = vadd.f32 %v4254_v51, %v4387_v62  ;;  %v2330_v19 = vor.u32 %v2902_v8, %v2327_v9 }
  0xc7   :  { %1811 = vmatpush.bf16.msra.mxu3 %v2426_v16  ;;  %v2800_v16 = vld [vmem:[%s4548_s1 + $0x14] sm:$0xf]  ;;  %v4456_v43 = vpop.f32.mrf.mxu0 }
  0xc8   :  { %1772 = vmatpush.bf16.msra.mxu0 %v2734_v21  ;;  %v2974_v21 = vld [vmem:[%s4548_s1 + $0x584] sm:$0xf]  ;;  %v1185_v51 = vpack.c.b16 %v957_v11, %v957_v11  ;;  %v1922_v28 = vor.u32 %v2800_v16, %v1919_v17  ;;  %v1455_v32 = vadd.f32 %v4262_v54, %v1441_v1  ;;  %v2783_v54 = vld [vmem:[%s4548_s1 + $0x6e8] sm:$0xf0] }
  0xc9   :  { %1784 = vmatpush.bf16.msra.mxu1 %v2018_v22  ;;  %v2615_v22 = vld [vmem:[%s4548_s1 + $0x598] sm:$0xf0]  ;;  %v2786_v46 = vor.u32 %v3016_v38, %v2783_v54  ;;  %v2950_v11 = vld [vmem:[%s4548_s1 + $0x4c4] sm:$0xf] }
  0xca   :  { %1798 = vmatpush.bf16.msra.mxu2 %v2210_v26  ;;  %v2896_v26 = vld [vmem:[%s4548_s1 + $0x314] sm:$0xf] }
  0xcb   :  { %1812 = vmatpush.bf16.msra.mxu3 %v2402_v31  ;;  %v2618_v31 = vor.u32 %v2974_v21, %v2615_v22  ;;  %v2306_v34 = vor.u32 %v2896_v26, %v2303_v27  ;;  %v2944_v21 = vld [vmem:[%s4548_s1 + $0x494] sm:$0xf]  ;;  %v2495_v22 = vld [vmem:[%s4548_s1 + $0x4a8] sm:$0xf0] }
  0xcc   :  { %1773 = vmatpush.bf16.msra.mxu0 %v2710_v36  ;;  %v2591_v36 = vld [vmem:[%s4548_s1 + $0x568] sm:$0xf0]  ;;  %v1524_v39 = vpop.f32.mrf.mxu2  ;;  %v1538_v50 = vpop.f32.mrf.mxu3 }
  0xcd   :  { %1785 = vmatpush.bf16.msra.mxu1 %v1994_v37  ;;  %v1429_v37 = vsel %vm1412_vm0, %v1185_v51, 0  ;;  %v2594_v44 = vor.u32 %v2968_v35, %v2591_v36  ;;  %v1525_v47 = vadd.f32 %v1524_v39, %v1511_v33  ;;  %v2687_v51 = vld [vmem:[%s4548_s1 + $0x628] sm:$0xf0] }
  0xce   :  { %1799 = vmatpush.bf16.msra.mxu2 %v2186_v42  ;;  %v1512_v42 = vpop.f32.mrf.mxu1 }
  0xcf   :  { %1813 = vmatpush.bf16.msra.mxu3 %v2378_v45  ;;  %v1469_v45 = vadd.f32 %v4321_v25, %v1455_v32  ;;  %v2759_v25 = vld [vmem:[%s4548_s1 + $0x6b8] sm:$0xf0] }
  0xd0   :  { %1774 = vmatpush.bf16.msra.mxu0 %v2686_v52  ;;  %v3010_v52 = vld [vmem:[%s4548_s1 + $0x6a4] sm:$0xf] }
  0xd1   :  { %1786 = vmatpush.bf16.msra.mxu1 %v1970_v53  ;;  %v1443_v53 = vadd.f32 %v4319_v24, %v4454_v40  ;;  %v2762_v58 = vor.u32 %v3010_v52, %v2759_v25 }
  0xd2   :  { %1800 = vmatpush.bf16.msra.mxu2 %v2162_v55  ;;  %v2570_v55 = vor.u32 %v2962_v48, %v2567_v49 }
  0xd3   :  { %1814 = vmatpush.bf16.msra.mxu3 %v2354_v63  ;;  %2791 = vmatmul.msk.bf16.vlgmr.msra.gmra.mxu0 %vm1408_vm1, %v3453_v7  ;;  %v1457_v24 = vadd.f32 %v4332_v30, %v1443_v53  ;;  %v2519_v30 = vld [vmem:[%s4548_s1 + $0x4d8] sm:$0xf0] }
  0xd4   :  { %1823 = vmatpush.bf16.msrb.mxu0 %v2666_v56  ;;  %v1539_v56 = vadd.f32 %v1538_v50, %v1525_v47  ;;  %v1526_v2 = vpop.f32.mrf.mxu2  ;;  %v1540_v17 = vpop.f32.mrf.mxu3  ;;  %v2522_v18 = vor.u32 %v2950_v11, %v2519_v30 }
  0xd5   :  { %1787 = vmatpush.bf16.msra.mxu1 %v1946_v13  ;;  %v2998_v13 = vld [vmem:[%s4548_s1 + $0x644] sm:$0xf] }
  0xd6   :  { %1801 = vmatpush.bf16.msra.mxu2 %v2138_v14  ;;  %v1471_v14 = vadd.f32 %v4400_v6, %v1457_v24  ;;  %v2992_v6 = vld [vmem:[%s4548_s1 + $0x614] sm:$0xf] }
  0xd7   :  { %1815 = vmatpush.bf16.msra.mxu3 %v2330_v19 }
  0xd8   :  { %1824 = vmatpush.bf16.msrb.mxu0 %v2642_v15  ;;  %v1552_v63 = vpop.f32.mrf.mxu0  ;;  %v1485_v26 = vadd.f32 %v4429_v23, %v1471_v14 }
  0xd9   :  { %1788 = vmatpush.bf16.msra.mxu1 %v1922_v28  ;;  %v1553_v10 = vadd.f32 %v1552_v63, %v1539_v56  ;;  %v1566_v9 = vpop.f32.mrf.mxu1 }
  0xda   :  { %1802 = vmatpush.bf16.msra.mxu2 %v2114_v29  ;;  %v1499_v32 = vadd.f32 %v4456_v43, %v1485_v26 }
  0xdb   :  { %1816 = vmatpush.bf16.msra.mxu3 %v2306_v34  ;;  %v1567_v16 = vadd.f32 %v1566_v9, %v1553_v10  ;;  %v2690_v34 = vor.u32 %v2992_v6, %v2687_v51 }
  0xdc   :  { %1825 = vmatpush.bf16.msrb.mxu0 %v2618_v31  ;;  %1789 = vmatmul.bf16.vlgmr.msra.gmra.mxu1 %v3293_v57  ;;  %v1483_v57 = vadd.f32 %v4352_v41, %v1469_v45  ;;  %v1513_v41 = vadd.f32 %v1512_v42, %v4454_v40  ;;  %v2498_v31 = vor.u32 %v2944_v21, %v2495_v22 }
  0xdd   :  { %1839 = vmatpush.bf16.msrb.mxu1 %v1429_v37  ;;  %1803 = vmatmul.bf16.vlgmr.msra.gmra.mxu2 %v3333_v12  ;;  %v3004_v12 = vld [vmem:[%s4548_s1 + $0x674] sm:$0xf]  ;;  %v1852_v19 = vmax.f32 %v1567_v16, 0.0  ;;  %v1857_v37 = vmax.f32 %v1499_v32, 0.0 }
  0xde   :  { %1817 = vmatmul.bf16.vlgmr.msra.gmra.mxu3 %v3301_v60  ;;  %v2735_v60 = vld [vmem:[%s4548_s1 + $0x688] sm:$0xf0]  ;;  %v1497_v3 = vadd.f32 %v4398_v4, %v1483_v57  ;;  %v2711_v4 = vld [vmem:[%s4548_s1 + $0x658] sm:$0xf0]  ;;  %v1527_v15 = vadd.f32 %v1526_v2, %v1513_v41 }
  0xdf   :  { %v2738_v8 = vor.u32 %v3004_v12, %v2735_v60  ;;  %v2714_v20 = vor.u32 %v2998_v13, %v2711_v4 }
  0xe0   :  { %1826 = vmatpush.bf16.msrb.mxu0 %v2594_v44  ;;  %v1851_v1 = vmax.f32 %v1497_v3, 0.0  ;;  %v1541_v28 = vadd.f32 %v1540_v17, %v1527_v15  ;;  %v1554_v29 = vpop.f32.mrf.mxu0 }
  0xe1   :  { %1840 = vmatpush.bf16.msrb.mxu1 %v2786_v46  ;;  %v1568_v35 = vpop.f32.mrf.mxu1 }
  0xe2   :  { %v1863_v27 = vpack.c.bf16 %v1852_v19, %v1851_v1  ;;  %v1555_v33 = vadd.f32 %v1554_v29, %v1541_v28 }
  0xe4   :  { %1827 = vmatpush.bf16.msrb.mxu0 %v2570_v55  ;;  %1869 = vst [vmem:[%s4551_s3] sm:$0xff] %v1863_v27  ;;  %v1569_v36 = vadd.f32 %v1568_v35, %v1555_v33 }
  0xe5   :  { %1841 = vmatpush.bf16.msrb.mxu1 %v2762_v58 }
  0xe6   :  { %v1858_v23 = vmax.f32 %v1569_v36, 0.0 }
  0xe8   :  { %1828 = vmatpush.bf16.msrb.mxu0 %v2546_v0  ;;  %v1866_v38 = vpack.c.bf16 %v1858_v23, %v1857_v37  ;;  %v1580_v54 = vpop.f32.mrf.mxu2 }
  0xe9   :  { %1842 = vmatpush.bf16.msrb.mxu1 %v2738_v8  ;;  %v1594_v39 = vpop.f32.mrf.mxu3  ;;  %v1581_v48 = vadd.f32 %v1580_v54, %v4387_v62 }
  0xea   :  { %1872 = vst [vmem:[%s4551_s3 + $0x18] sm:$0xff] %v1866_v38 }
  0xec   :  { %1829 = vmatpush.bf16.msrb.mxu0 %v2522_v18 }
  0xed   :  { %1843 = vmatpush.bf16.msrb.mxu1 %v2714_v20 }
  0xf0   :  { %1830 = vmatpush.bf16.msrb.mxu0 %v2498_v31  ;;  %v1582_v42 = vpop.f32.mrf.mxu2 }
  0xf1   :  { %1844 = vmatpush.bf16.msrb.mxu1 %v2690_v34  ;;  %v1596_v43 = vpop.f32.mrf.mxu3  ;;  %v1583_v53 = vadd.f32 %v1582_v42, %v4454_v40 }
  0xf3   :  { %1831 = vmatmul.bf16.vlgmr.msrb.gmra.mxu0 %v3318_v5  ;;  %v1595_v5 = vadd.f32 %v1594_v39, %v1581_v48  ;;  %v1597_v59 = vadd.f32 %v1596_v43, %v1583_v53 }
  0xf4   :  { %2792 = vmatmul.msk.bf16.vlgmr.msrb.gmra.mxu1 %vm1408_vm1, %v3453_v7 }
  0xf8   :  { %v1608_v44 = vpop.f32.mrf.mxu0 }
  0xf9   :  { %v1622_v45 = vpop.f32.mrf.mxu1  ;;  %v1609_v55 = vadd.f32 %v1608_v44, %v1595_v5 }
  0xfb   :  { %v1623_v61 = vadd.f32 %v1622_v45, %v1609_v55 }
 0x100   :  { %v1636_v46 = vpop.f32.mrf.mxu2  ;;  %v1610_v49 = vpop.f32.mrf.mxu0 }
 0x101   :  { %v1624_v50 = vpop.f32.mrf.mxu1  ;;  %v1637_v41 = vadd.f32 %v1636_v46, %v1623_v61  ;;  %v1611_v63 = vadd.f32 %v1610_v49, %v1597_v59 }
 0x103   :  { %v1853_v11 = vmax.f32 %v1637_v41, 0.0  ;;  %v1625_v30 = vadd.f32 %v1624_v50, %v1611_v63 }
 0x108   :  { %v1638_v7 = vpop.f32.mrf.mxu2 }
 0x109   :  { %v1650_v47 = vpop.f32.mrf.mxu3  ;;  %v1639_v16 = vadd.f32 %v1638_v7, %v1625_v30 }
 0x10a   :  { %v1651_v52 = vadd.f32 %v1650_v47, %v4387_v62 }
 0x10b   :  { %v1859_v19 = vmax.f32 %v1639_v16, 0.0 }
 0x111   :  { %v1652_v25 = vpop.f32.mrf.mxu3 }
 0x112   :  { %v1653_v60 = vadd.f32 %v1652_v25, %v4454_v40 }
 0x118   :  { %v1664_v57 = vpop.f32.mrf.mxu0 }
 0x119   :  { %v1678_v56 = vpop.f32.mrf.mxu1  ;;  %v1665_v58 = vadd.f32 %v1664_v57, %v1651_v52 }
 0x11b   :  { %v1679_v12 = vadd.f32 %v1678_v56, %v1665_v58 }
 0x120   :  { %v1692_v24 = vpop.f32.mrf.mxu2  ;;  %v1666_v10 = vpop.f32.mrf.mxu0 }
 0x121   :  { %v1693_v0 = vadd.f32 %v1692_v24, %v1679_v12  ;;  %v1706_v2 = vpop.f32.mrf.mxu3  ;;  %v1680_v8 = vpop.f32.mrf.mxu1  ;;  %v1667_v9 = vadd.f32 %v1666_v10, %v1653_v60 }
 0x123   :  { %v1707_v3 = vadd.f32 %v1706_v2, %v1693_v0  ;;  %v1681_v4 = vadd.f32 %v1680_v8, %v1667_v9 }
 0x125   :  { %v1854_v13 = vmax.f32 %v1707_v3, 0.0 }
 0x127   :  { %v1864_v14 = vpack.c.bf16 %v1854_v13, %v1853_v11 }
 0x128   :  { %v1694_v15 = vpop.f32.mrf.mxu2 }
 0x129   :  { %1870 = vst [vmem:[%s4551_s3 + $0x8] sm:$0xff] %v1864_v14  ;;  %v1695_v17 = vadd.f32 %v1694_v15, %v1681_v4  ;;  %v1708_v18 = vpop.f32.mrf.mxu3 }
 0x12b   :  { %v1709_v1 = vadd.f32 %v1708_v18, %v1695_v17 }
 0x12d   :  { %v1860_v20 = vmax.f32 %v1709_v1, 0.0 }
 0x12f   :  { %v1867_v21 = vpack.c.bf16 %v1860_v20, %v1859_v19 }
 0x131   :  { %1873 = vst [vmem:[%s4551_s3 + $0x20] sm:$0xff] %v1867_v21 }
 0x138   :  { %v1720_v22 = vpop.f32.mrf.mxu0 }
 0x139   :  { %v1734_v6 = vpop.f32.mrf.mxu1  ;;  %v1721_v33 = vadd.f32 %v1720_v22, %v4387_v62 }
 0x13b   :  { %v1735_v35 = vadd.f32 %v1734_v6, %v1721_v33 }
 0x140   :  { %v1722_v51 = vpop.f32.mrf.mxu0  ;;  %v1748_v26 = vpop.f32.mrf.mxu2 }
 0x141   :  { %v1736_v27 = vpop.f32.mrf.mxu1  ;;  %v1762_v28 = vpop.f32.mrf.mxu3  ;;  %v1749_v38 = vadd.f32 %v1748_v26, %v1735_v35  ;;  %v1723_v42 = vadd.f32 %v1722_v51, %v4454_v40 }
 0x143   :  { %v1763_v44 = vadd.f32 %v1762_v28, %v1749_v38  ;;  %v1737_v45 = vadd.f32 %v1736_v27, %v1723_v42 }
 0x148   :  { %v1750_v31 = vpop.f32.mrf.mxu2 }
 0x149   :  { %v1764_v34 = vpop.f32.mrf.mxu3  ;;  %v1751_v7 = vadd.f32 %v1750_v31, %v1737_v45 }
 0x14b   :  { %v1765_v56 = vadd.f32 %v1764_v34, %v1751_v7 }
 0x150   :  { %v1776_v29 = vpop.f32.mrf.mxu0 }
 0x151   :  { %v1777_v49 = vadd.f32 %v1776_v29, %v1763_v44 }
 0x153   :  { %v1855_v55 = vmax.f32 %v1777_v49, 0.0 }
 0x158   :  { %v1778_v23 = vpop.f32.mrf.mxu0 }
 0x159   :  { %v1790_v32 = vpop.f32.mrf.mxu1  ;;  %v1779_v12 = vadd.f32 %v1778_v23, %v1765_v56 }
 0x15a   :  { %v1791_v37 = vadd.f32 %v1790_v32, %v4387_v62 }
 0x15b   :  { %v1861_v41 = vmax.f32 %v1779_v12, 0.0 }
 0x160   :  { %v1804_v36 = vpop.f32.mrf.mxu2 }
 0x161   :  { %v1792_v54 = vpop.f32.mrf.mxu1  ;;  %v1818_v39 = vpop.f32.mrf.mxu3  ;;  %v1805_v43 = vadd.f32 %v1804_v36, %v1791_v37 }
 0x162   :  { %v1793_v50 = vadd.f32 %v1792_v54, %v4454_v40 }
 0x163   :  { %v1819_v46 = vadd.f32 %v1818_v39, %v1805_v43 }
 0x168   :  { %v1806_v47 = vpop.f32.mrf.mxu2 }
 0x169   :  { %v1807_v25 = vadd.f32 %v1806_v47, %v1793_v50  ;;  %v1820_v53 = vpop.f32.mrf.mxu3 }
 0x16b   :  { %v1821_v58 = vadd.f32 %v1820_v53, %v1807_v25 }
 0x170   :  { %v1832_v48 = vpop.f32.mrf.mxu0 }
 0x171   :  { %v1833_v5 = vadd.f32 %v1832_v48, %v1819_v46  ;;  %v1846_v52 = vpop.f32.mrf.mxu1 }
 0x173   :  { %v1847_v62 = vadd.f32 %v1846_v52, %v1833_v5 }
 0x175   :  { %v1856_v57 = vmax.f32 %v1847_v62, 0.0 }
 0x177   :  { %v1865_v59 = vpack.c.bf16 %v1856_v57, %v1855_v55 }
 0x178   :  { %v1834_v61 = vpop.f32.mrf.mxu0 }
 0x179   :  { %1871 = vst [vmem:[%s4551_s3 + $0x10] sm:$0xff] %v1865_v59  ;;  %v1835_v60 = vadd.f32 %v1834_v61, %v1821_v58  ;;  %v1848_v24 = vpop.f32.mrf.mxu1 }
 0x17b   :  { %v1849_v40 = vadd.f32 %v1848_v24, %v1835_v60 }
 0x17d   :  { %v1862_v63 = vmax.f32 %v1849_v40, 0.0 }
 0x17f   :  { %v1868_v0 = vpack.c.bf16 %v1862_v63, %v1861_v41 }
 0x181   :  { %1874 = vst [vmem:[%s4551_s3 + $0x28] sm:$0xff] %v1868_v0 }

// kernel: shallower_autoencoder_forward.5
= control target key start
LH: loop header
LB: loop body
LE: loop exit
PB: predicated region body
PF: predicated region fallthrough
CT: control target
= control target key end

     0   :  { %vm192_vm0 = vcmask 1043456   ;;  %vm188_vm1 = vcmask 588800   ;;  %s595_s1 = inlined_call_operand.vmem [shape: bf16[200,256], index: 1, kind: input, shape index: {}]   ;;  %s596_s2 = inlined_call_operand.vmem [shape: f32[16,1], index: 2, kind: input, shape index: {}]   ;;  %s597_s0 = inlined_call_operand.vmem [shape: bf16[16,200], index: 0, kind: input, shape index: {}]   ;;  %s598_s3 = inlined_call_operand.vmem [shape: bf16[16,256], index: 3, kind: output, shape index: {}]  }
   0x1   :  { %v333_v0 = vld [vmem:[%s595_s1 + $0x70] sm:$0xf]  ;;  %v390_v1 = vld [vmem:[%s595_s1 + $0x74] sm:$0xf0]  ;;  %v389_v2 = vld [vmem:[%s595_s1 + $0x74] sm:$0xf] }
   0x2   :  { %v334_v3 = vor.u32 %v390_v1, %v333_v0  ;;  %v335_v4 = vld [vmem:[%s595_s1 + $0x78] sm:$0xf0]  ;;  %v325_v5 = vld [vmem:[%s595_s1 + $0x60] sm:$0xf]  ;;  %v388_v6 = vld [vmem:[%s595_s1 + $0x64] sm:$0xf0] }
   0x3   :  { %v338_v7 = vor.u32 %v389_v2, %v335_v4  ;;  %v387_v8 = vld [vmem:[%s595_s1 + $0x64] sm:$0xf]  ;;  %v327_v9 = vld [vmem:[%s595_s1 + $0x68] sm:$0xf0]  ;;  %v326_v11 = vor.u32 %v388_v6, %v325_v5  ;;  %v317_v15 = vld [vmem:[%s595_s1 + $0x50] sm:$0xf] }
   0x4   :  { %v41_v10 = vld [vmem:[%s595_s1 + $0xc0] sm:$0xff]  ;;  %199 = vmatpush.bf16.msra.mxu0 %v334_v3  ;;  %v330_v14 = vor.u32 %v387_v8, %v327_v9  ;;  %v386_v16 = vld [vmem:[%s595_s1 + $0x54] sm:$0xf0]  ;;  %v385_v17 = vld [vmem:[%s595_s1 + $0x54] sm:$0xf]  ;;  %v401_v2 = vmov 0  }
   0x5   :  { %v137_v12 = vunpack.c.h.b16 %v41_v10  ;;  %v136_v13 = vunpack.c.l.b16 %v41_v10  ;;  %227 = vmatpush.bf16.msra.mxu2 %v338_v7  ;;  %v319_v19 = vld [vmem:[%s595_s1 + $0x58] sm:$0xf0]  ;;  %v397_v20 = vld [vmem:[%s595_s1 + $0xb4] sm:$0xf]  ;;  %v318_v24 = vor.u32 %v386_v16, %v317_v15  ;;  %v309_v25 = vld [vmem:[%s595_s1 + $0x40] sm:$0xf]  ;;  %400 = vset.pattern.permute.xlu0 %v401_v2 }
   0x6   :  { %v367_v21 = vld [vmem:[%s595_s1 + $0xb8] sm:$0xf0]  ;;  %v384_v26 = vld [vmem:[%s595_s1 + $0x44] sm:$0xf0]  ;;  %v322_v28 = vor.u32 %v385_v17, %v319_v19  ;;  %v383_v30 = vld [vmem:[%s595_s1 + $0x44] sm:$0xf] }
   0x7   :  { %v163_v18 = vpack.c.b16 %v137_v12, %v137_v12  ;;  %v162_v22 = vpack.c.b16 %v136_v13, %v136_v13  ;;  %v370_v29 = vor.u32 %v397_v20, %v367_v21  ;;  %v365_v31 = vld [vmem:[%s595_s1 + $0xb0] sm:$0xf]  ;;  %v398_v32 = vld [vmem:[%s595_s1 + $0xb4] sm:$0xf0]  ;;  %v311_v33 = vld [vmem:[%s595_s1 + $0x48] sm:$0xf0]  ;;  %v310_v38 = vor.u32 %v384_v26, %v309_v25 }
   0x8   :  { %200 = vmatpush.bf16.msra.mxu0 %v326_v11  ;;  %v395_v34 = vld [vmem:[%s595_s1 + $0xa4] sm:$0xf]  ;;  %v359_v35 = vld [vmem:[%s595_s1 + $0xa8] sm:$0xf0]  ;;  %v366_v36 = vor.u32 %v398_v32, %v365_v31  ;;  %v357_v37 = vld [vmem:[%s595_s1 + $0xa0] sm:$0xf]  ;;  %v314_v40 = vor.u32 %v383_v30, %v311_v33 }
   0x9   :  { %v197_v23 = vsel %vm192_vm0, %v163_v18, 0  ;;  %v194_v27 = vsel %vm192_vm0, %v162_v22, 0  ;;  %228 = vmatpush.bf16.msra.mxu2 %v330_v14  ;;  %v396_v39 = vld [vmem:[%s595_s1 + $0xa4] sm:$0xf0]  ;;  %v362_v41 = vor.u32 %v395_v34, %v359_v35  ;;  %v301_v42 = vld [vmem:[%s595_s1 + $0x30] sm:$0xf] }
   0xa   :  { %244 = vmatpush.bf16.msra.mxu3 %v197_v23  ;;  %216 = vmatpush.bf16.msra.mxu1 %v194_v27  ;;  %v382_v43 = vld [vmem:[%s595_s1 + $0x34] sm:$0xf0]  ;;  %v381_v44 = vld [vmem:[%s595_s1 + $0x34] sm:$0xf]  ;;  %v303_v45 = vld [vmem:[%s595_s1 + $0x38] sm:$0xf0]  ;;  %v358_v48 = vor.u32 %v396_v39, %v357_v37 }
   0xb   :  { %v393_v46 = vld [vmem:[%s595_s1 + $0x94] sm:$0xf]  ;;  %v351_v47 = vld [vmem:[%s595_s1 + $0x98] sm:$0xf0]  ;;  %v349_v49 = vld [vmem:[%s595_s1 + $0x90] sm:$0xf]  ;;  %v302_v51 = vor.u32 %v382_v43, %v301_v42  ;;  %v306_v52 = vor.u32 %v381_v44, %v303_v45 }
   0xc   :  { %201 = vmatpush.bf16.msra.mxu0 %v318_v24  ;;  %v394_v50 = vld [vmem:[%s595_s1 + $0x94] sm:$0xf0]  ;;  %v354_v53 = vor.u32 %v393_v46, %v351_v47  ;;  %v293_v54 = vld [vmem:[%s595_s1 + $0x20] sm:$0xf]  ;;  %v380_v55 = vld [vmem:[%s595_s1 + $0x24] sm:$0xf0] }
   0xd   :  { %229 = vmatpush.bf16.msra.mxu2 %v322_v28  ;;  %v379_v56 = vld [vmem:[%s595_s1 + $0x24] sm:$0xf]  ;;  %v295_v57 = vld [vmem:[%s595_s1 + $0x28] sm:$0xf0]  ;;  %v350_v60 = vor.u32 %v394_v50, %v349_v49  ;;  %v341_v61 = vld [vmem:[%s595_s1 + $0x80] sm:$0xf]  ;;  %v294_v0 = vor.u32 %v380_v55, %v293_v54 }
   0xe   :  { %245 = vmatpush.bf16.msra.mxu3 %v370_v29  ;;  %217 = vmatpush.bf16.msra.mxu1 %v366_v36  ;;  %v391_v58 = vld [vmem:[%s595_s1 + $0x84] sm:$0xf]  ;;  %v343_v59 = vld [vmem:[%s595_s1 + $0x88] sm:$0xf0]  ;;  %v392_v62 = vld [vmem:[%s595_s1 + $0x84] sm:$0xf0]  ;;  %v298_v3 = vor.u32 %v379_v56, %v295_v57 }
   0xf   :  { %v42_v63 = vld [vmem:[%s596_s2] sm:$0xff]  ;;  %v285_v1 = vld [vmem:[%s595_s1 + $0x10] sm:$0xf]  ;;  %v346_v4 = vor.u32 %v391_v58, %v343_v59  ;;  %v378_v5 = vld [vmem:[%s595_s1 + $0x14] sm:$0xf0]  ;;  %v342_v10 = vor.u32 %v392_v62, %v341_v61 }
  0x10   :  { %202 = vmatpush.bf16.msra.mxu0 %v310_v38  ;;  %v373_v6 = vld [vmem:[%s597_s0 + $0x4] sm:$0xf]  ;;  %v271_v7 = vld [vmem:[%s597_s0 + $0x8] sm:$0xf0]  ;;  %v377_v8 = vld [vmem:[%s595_s1 + $0x14] sm:$0xf]  ;;  %46 = vperm.xlu0 %400, %v42_v63   ;;  %v286_v11 = vor.u32 %v378_v5, %v285_v1 }
  0x11   :  { %230 = vmatpush.bf16.msra.mxu2 %v314_v40  ;;  %v287_v9 = vld [vmem:[%s595_s1 + $0x18] sm:$0xf0]  ;;  %v274_v12 = vor.u32 %v373_v6, %v271_v7  ;;  %v277_v14 = vld [vmem:[%s595_s1] sm:$0xf]  ;;  %v376_v15 = vld [vmem:[%s595_s1 + $0x4] sm:$0xf0] }
  0x12   :  { %246 = vmatpush.bf16.msra.mxu3 %v362_v41  ;;  %218 = vmatpush.bf16.msra.mxu1 %v358_v48  ;;  %v290_v13 = vor.u32 %v377_v8, %v287_v9  ;;  %v375_v16 = vld [vmem:[%s595_s1 + $0x4] sm:$0xf]  ;;  %v279_v17 = vld [vmem:[%s595_s1 + $0x8] sm:$0xf0]  ;;  %v278_v19 = vor.u32 %v376_v15, %v277_v14  ;;  %v269_v20 = vld [vmem:[%s597_s0] sm:$0xf] }
  0x13   :  { %v43_v18 = vld [vmem:[%s596_s2 + $0x8] sm:$0xff]  ;;  %v282_v22 = vor.u32 %v375_v16, %v279_v17 }
  0x14   :  { %203 = vmatpush.bf16.msra.mxu0 %v302_v51  ;;  %v374_v21 = vld [vmem:[%s597_s0 + $0x4] sm:$0xf0] }
  0x15   :  { %231 = vmatpush.bf16.msra.mxu2 %v306_v52  ;;  %v270_v23 = vor.u32 %v374_v21, %v269_v20 }
  0x16   :  { %247 = vmatpush.bf16.msra.mxu3 %v354_v53  ;;  %219 = vmatpush.bf16.msra.mxu1 %v350_v60 }
  0x18   :  { %204 = vmatpush.bf16.msra.mxu0 %v294_v0  ;;  %51 = vperm.xlu0 %400, %v43_v18  }
  0x19   :  { %232 = vmatpush.bf16.msra.mxu2 %v298_v3 }
  0x1a   :  { %248 = vmatpush.bf16.msra.mxu3 %v346_v4  ;;  %220 = vmatpush.bf16.msra.mxu1 %v342_v10 }
  0x1c   :  { %205 = vmatpush.bf16.msra.mxu0 %v286_v11 }
  0x1d   :  { %372 = vmatmul.msk.bf16.vlgmr.msra.gmra.mxu3 %vm188_vm1, %v274_v12  ;;  %233 = vmatpush.bf16.msra.mxu2 %v290_v13 }
  0x1e   :  { %371 = vmatmul.msk.bf16.vlgmr.msra.gmra.mxu1 %vm188_vm1, %v274_v12 }
  0x20   :  { %206 = vmatpush.bf16.msra.mxu0 %v278_v19 }
  0x21   :  { %234 = vmatpush.bf16.msra.mxu2 %v282_v22 }
  0x23   :  { %207 = vmatmul.bf16.vlgmr.msra.gmra.mxu0 %v270_v23 }
  0x24   :  { %235 = vmatmul.bf16.vlgmr.msra.gmra.mxu2 %v270_v23 }
  0x82   :  { %v47_v25 = vpop.permute.xlu0 %46 }
  0x8a   :  { %v52_v35 = vpop.permute.xlu0 %51 }
  0x9b   :  { %v222_v27 = vpop.f32.mrf.mxu1 }
  0xa0   :  { %v208_v24 = vpop.f32.mrf.mxu0  ;;  %v250_v29 = vpop.f32.mrf.mxu3 }
  0xa1   :  { %v209_v26 = vadd.f32 %v208_v24, %v47_v25 }
  0xa3   :  { %v223_v28 = vadd.f32 %v222_v27, %v209_v26  ;;  %v224_v39 = vpop.f32.mrf.mxu1 }
  0xa5   :  { %v255_v33 = vmax.f32 %v223_v28, 0.0 }
  0xa7   :  { %v236_v30 = vpop.f32.mrf.mxu2 }
  0xa8   :  { %v237_v31 = vadd.f32 %v236_v30, %v47_v25  ;;  %v210_v32 = vpop.f32.mrf.mxu0  ;;  %v252_v43 = vpop.f32.mrf.mxu3 }
  0xa9   :  { %v211_v37 = vadd.f32 %v210_v32, %v52_v35 }
  0xaa   :  { %v251_v34 = vadd.f32 %v250_v29, %v237_v31 }
  0xab   :  { %v225_v41 = vadd.f32 %v224_v39, %v211_v37 }
  0xac   :  { %v256_v36 = vmax.f32 %v251_v34, 0.0 }
  0xad   :  { %v257_v45 = vmax.f32 %v225_v41, 0.0 }
  0xae   :  { %v259_v38 = vpack.c.bf16 %v256_v36, %v255_v33 }
  0xaf   :  { %v238_v40 = vpop.f32.mrf.mxu2 }
  0xb0   :  { %261 = vst [vmem:[%s598_s3] sm:$0xff] %v259_v38  ;;  %v239_v42 = vadd.f32 %v238_v40, %v52_v35 }
  0xb2   :  { %v253_v44 = vadd.f32 %v252_v43, %v239_v42 }
  0xb4   :  { %v258_v46 = vmax.f32 %v253_v44, 0.0 }
  0xb6   :  { %v260_v47 = vpack.c.bf16 %v258_v46, %v257_v45 }
  0xb8   :  { %262 = vst [vmem:[%s598_s3 + $0x8] sm:$0xff] %v260_v47 }

// kernel: shallower_autoencoder_forward.6
= control target key start
LH: loop header
LB: loop body
LE: loop exit
PB: predicated region body
PF: predicated region fallthrough
CT: control target
= control target key end

     0   :  { %vm138_vm0 = vcmask 1041408   ;;  %v294_v17 = vmov 0   ;;  %vm131_vm1 = vcmask 818176   ;;  %s420_s1 = inlined_call_operand.vmem [shape: bf16[100,256], index: 1, kind: input, shape index: {}]   ;;  %s421_s2 = inlined_call_operand.vmem [shape: f32[32,1], index: 2, kind: input, shape index: {}]   ;;  %s422_s0 = inlined_call_operand.vmem [shape: bf16[32,100], index: 0, kind: input, shape index: {}]   ;;  %s423_s3 = inlined_call_operand.vmem [shape: bf16[32,256], index: 3, kind: output, shape index: {}]  }
   0x1   :  { %v31_v0 = vld [vmem:[%s420_s1 + $0x60] sm:$0x33]  ;;  %v253_v5 = vld [vmem:[%s420_s1 + $0x50] sm:$0xf]  ;;  %v276_v6 = vld [vmem:[%s420_s1 + $0x54] sm:$0xf0]  ;;  %293 = vset.pattern.permute.xlu1 %v294_v17  ;;  %292 = vset.pattern.permute.xlu0 %v294_v17 }
   0x2   :  { %v103_v1 = vunpack.c.l.b16 %v31_v0  ;;  %v104_v2 = vunpack.c.h.b16 %v31_v0  ;;  %v275_v7 = vld [vmem:[%s420_s1 + $0x54] sm:$0xf]  ;;  %v255_v8 = vld [vmem:[%s420_s1 + $0x58] sm:$0xf0]  ;;  %v254_v11 = vor.u32 %v276_v6, %v253_v5  ;;  %v245_v13 = vld [vmem:[%s420_s1 + $0x40] sm:$0xf] }
   0x3   :  { %v258_v12 = vor.u32 %v275_v7, %v255_v8  ;;  %v274_v14 = vld [vmem:[%s420_s1 + $0x44] sm:$0xf0]  ;;  %v273_v15 = vld [vmem:[%s420_s1 + $0x44] sm:$0xf]  ;;  %v247_v16 = vld [vmem:[%s420_s1 + $0x48] sm:$0xf0] }
   0x4   :  { %v117_v3 = vpack.c.b16 %v103_v1, %v103_v1  ;;  %v118_v4 = vpack.c.b16 %v104_v2, %v104_v2  ;;  %v34_v18 = vld [vmem:[%s421_s2 + $0x10] sm:$0xff]  ;;  %v32_v19 = vld [vmem:[%s421_s2] sm:$0xff]  ;;  %v246_v20 = vor.u32 %v274_v14, %v245_v13  ;;  %v250_v21 = vor.u32 %v273_v15, %v247_v16  ;;  %v272_v23 = vld [vmem:[%s420_s1 + $0x34] sm:$0xf0] }
   0x5   :  { %v237_v22 = vld [vmem:[%s420_s1 + $0x30] sm:$0xf]  ;;  %v271_v24 = vld [vmem:[%s420_s1 + $0x34] sm:$0xf]  ;;  %v239_v25 = vld [vmem:[%s420_s1 + $0x38] sm:$0xf0]  ;;  %48 = vperm.xlu1 %293, %v34_v18   ;;  %38 = vperm.xlu0 %292, %v32_v19  }
   0x6   :  { %v140_v9 = vsel %vm138_vm0, %v117_v3, 0  ;;  %v143_v10 = vsel %vm138_vm0, %v118_v4, 0  ;;  %v238_v26 = vor.u32 %v272_v23, %v237_v22  ;;  %v242_v27 = vor.u32 %v271_v24, %v239_v25  ;;  %v229_v28 = vld [vmem:[%s420_s1 + $0x20] sm:$0xf]  ;;  %v270_v29 = vld [vmem:[%s420_s1 + $0x24] sm:$0xf0] }
   0x7   :  { %146 = vmatpush.bf16.msra.mxu0 %v140_v9  ;;  %277 = vmatpush.bf16.msra.mxu2 %v140_v9  ;;  %v269_v30 = vld [vmem:[%s420_s1 + $0x24] sm:$0xf]  ;;  %v231_v31 = vld [vmem:[%s420_s1 + $0x28] sm:$0xf0]  ;;  %v35_v32 = vld [vmem:[%s421_s2 + $0x18] sm:$0xff]  ;;  %v230_v34 = vor.u32 %v270_v29, %v229_v28 }
   0x8   :  { %165 = vmatpush.bf16.msra.mxu1 %v143_v10  ;;  %284 = vmatpush.bf16.msra.mxu3 %v143_v10  ;;  %v33_v33 = vld [vmem:[%s421_s2 + $0x8] sm:$0xff]  ;;  %v234_v35 = vor.u32 %v269_v30, %v231_v31  ;;  %v221_v36 = vld [vmem:[%s420_s1 + $0x10] sm:$0xf]  ;;  %v268_v37 = vld [vmem:[%s420_s1 + $0x14] sm:$0xf0] }
   0x9   :  { %v267_v38 = vld [vmem:[%s420_s1 + $0x14] sm:$0xf]  ;;  %v223_v39 = vld [vmem:[%s420_s1 + $0x18] sm:$0xf0]  ;;  %v222_v40 = vor.u32 %v268_v37, %v221_v36  ;;  %v213_v42 = vld [vmem:[%s420_s1] sm:$0xf] }
   0xa   :  { %v226_v41 = vor.u32 %v267_v38, %v223_v39  ;;  %v266_v43 = vld [vmem:[%s420_s1 + $0x4] sm:$0xf0]  ;;  %v265_v44 = vld [vmem:[%s420_s1 + $0x4] sm:$0xf]  ;;  %v215_v45 = vld [vmem:[%s420_s1 + $0x8] sm:$0xf0] }
   0xb   :  { %147 = vmatpush.bf16.msra.mxu0 %v254_v11  ;;  %278 = vmatpush.bf16.msra.mxu2 %v254_v11  ;;  %v214_v46 = vor.u32 %v266_v43, %v213_v42  ;;  %v218_v47 = vor.u32 %v265_v44, %v215_v45  ;;  %v263_v48 = vld [vmem:[%s422_s0] sm:$0xff]  ;;  %v264_v49 = vld [vmem:[%s422_s0 + $0x8] sm:$0xff] }
   0xc   :  { %166 = vmatpush.bf16.msra.mxu1 %v258_v12  ;;  %285 = vmatpush.bf16.msra.mxu3 %v258_v12 }
   0xd   :  { %53 = vperm.xlu1 %293, %v35_v32   ;;  %43 = vperm.xlu0 %292, %v33_v33  }
   0xf   :  { %148 = vmatpush.bf16.msra.mxu0 %v246_v20  ;;  %279 = vmatpush.bf16.msra.mxu2 %v246_v20 }
  0x10   :  { %167 = vmatpush.bf16.msra.mxu1 %v250_v21  ;;  %286 = vmatpush.bf16.msra.mxu3 %v250_v21 }
  0x13   :  { %149 = vmatpush.bf16.msra.mxu0 %v238_v26  ;;  %280 = vmatpush.bf16.msra.mxu2 %v238_v26 }
  0x14   :  { %168 = vmatpush.bf16.msra.mxu1 %v242_v27  ;;  %287 = vmatpush.bf16.msra.mxu3 %v242_v27 }
  0x17   :  { %150 = vmatpush.bf16.msra.mxu0 %v230_v34  ;;  %281 = vmatpush.bf16.msra.mxu2 %v230_v34 }
  0x18   :  { %169 = vmatpush.bf16.msra.mxu1 %v234_v35  ;;  %288 = vmatpush.bf16.msra.mxu3 %v234_v35 }
  0x1b   :  { %151 = vmatpush.bf16.msra.mxu0 %v222_v40  ;;  %282 = vmatpush.bf16.msra.mxu2 %v222_v40 }
  0x1c   :  { %170 = vmatpush.bf16.msra.mxu1 %v226_v41  ;;  %289 = vmatpush.bf16.msra.mxu3 %v226_v41 }
  0x1f   :  { %152 = vmatpush.bf16.msra.mxu0 %v214_v46  ;;  %283 = vmatpush.bf16.msra.mxu2 %v214_v46 }
  0x20   :  { %171 = vmatpush.bf16.msra.mxu1 %v218_v47  ;;  %290 = vmatpush.bf16.msra.mxu3 %v218_v47 }
  0x22   :  { %259 = vmatmul.msk.bf16.vlgmr.msra.gmra.mxu0 %vm131_vm1, %v263_v48  ;;  %260 = vmatmul.msk.bf16.vlgmr.msra.gmra.mxu2 %vm131_vm1, %v264_v49 }
  0x23   :  { %261 = vmatmul.msk.bf16.vlgmr.msra.gmra.mxu1 %vm131_vm1, %v263_v48  ;;  %262 = vmatmul.msk.bf16.vlgmr.msra.gmra.mxu3 %vm131_vm1, %v264_v49 }
  0x77   :  { %v39_v50 = vpop.permute.xlu0 %38  ;;  %v49_v56 = vpop.permute.xlu1 %48 }
  0x7f   :  { %v44_v62 = vpop.permute.xlu0 %43  ;;  %v54_v9 = vpop.permute.xlu1 %53 }
  0x9f   :  { %v154_v51 = vpop.f32.mrf.mxu0 }
  0xa0   :  { %v155_v52 = vadd.f32 %v154_v51, %v39_v50  ;;  %v173_v53 = vpop.f32.mrf.mxu1 }
  0xa1   :  { %v174_v54 = vadd.f32 %v173_v53, %v39_v50 }
  0xa2   :  { %v183_v55 = vmax.f32 %v155_v52, 0.0 }
  0xa3   :  { %v184_v57 = vmax.f32 %v174_v54, 0.0 }
  0xa5   :  { %v191_v58 = vpack.c.bf16 %v184_v57, %v183_v55  ;;  %v159_v59 = vpop.f32.mrf.mxu2 }
  0xa6   :  { %v160_v60 = vadd.f32 %v159_v59, %v49_v56  ;;  %v178_v61 = vpop.f32.mrf.mxu3 }
  0xa7   :  { %195 = vst [vmem:[%s423_s3] sm:$0xff] %v191_v58  ;;  %v179_v63 = vadd.f32 %v178_v61, %v49_v56  ;;  %v156_v0 = vpop.f32.mrf.mxu0 }
  0xa8   :  { %v187_v1 = vmax.f32 %v160_v60, 0.0  ;;  %v157_v2 = vadd.f32 %v156_v0, %v44_v62  ;;  %v175_v3 = vpop.f32.mrf.mxu1 }
  0xa9   :  { %v188_v4 = vmax.f32 %v179_v63, 0.0  ;;  %v176_v5 = vadd.f32 %v175_v3, %v44_v62 }
  0xaa   :  { %v185_v6 = vmax.f32 %v157_v2, 0.0 }
  0xab   :  { %v193_v7 = vpack.c.bf16 %v188_v4, %v187_v1  ;;  %v186_v8 = vmax.f32 %v176_v5, 0.0 }
  0xad   :  { %197 = vst [vmem:[%s423_s3 + $0x10] sm:$0xff] %v193_v7  ;;  %v192_v10 = vpack.c.bf16 %v186_v8, %v185_v6  ;;  %v161_v11 = vpop.f32.mrf.mxu2 }
  0xae   :  { %v162_v12 = vadd.f32 %v161_v11, %v54_v9  ;;  %v180_v13 = vpop.f32.mrf.mxu3 }
  0xaf   :  { %196 = vst [vmem:[%s423_s3 + $0x8] sm:$0xff] %v192_v10  ;;  %v181_v14 = vadd.f32 %v180_v13, %v54_v9 }
  0xb0   :  { %v189_v15 = vmax.f32 %v162_v12, 0.0 }
  0xb1   :  { %v190_v16 = vmax.f32 %v181_v14, 0.0 }
  0xb3   :  { %v194_v17 = vpack.c.bf16 %v190_v16, %v189_v15 }
  0xb5   :  { %198 = vst [vmem:[%s423_s3 + $0x18] sm:$0xff] %v194_v17 }

// kernel: shallower_autoencoder_forward.7
= control target key start
LH: loop header
LB: loop body
LE: loop exit
PB: predicated region body
PF: predicated region fallthrough
CT: control target
= control target key end

     0   :  { %vm187_vm0 = vcmask 1045504   ;;  %v1131_v3 = vmov 0   ;;  %vm174_vm1 = vcmask 490496   ;;  %s1764_s1 = inlined_call_operand.vmem [shape: bf16[60,512], index: 1, kind: input, shape index: {}]   ;;  %s1765_s2 = inlined_call_operand.vmem [shape: f32[56,1], index: 2, kind: input, shape index: {}]   ;;  %s1766_s0 = inlined_call_operand.vmem [shape: bf16[56,60], index: 0, kind: input, shape index: {}]   ;;  %s1767_s3 = inlined_call_operand.vmem [shape: f32[56,512], index: 3, kind: output, shape index: {}]  }
   0x1   :  { %v938_v0 = vld [vmem:[%s1764_s1 + $0x60] sm:$0xf]  ;;  %v1013_v1 = vld [vmem:[%s1764_s1 + $0x6c] sm:$0x30]  ;;  %v1011_v2 = vld [vmem:[%s1764_s1 + $0x64] sm:$0xf]  ;;  %1016 = vset.pattern.permute.xlu0 %v1131_v3  ;;  %1017 = vset.pattern.permute.xlu1 %v1131_v3 }
   0x2   :  { %v939_v4 = vor.u32 %v1013_v1, %v938_v0  ;;  %v940_v5 = vld [vmem:[%s1764_s1 + $0x70] sm:$0x30]  ;;  %v946_v6 = vld [vmem:[%s1764_s1 + $0x68] sm:$0xf]  ;;  %v1014_v7 = vld [vmem:[%s1764_s1 + $0x74] sm:$0x30]  ;;  %1018 = vset.pattern.permute.xlu2 %v1131_v3 }
   0x3   :  { %v943_v8 = vor.u32 %v1011_v2, %v940_v5  ;;  %v947_v9 = vor.u32 %v1014_v7, %v946_v6  ;;  %v1012_v10 = vld [vmem:[%s1764_s1 + $0x6c] sm:$0xf]  ;;  %v948_v11 = vld [vmem:[%s1764_s1 + $0x78] sm:$0x30]  ;;  %v922_v12 = vld [vmem:[%s1764_s1 + $0x40] sm:$0xf] }
   0x4   :  { %v189_v13 = vsel %vm187_vm0, %v939_v4, 0  ;;  %v951_v14 = vor.u32 %v1012_v10, %v948_v11  ;;  %v1009_v15 = vld [vmem:[%s1764_s1 + $0x4c] sm:$0xf0]  ;;  %v1007_v16 = vld [vmem:[%s1764_s1 + $0x44] sm:$0xf]  ;;  %v39_v51 = vld [vmem:[%s1765_s2 + $0x8] sm:$0xff] }
   0x5   :  { %204 = vmatpush.bf16.msra.mxu0 %v189_v13  ;;  %v192_v17 = vsel %vm187_vm0, %v943_v8, 0  ;;  %v195_v18 = vsel %vm187_vm0, %v947_v9, 0  ;;  %v923_v19 = vor.u32 %v1009_v15, %v922_v12  ;;  %v924_v20 = vld [vmem:[%s1764_s1 + $0x50] sm:$0xf0]  ;;  %v930_v21 = vld [vmem:[%s1764_s1 + $0x48] sm:$0xf] }
   0x6   :  { %232 = vmatpush.bf16.msra.mxu1 %v192_v17  ;;  %260 = vmatpush.bf16.msra.mxu2 %v195_v18  ;;  %v198_v22 = vsel %vm187_vm0, %v951_v14, 0  ;;  %v927_v23 = vor.u32 %v1007_v16, %v924_v20  ;;  %v1010_v24 = vld [vmem:[%s1764_s1 + $0x54] sm:$0xf0]  ;;  %v1008_v25 = vld [vmem:[%s1764_s1 + $0x4c] sm:$0xf]  ;;  %v38_v26 = vld [vmem:[%s1765_s2] sm:$0xff] }
   0x7   :  { %288 = vmatpush.bf16.msra.mxu3 %v198_v22  ;;  %v931_v27 = vor.u32 %v1010_v24, %v930_v21  ;;  %v932_v28 = vld [vmem:[%s1764_s1 + $0x58] sm:$0xf0]  ;;  %v906_v29 = vld [vmem:[%s1764_s1 + $0x20] sm:$0xf]  ;;  %v1005_v30 = vld [vmem:[%s1764_s1 + $0x2c] sm:$0xf0]  ;;  %47 = vperm.xlu0 %1016, %v38_v26  }
   0x8   :  { %v935_v31 = vor.u32 %v1008_v25, %v932_v28  ;;  %v1003_v32 = vld [vmem:[%s1764_s1 + $0x24] sm:$0xf]  ;;  %v908_v33 = vld [vmem:[%s1764_s1 + $0x30] sm:$0xf0]  ;;  %v914_v34 = vld [vmem:[%s1764_s1 + $0x28] sm:$0xf]  ;;  %v907_v35 = vor.u32 %v1005_v30, %v906_v29 }
   0x9   :  { %205 = vmatpush.bf16.msra.mxu0 %v923_v19  ;;  %v1006_v36 = vld [vmem:[%s1764_s1 + $0x34] sm:$0xf0]  ;;  %v1004_v37 = vld [vmem:[%s1764_s1 + $0x2c] sm:$0xf]  ;;  %v916_v38 = vld [vmem:[%s1764_s1 + $0x38] sm:$0xf0]  ;;  %v911_v39 = vor.u32 %v1003_v32, %v908_v33 }
   0xa   :  { %233 = vmatpush.bf16.msra.mxu1 %v927_v23  ;;  %261 = vmatpush.bf16.msra.mxu2 %v931_v27  ;;  %v915_v40 = vor.u32 %v1006_v36, %v914_v34  ;;  %v890_v41 = vld [vmem:[%s1764_s1] sm:$0xf]  ;;  %v1001_v42 = vld [vmem:[%s1764_s1 + $0xc] sm:$0xf0]  ;;  %v999_v43 = vld [vmem:[%s1764_s1 + $0x4] sm:$0xf]  ;;  %v919_v44 = vor.u32 %v1004_v37, %v916_v38 }
   0xb   :  { %289 = vmatpush.bf16.msra.mxu3 %v935_v31  ;;  %v892_v45 = vld [vmem:[%s1764_s1 + $0x10] sm:$0xf0]  ;;  %v898_v46 = vld [vmem:[%s1764_s1 + $0x8] sm:$0xf]  ;;  %v1002_v47 = vld [vmem:[%s1764_s1 + $0x14] sm:$0xf0]  ;;  %v891_v50 = vor.u32 %v1001_v42, %v890_v41 }
   0xc   :  { %v1000_v48 = vld [vmem:[%s1764_s1 + $0xc] sm:$0xf]  ;;  %v900_v49 = vld [vmem:[%s1764_s1 + $0x18] sm:$0xf0]  ;;  %v40_v52 = vld [vmem:[%s1765_s2 + $0x10] sm:$0xff]  ;;  %v895_v53 = vor.u32 %v999_v43, %v892_v45  ;;  %v899_v54 = vor.u32 %v1002_v47, %v898_v46 }
   0xd   :  { %206 = vmatpush.bf16.msra.mxu0 %v907_v35  ;;  %v903_v55 = vor.u32 %v1000_v48, %v900_v49  ;;  %v996_v56 = vld [vmem:[%s1766_s0] sm:$0xff]  ;;  %57 = vperm.xlu1 %1017, %v40_v52   ;;  %v41_v57 = vld [vmem:[%s1765_s2 + $0x18] sm:$0xff]  ;;  %v997_v58 = vld [vmem:[%s1766_s0 + $0x8] sm:$0xff] }
   0xe   :  { %234 = vmatpush.bf16.msra.mxu1 %v911_v39  ;;  %262 = vmatpush.bf16.msra.mxu2 %v915_v40  ;;  %v44_v59 = vld [vmem:[%s1765_s2 + $0x30] sm:$0xff]  ;;  %v42_v60 = vld [vmem:[%s1765_s2 + $0x20] sm:$0xff]  ;;  %v43_v61 = vld [vmem:[%s1765_s2 + $0x28] sm:$0xff] }
   0xf   :  { %290 = vmatpush.bf16.msra.mxu3 %v919_v44  ;;  %52 = vperm.xlu0 %1016, %v39_v51   ;;  %v998_v62 = vld [vmem:[%s1766_s0 + $0x10] sm:$0xff]  ;;  %v21_v63 = vld [vmem:[%s1766_s0 + $0x18] sm:$0xf] }
  0x10   :  { %67 = vperm.xlu2 %1018, %v42_v60   ;;  %v93_v0 = vunpack.c.l.b16 %v21_v63 }
  0x11   :  { %207 = vmatpush.bf16.msra.mxu0 %v891_v50 }
  0x12   :  { %235 = vmatpush.bf16.msra.mxu1 %v895_v53  ;;  %263 = vmatpush.bf16.msra.mxu2 %v899_v54  ;;  %v97_v1 = vpack.c.b16 %v93_v0, %v93_v0 }
  0x13   :  { %291 = vmatpush.bf16.msra.mxu3 %v903_v55 }
  0x14   :  { %952 = vmatmul.msk.bf16.vlgmr.msra.gmra.mxu0 %vm174_vm1, %v996_v56 }
  0x15   :  { %956 = vmatmul.msk.bf16.vlgmr.msra.gmra.mxu1 %vm174_vm1, %v996_v56  ;;  %960 = vmatmul.msk.bf16.vlgmr.msra.gmra.mxu2 %vm174_vm1, %v996_v56 }
  0x16   :  { %964 = vmatmul.msk.bf16.vlgmr.msra.gmra.mxu3 %vm174_vm1, %v996_v56  ;;  %62 = vperm.xlu1 %1017, %v41_v57  }
  0x17   :  { %77 = vperm.xlu0 %1016, %v44_v59  }
  0x18   :  { %72 = vperm.xlu2 %1018, %v43_v61  }
  0x24   :  { %953 = vmatmul.msk.bf16.gmra.mxu0 %vm174_vm1, %v997_v58 }
  0x25   :  { %957 = vmatmul.msk.bf16.gmra.mxu1 %vm174_vm1, %v997_v58  ;;  %961 = vmatmul.msk.bf16.gmra.mxu2 %vm174_vm1, %v997_v58 }
  0x26   :  { %965 = vmatmul.msk.bf16.gmra.mxu3 %vm174_vm1, %v997_v58 }
  0x34   :  { %954 = vmatmul.msk.bf16.gmra.mxu0 %vm174_vm1, %v998_v62 }
  0x35   :  { %958 = vmatmul.msk.bf16.gmra.mxu1 %vm174_vm1, %v998_v62  ;;  %962 = vmatmul.msk.bf16.gmra.mxu2 %vm174_vm1, %v998_v62 }
  0x36   :  { %966 = vmatmul.msk.bf16.gmra.mxu3 %vm174_vm1, %v998_v62 }
  0x44   :  { %955 = vmatmul.msk.bf16.gmra.mxu0 %vm174_vm1, %v97_v1 }
  0x45   :  { %959 = vmatmul.msk.bf16.gmra.mxu1 %vm174_vm1, %v97_v1  ;;  %963 = vmatmul.msk.bf16.gmra.mxu2 %vm174_vm1, %v97_v1 }
  0x46   :  { %967 = vmatmul.msk.bf16.gmra.mxu3 %vm174_vm1, %v97_v1 }
  0x79   :  { %v48_v2 = vpop.permute.xlu0 %47 }
  0x7f   :  { %v1309_v31 = vpop.permute.xlu1 %57 }
  0x81   :  { %v53_v9 = vpop.permute.xlu0 %52 }
  0x91   :  { %v209_v3 = vpop.f32.mrf.mxu0 }
  0x92   :  { %v210_v4 = vadd.f32 %v209_v3, %v48_v2  ;;  %v237_v5 = vpop.f32.mrf.mxu1 }
  0x93   :  { %v238_v6 = vadd.f32 %v237_v5, %v48_v2 }
  0x94   :  { %v968_v7 = vmul.f32 -1.442695, %v210_v4 }
  0x95   :  { %v969_v8 = vmul.f32 -1.442695, %v238_v6 }
  0x96   :  { %1019 = vpow2.f32 %v968_v7 }
  0x97   :  { %1021 = vpow2.f32 %v969_v8 }
  0x98   :  { %v265_v10 = vpop.f32.mrf.mxu2 }
  0x99   :  { %v266_v11 = vadd.f32 %v265_v10, %v48_v2  ;;  %v293_v12 = vpop.f32.mrf.mxu3  ;;  %v211_v13 = vpop.f32.mrf.mxu0 }
  0x9a   :  { %v294_v14 = vadd.f32 %v293_v12, %v48_v2  ;;  %v212_v15 = vadd.f32 %v211_v13, %v53_v9  ;;  %v239_v16 = vpop.f32.mrf.mxu1 }
  0x9b   :  { %v970_v17 = vmul.f32 -1.442695, %v266_v11  ;;  %v240_v18 = vadd.f32 %v239_v16, %v53_v9 }
  0x9c   :  { %v1020_v19 = vpop.eup %1019  ;;  %v971_v20 = vmul.f32 -1.442695, %v294_v14  ;;  %v972_v23 = vmul.f32 -1.442695, %v212_v15 }
  0x9d   :  { %v1022_v21 = vpop.eup %1021  ;;  %v1301_v22 = vadd.f32 1.0, %v1020_v19  ;;  %1023 = vpow2.f32 %v970_v17  ;;  %v973_v25 = vmul.f32 -1.442695, %v240_v18 }
  0x9e   :  { %v1303_v24 = vadd.f32 1.0, %v1022_v21  ;;  %1025 = vpow2.f32 %v971_v20 }
  0x9f   :  { %1027 = vrcp.f32 %v1301_v22  ;;  %v433_v29 = vand.u32 2147483647, %v1301_v22  ;;  %v435_v30 = vand.u32 2147483648, %v1301_v22  ;;  %vm429_vm2 = vweird.f32 %v1301_v22 }
  0xa0   :  { %1029 = vrcp.f32 %v1303_v24  ;;  %v267_v26 = vpop.f32.mrf.mxu2  ;;  %v448_v34 = vand.u32 2147483647, %v1303_v24  ;;  %v450_v38 = vand.u32 2147483648, %v1303_v24  ;;  %vm444_vm3 = vweird.f32 %v1303_v24 }
  0xa1   :  { %1031 = vpow2.f32 %v972_v23  ;;  %v268_v27 = vadd.f32 %v267_v26, %v53_v9  ;;  %v295_v28 = vpop.f32.mrf.mxu3  ;;  %v214_v32 = vpop.f32.mrf.mxu0  ;;  %vm1321_vm4 = vcmp.eq.f32.partialorder %v433_v29, 8.507059e+37  ;;  %v436_v47 = vor.u32 1.1754944e-38, %v435_v30 }
  0xa2   :  { %1033 = vpow2.f32 %v973_v25  ;;  %v296_v36 = vadd.f32 %v295_v28, %v53_v9  ;;  %v215_v42 = vadd.f32 %v214_v32, %v1309_v31  ;;  %v242_v43 = vpop.f32.mrf.mxu1  ;;  %vm1327_vm5 = vcmp.eq.f32.partialorder %v448_v34, 8.507059e+37 }
  0xa3   :  { %v1024_v33 = vpop.eup %1023  ;;  %v974_v35 = vmul.f32 -1.442695, %v268_v27  ;;  %v451_v54 = vor.u32 1.1754944e-38, %v450_v38  ;;  %v243_v55 = vadd.f32 %v242_v43, %v1309_v31 }
  0xa4   :  { %v1026_v37 = vpop.eup %1025  ;;  %v1313_v39 = vadd.f32 1.0, %v1024_v33  ;;  %v975_v51 = vmul.f32 -1.442695, %v296_v36  ;;  %v976_v58 = vmul.f32 -1.442695, %v215_v42 }
  0xa5   :  { %v1028_v40 = vpop.eup %1027  ;;  %v1317_v41 = vadd.f32 1.0, %v1026_v37  ;;  %v1342_v4 = vmul.f32 -1.442695, %v243_v55 }
  0xa6   :  { %v1030_v44 = vpop.eup %1029  ;;  %v425_v45 = vmul.f32 %v1028_v40, %v1301_v22  ;;  %1035 = vrcp.f32 %v1313_v39  ;;  %vm430_vm6 = vweird.f32 %v1028_v40  ;;  %v463_v57 = vand.u32 2147483647, %v1313_v39 }
  0xa7   :  { %v1032_v48 = vpop.eup %1031  ;;  %v440_v49 = vmul.f32 %v1030_v44, %v1303_v24  ;;  %1037 = vpow2.f32 %v974_v35  ;;  %v465_v60 = vand.u32 2147483648, %v1313_v39  ;;  %vm445_vm7 = vweird.f32 %v1030_v44  ;;  %vm431_vm8 = vmor %vm429_vm2, %vm430_vm6 }
  0xa8   :  { %v1034_v52 = vpop.eup %1033  ;;  %v426_v53 = vsub.f32 1.0, %v425_v45  ;;  %1039 = vrcp.f32 %v1317_v41  ;;  %v1335_v61 = vadd.f32 1.0, %v1032_v48  ;;  %v478_v0 = vand.u32 2147483647, %v1317_v41  ;;  %v270_v8 = vpop.f32.mrf.mxu2  ;;  %vm446_vm11 = vmor %vm444_vm3, %vm445_vm7 }
  0xa9   :  { %v441_v56 = vsub.f32 1.0, %v440_v49  ;;  %v1337_v62 = vadd.f32 1.0, %v1034_v52  ;;  %1041 = vpow2.f32 %v975_v51  ;;  %v480_v3 = vand.u32 2147483648, %v1317_v41  ;;  %v216_v33 = vpop.f32.mrf.mxu0  ;;  %v298_v38 = vpop.f32.mrf.mxu3 }
  0xaa   :  { %v427_v59 = vmul.f32 %v1028_v40, %v426_v53  ;;  %1043 = vrcp.f32 %v1335_v61  ;;  %vm459_vm9 = vweird.f32 %v1313_v39  ;;  %vm474_vm10 = vweird.f32 %v1317_v41  ;;  %v1382_v34 = vpop.f32.mrf.mxu1 }
  0xab   :  { %v442_v63 = vmul.f32 %v1030_v44, %v441_v56  ;;  %vm1353_vm12 = vcmp.eq.f32.partialorder %v463_v57, 8.507059e+37  ;;  %v466_v12 = vor.u32 1.1754944e-38, %v465_v60  ;;  %1045 = vrcp.f32 %v1337_v62  ;;  %v63_v57 = vpop.permute.xlu1 %62 }
  0xac   :  { %v1036_v1 = vpop.eup %1035  ;;  %v428_v2 = vadd.f32 %v1028_v40, %v427_v59  ;;  %vm1361_vm13 = vcmp.eq.f32.partialorder %v478_v0, 8.507059e+37  ;;  %v481_v19 = vor.u32 1.1754944e-38, %v480_v3  ;;  %v493_v20 = vand.u32 2147483647, %v1335_v61 }
  0xad   :  { %v1038_v5 = vpop.eup %1037  ;;  %v443_v6 = vadd.f32 %v1030_v44, %v442_v63  ;;  %v455_v7 = vmul.f32 %v1036_v1, %v1313_v39  ;;  %v271_v21 = vadd.f32 %v270_v8, %v1309_v31  ;;  %vm460_vm14 = vweird.f32 %v1036_v1 }
  0xae   :  { %v1040_v9 = vpop.eup %1039  ;;  %v432_v10 = vsel %vm431_vm8, %v1028_v40, %v428_v2  ;;  %v1375_v25 = vadd.f32 1.0, %v1038_v5  ;;  %vm489_vm0 = vweird.f32 %v1335_v61  ;;  %v495_v27 = vand.u32 2147483648, %v1335_v61  ;;  %vm461_vm1 = vmor %vm459_vm9, %vm460_vm14 }
  0xaf   :  { %v437_v13 = vsel %vm1321_vm4, %v436_v47, %v432_v10  ;;  %v447_v14 = vsel %vm446_vm11, %v1030_v44, %v443_v6  ;;  %v456_v15 = vsub.f32 1.0, %v455_v7  ;;  %v470_v16 = vmul.f32 %v1040_v9, %v1317_v41  ;;  %v1042_v22 = vpop.eup %1041 }
  0xb0   :  { %844 = vst [vmem:[%s1767_s3] sm:$0xff] %v437_v13  ;;  %v452_v18 = vsel %vm1327_vm5, %v451_v54, %v447_v14  ;;  %v1044_v26 = vpop.eup %1043  ;;  %vm475_vm15 = vweird.f32 %v1040_v9  ;;  %1047 = vpow2.f32 %v976_v58  ;;  %v1380_v32 = vadd.f32 1.0, %v1042_v22  ;;  %v272_v6 = vpop.f32.mrf.mxu2 }
  0xb1   :  { %845 = vst [vmem:[%s1767_s3 + $0x8] sm:$0xff] %v452_v18  ;;  %v457_v23 = vmul.f32 %v1036_v1, %v456_v15  ;;  %v471_v24 = vsub.f32 1.0, %v470_v16  ;;  %v485_v30 = vmul.f32 %v1044_v26, %v1335_v61  ;;  %v1046_v35 = vpop.eup %1045  ;;  %vm1387_vm2 = vcmp.eq.f32.partialorder %v493_v20, 8.507059e+37  ;;  %vm476_vm4 = vmor %vm474_vm10, %vm475_vm15  ;;  %v1440_v10 = vpop.f32.mrf.mxu0 }
  0xb2   :  { %vm504_vm3 = vweird.f32 %v1337_v62  ;;  %v508_v37 = vand.u32 2147483647, %v1337_v62  ;;  %1049 = vrcp.f32 %v1375_v25  ;;  %v500_v44 = vmul.f32 %v1046_v35, %v1337_v62  ;;  %v300_v14 = vpop.f32.mrf.mxu3 }
  0xb3   :  { %v458_v28 = vadd.f32 %v1036_v1, %v457_v23  ;;  %v472_v29 = vmul.f32 %v1040_v9, %v471_v24  ;;  %v486_v43 = vsub.f32 1.0, %v485_v30  ;;  %vm490_vm5 = vweird.f32 %v1044_v26 }
  0xb4   :  { %v510_v45 = vand.u32 2147483648, %v1337_v62  ;;  %v523_v46 = vand.u32 2147483647, %v1375_v25  ;;  %v501_v49 = vsub.f32 1.0, %v500_v44  ;;  %1051 = vrcp.f32 %v1380_v32  ;;  %vm491_vm8 = vmor %vm489_vm0, %vm490_vm5  ;;  %v1442_v62 = vpop.f32.mrf.mxu1 }
  0xb5   :  { %v462_v40 = vsel %vm461_vm1, %v1036_v1, %v458_v28  ;;  %v473_v42 = vadd.f32 %v1040_v9, %v472_v29  ;;  %v487_v48 = vmul.f32 %v1044_v26, %v486_v43  ;;  %v496_v41 = vor.u32 1.1754944e-38, %v495_v27 }
  0xb6   :  { %v467_v39 = vsel %vm1353_vm12, %v466_v12, %v462_v40  ;;  %v1048_v50 = vpop.eup %1047  ;;  %vm1408_vm6 = vcmp.eq.f32.partialorder %v508_v37, 8.507059e+37  ;;  %v525_v53 = vand.u32 2147483648, %v1375_v25  ;;  %v502_v55 = vmul.f32 %v1046_v35, %v501_v49 }
  0xb7   :  { %846 = vst [vmem:[%s1767_s3 + $0x10] sm:$0xff] %v467_v39  ;;  %v477_v47 = vsel %vm476_vm4, %v1040_v9, %v473_v42  ;;  %v488_v54 = vadd.f32 %v1044_v26, %v487_v48  ;;  %vm505_vm7 = vweird.f32 %v1046_v35  ;;  %v1416_v56 = vadd.f32 1.0, %v1048_v50 }
  0xb8   :  { %v482_v51 = vsel %vm1361_vm13, %v481_v19, %v477_v47  ;;  %v1050_v58 = vpop.eup %1049  ;;  %v511_v59 = vor.u32 1.1754944e-38, %v510_v45  ;;  %vm519_vm9 = vweird.f32 %v1375_v25  ;;  %1053 = vpow2.f32 %v1342_v4  ;;  %vm506_vm11 = vmor %vm504_vm3, %vm505_vm7 }
  0xb9   :  { %847 = vst [vmem:[%s1767_s3 + $0x18] sm:$0xff] %v482_v51  ;;  %v978_v60 = vmul.f32 -1.442695, %v271_v21  ;;  %v492_v63 = vsel %vm491_vm8, %v1044_v26, %v488_v54  ;;  %v503_v0 = vadd.f32 %v1046_v35, %v502_v55  ;;  %v515_v1 = vmul.f32 %v1050_v58, %v1375_v25 }
  0xba   :  { %vm1424_vm10 = vcmp.eq.f32.partialorder %v523_v46, 8.507059e+37  ;;  %v299_v3 = vadd.f32 %v298_v38, %v1309_v31  ;;  %v497_v61 = vsel %vm1387_vm2, %v496_v41, %v492_v63  ;;  %v526_v5 = vor.u32 1.1754944e-38, %v525_v53  ;;  %v1052_v7 = vpop.eup %1051 }
  0xbb   :  { %1055 = vrcp.f32 %v1416_v56  ;;  %v217_v4 = vadd.f32 %v216_v33, %v63_v57  ;;  %848 = vst [vmem:[%s1767_s3 + $0x20] sm:$0xff] %v497_v61  ;;  %v507_v8 = vsel %vm506_vm11, %v1046_v35, %v503_v0  ;;  %v516_v9 = vsub.f32 1.0, %v515_v1 }
  0xbc   :  { %vm534_vm12 = vweird.f32 %v1380_v32  ;;  %v538_v31 = vand.u32 2147483647, %v1380_v32  ;;  %v512_v11 = vsel %vm1408_vm6, %v511_v59, %v507_v8  ;;  %v530_v12 = vmul.f32 %v1052_v7, %v1380_v32  ;;  %v1480_v48 = vpop.f32.mrf.mxu1 }
  0xbd   :  { %v540_v13 = vand.u32 2147483648, %v1380_v32  ;;  %1057 = vpow2.f32 %v978_v60  ;;  %849 = vst [vmem:[%s1767_s3 + $0x28] sm:$0xff] %v512_v11  ;;  %v517_v15 = vmul.f32 %v1050_v58, %v516_v9  ;;  %vm520_vm13 = vweird.f32 %v1050_v58  ;;  %v1478_v32 = vpop.f32.mrf.mxu0 }
  0xbe   :  { %vm535_vm14 = vweird.f32 %v1052_v7  ;;  %v979_v16 = vmul.f32 -1.442695, %v299_v3  ;;  %v1054_v17 = vpop.eup %1053  ;;  %v531_v18 = vsub.f32 1.0, %v530_v12  ;;  %v980_v19 = vmul.f32 -1.442695, %v217_v4  ;;  %vm521_vm15 = vmor %vm519_vm9, %vm520_vm13 }
  0xbf   :  { %v245_v20 = vadd.f32 %v1382_v34, %v63_v57  ;;  %v273_v21 = vadd.f32 %v272_v6, %v63_v57  ;;  %v518_v22 = vadd.f32 %v1050_v58, %v517_v15  ;;  %v1452_v23 = vadd.f32 1.0, %v1054_v17  ;;  %vm536_vm2 = vmor %vm534_vm12, %vm535_vm14 }
  0xc0   :  { %1059 = vpow2.f32 %v979_v16  ;;  %v301_v24 = vadd.f32 %v300_v14, %v63_v57  ;;  %v532_v27 = vmul.f32 %v1052_v7, %v531_v18  ;;  %vm1456_vm0 = vcmp.eq.f32.partialorder %v538_v31, 8.507059e+37 }
  0xc1   :  { %v1056_v26 = vpop.eup %1055  ;;  %1061 = vpow2.f32 %v980_v19  ;;  %v981_v28 = vmul.f32 -1.442695, %v245_v20  ;;  %v982_v29 = vmul.f32 -1.442695, %v273_v21  ;;  %v522_v30 = vsel %vm521_vm15, %v1050_v58, %v518_v22  ;;  %v1494_v58 = vpop.permute.xlu2 %67 }
  0xc2   :  { %v545_v34 = vmul.f32 %v1056_v26, %v1416_v56  ;;  %1063 = vrcp.f32 %v1452_v23  ;;  %v527_v36 = vsel %vm1424_vm10, %v526_v5, %v522_v30  ;;  %v533_v37 = vadd.f32 %v1052_v7, %v532_v27 }
  0xc3   :  { %v1058_v35 = vpop.eup %1057  ;;  %v541_v25 = vor.u32 1.1754944e-38, %v540_v13  ;;  %vm549_vm1 = vweird.f32 %v1416_v56  ;;  %850 = vst [vmem:[%s1767_s3 + $0x30] sm:$0xff] %v527_v36  ;;  %v553_v40 = vand.u32 2147483647, %v1416_v56  ;;  %1065 = vpow2.f32 %v981_v28 }
  0xc4   :  { %v546_v38 = vsub.f32 1.0, %v545_v34  ;;  %v1472_v42 = vadd.f32 1.0, %v1058_v35  ;;  %v537_v43 = vsel %vm536_vm2, %v1052_v7, %v533_v37  ;;  %v555_v44 = vand.u32 2147483648, %v1416_v56  ;;  %v1531_v20 = vpop.f32.mrf.mxu1  ;;  %v275_v34 = vpop.f32.mrf.mxu2 }
  0xc5   :  { %1067 = vpow2.f32 %v982_v29  ;;  %v983_v39 = vmul.f32 -1.442695, %v301_v24  ;;  %v542_v46 = vsel %vm1456_vm0, %v541_v25, %v537_v43  ;;  %vm550_vm3 = vweird.f32 %v1056_v26  ;;  %v1529_v19 = vpop.f32.mrf.mxu0  ;;  %v303_v35 = vpop.f32.mrf.mxu3 }
  0xc6   :  { %v1060_v45 = vpop.eup %1059  ;;  %v547_v47 = vmul.f32 %v1056_v26, %v546_v38  ;;  %1069 = vrcp.f32 %v1472_v42  ;;  %851 = vst [vmem:[%s1767_s3 + $0x38] sm:$0xff] %v542_v46  ;;  %v568_v50 = vand.u32 2147483647, %v1452_v23  ;;  %v570_v53 = vand.u32 2147483648, %v1452_v23  ;;  %vm551_vm4 = vmor %vm549_vm1, %vm550_vm3 }
  0xc7   :  { %v1062_v49 = vpop.eup %1061  ;;  %v1486_v51 = vadd.f32 1.0, %v1060_v45  ;;  %1071 = vpow2.f32 %v983_v39  ;;  %vm554_vm5 = vcmp.eq.f32.partialorder %v553_v40, 8.507059e+37  ;;  %v556_v55 = vor.u32 1.1754944e-38, %v555_v44 }
  0xc8   :  { %v1064_v41 = vpop.eup %1063  ;;  %v548_v52 = vadd.f32 %v1056_v26, %v547_v47  ;;  %v1489_v54 = vadd.f32 1.0, %v1062_v49  ;;  %v583_v63 = vand.u32 2147483647, %v1472_v42  ;;  %v585_v0 = vand.u32 2147483648, %v1472_v42 }
  0xc9   :  { %v560_v57 = vmul.f32 %v1064_v41, %v1452_v23  ;;  %v1066_v59 = vpop.eup %1065  ;;  %1073 = vrcp.f32 %v1486_v51  ;;  %vm564_vm6 = vweird.f32 %v1452_v23  ;;  %vm1504_vm7 = vcmp.eq.f32.partialorder %v568_v50, 8.507059e+37 }
  0xca   :  { %v552_v60 = vsel %vm551_vm4, %v1056_v26, %v548_v52  ;;  %1075 = vrcp.f32 %v1489_v54  ;;  %v571_v5 = vor.u32 1.1754944e-38, %v570_v53  ;;  %vm579_vm8 = vweird.f32 %v1472_v42 }
  0xcb   :  { %v1068_v1 = vpop.eup %1067  ;;  %v557_v2 = vsel %vm554_vm5, %v556_v55, %v552_v60  ;;  %v561_v3 = vsub.f32 1.0, %v560_v57  ;;  %v220_v4 = vadd.f32 %v1440_v10, %v1494_v58  ;;  %vm565_vm9 = vweird.f32 %v1064_v41 }
  0xcc   :  { %v1070_v56 = vpop.eup %1069  ;;  %852 = vst [vmem:[%s1767_s3 + $0x40] sm:$0xff] %v557_v2  ;;  %v598_v8 = vand.u32 2147483647, %v1486_v51  ;;  %vm1513_vm10 = vcmp.eq.f32.partialorder %v583_v63, 8.507059e+37  ;;  %v586_v11 = vor.u32 1.1754944e-38, %v585_v0  ;;  %v600_v12 = vand.u32 2147483648, %v1486_v51  ;;  %vm566_vm12 = vmor %vm564_vm6, %vm565_vm9  ;;  %v254_v63 = vpop.f32.mrf.mxu1 }
  0xcd   :  { %v562_v6 = vmul.f32 %v1064_v41, %v561_v3  ;;  %v575_v7 = vmul.f32 %v1070_v56, %v1472_v42  ;;  %v1072_v9 = vpop.eup %1071  ;;  %v1518_v13 = vadd.f32 1.0, %v1066_v59  ;;  %vm594_vm11 = vweird.f32 %v1486_v51  ;;  %v226_v60 = vpop.f32.mrf.mxu0 }
  0xce   :  { %v1521_v10 = vadd.f32 1.0, %v1068_v1  ;;  %vm580_vm13 = vweird.f32 %v1070_v56  ;;  %vm609_vm14 = vweird.f32 %v1489_v54  ;;  %v613_v17 = vand.u32 2147483647, %v1489_v54 }
  0xcf   :  { %v563_v14 = vadd.f32 %v1064_v41, %v562_v6  ;;  %v576_v15 = vsub.f32 1.0, %v575_v7  ;;  %v1074_v16 = vpop.eup %1073  ;;  %v615_v18 = vand.u32 2147483648, %v1489_v54  ;;  %1077 = vrcp.f32 %v1518_v13  ;;  %vm581_vm0 = vmor %vm579_vm8, %vm580_vm13 }
  0xd0   :  { %v1076_v21 = vpop.eup %1075  ;;  %v590_v26 = vmul.f32 %v1074_v16, %v1486_v51  ;;  %vm1534_vm15 = vcmp.eq.f32.partialorder %v598_v8, 8.507059e+37  ;;  %v1538_v27 = vadd.f32 1.0, %v1072_v9  ;;  %v601_v29 = vor.u32 1.1754944e-38, %v600_v12  ;;  %v277_v12 = vpop.f32.mrf.mxu2 }
  0xd1   :  { %v567_v22 = vsel %vm566_vm12, %v1064_v41, %v563_v14  ;;  %v577_v24 = vmul.f32 %v1070_v56, %v576_v15  ;;  %v605_v30 = vmul.f32 %v1076_v21, %v1489_v54  ;;  %v628_v33 = vand.u32 2147483647, %v1518_v13  ;;  %v305_v14 = vpop.f32.mrf.mxu3 }
  0xd2   :  { %v572_v28 = vsel %vm1504_vm7, %v571_v5, %v567_v22  ;;  %v591_v37 = vsub.f32 1.0, %v590_v26  ;;  %v630_v25 = vand.u32 2147483648, %v1518_v13  ;;  %1079 = vrcp.f32 %v1521_v10  ;;  %v1584_v5 = vpop.permute.xlu2 %72 }
  0xd3   :  { %853 = vst [vmem:[%s1767_s3 + $0x48] sm:$0xff] %v572_v28  ;;  %v578_v36 = vadd.f32 %v1070_v56, %v577_v24  ;;  %v606_v38 = vsub.f32 1.0, %v605_v30  ;;  %vm1552_vm1 = vcmp.eq.f32.partialorder %v613_v17, 8.507059e+37  ;;  %v616_v43 = vor.u32 1.1754944e-38, %v615_v18 }
  0xd4   :  { %v984_v44 = vmul.f32 -1.442695, %v220_v4  ;;  %v592_v45 = vmul.f32 %v1074_v16, %v591_v37  ;;  %vm595_vm2 = vweird.f32 %v1074_v16  ;;  %1081 = vrcp.f32 %v1538_v27 }
  0xd5   :  { %v582_v39 = vsel %vm581_vm0, %v1070_v56, %v578_v36  ;;  %v1078_v46 = vpop.eup %1077  ;;  %v607_v49 = vmul.f32 %v1076_v21, %v606_v38  ;;  %vm610_vm3 = vweird.f32 %v1076_v21  ;;  %vm624_vm4 = vweird.f32 %v1518_v13  ;;  %vm596_vm6 = vmor %vm594_vm11, %vm595_vm2 }
  0xd6   :  { %v587_v47 = vsel %vm1513_vm10, %v586_v11, %v582_v39  ;;  %v593_v42 = vadd.f32 %v1074_v16, %v592_v45  ;;  %v620_v50 = vmul.f32 %v1078_v46, %v1518_v13  ;;  %vm1564_vm5 = vcmp.eq.f32.partialorder %v628_v33, 8.507059e+37  ;;  %vm611_vm8 = vmor %vm609_vm14, %vm610_vm3 }
  0xd7   :  { %854 = vst [vmem:[%s1767_s3 + $0x50] sm:$0xff] %v587_v47  ;;  %v631_v52 = vor.u32 1.1754944e-38, %v630_v25  ;;  %v643_v53 = vand.u32 2147483647, %v1521_v10  ;;  %v608_v55 = vadd.f32 %v1076_v21, %v607_v49  ;;  %vm639_vm7 = vweird.f32 %v1521_v10 }
  0xd8   :  { %v645_v57 = vand.u32 2147483648, %v1521_v10  ;;  %1083 = vpow2.f32 %v984_v44  ;;  %v248_v59 = vadd.f32 %v1442_v62, %v1494_v58  ;;  %v1080_v0 = vpop.eup %1079  ;;  %v597_v1 = vsel %vm596_vm6, %v1074_v16, %v593_v42  ;;  %v1635_v42 = vpop.permute.xlu0 %77 }
  0xd9   :  { %v621_v2 = vsub.f32 1.0, %v620_v50  ;;  %vm625_vm9 = vweird.f32 %v1078_v46  ;;  %v276_v51 = vadd.f32 %v275_v34, %v1494_v58  ;;  %v602_v3 = vsel %vm1534_vm15, %v601_v29, %v597_v1 }
  0xda   :  { %v612_v56 = vsel %vm611_vm8, %v1076_v21, %v608_v55  ;;  %v635_v61 = vmul.f32 %v1080_v0, %v1521_v10  ;;  %vm654_vm10 = vweird.f32 %v1538_v27  ;;  %v658_v62 = vand.u32 2147483647, %v1538_v27  ;;  %v1082_v4 = vpop.eup %1081  ;;  %855 = vst [vmem:[%s1767_s3 + $0x58] sm:$0xff] %v602_v3  ;;  %vm626_vm12 = vmor %vm624_vm4, %vm625_vm9 }
  0xdb   :  { %v617_v54 = vsel %vm1552_vm1, %v616_v43, %v612_v56  ;;  %v622_v6 = vmul.f32 %v1078_v46, %v621_v2  ;;  %v660_v7 = vand.u32 2147483648, %v1538_v27  ;;  %v985_v8 = vmul.f32 -1.442695, %v248_v59 }
  0xdc   :  { %856 = vst [vmem:[%s1767_s3 + $0x60] sm:$0xff] %v617_v54  ;;  %v636_v9 = vsub.f32 1.0, %v635_v61  ;;  %vm640_vm11 = vweird.f32 %v1080_v0  ;;  %v650_v31 = vmul.f32 %v1082_v4, %v1538_v27  ;;  %v986_v11 = vmul.f32 -1.442695, %v276_v51  ;;  %v1630_v27 = vpop.f32.mrf.mxu2 }
  0xdd   :  { %v623_v15 = vadd.f32 %v1078_v46, %v622_v6  ;;  %1085 = vpow2.f32 %v985_v8  ;;  %v304_v16 = vadd.f32 %v303_v35, %v1494_v58  ;;  %v222_v17 = vadd.f32 %v1478_v32, %v1584_v5  ;;  %vm641_vm14 = vmor %vm639_vm7, %vm640_vm11 }
  0xde   :  { %v1084_v18 = vpop.eup %1083  ;;  %v637_v21 = vmul.f32 %v1080_v0, %v636_v9  ;;  %v651_v22 = vsub.f32 1.0, %v650_v31  ;;  %1087 = vpow2.f32 %v986_v11  ;;  %v250_v24 = vadd.f32 %v1480_v48, %v1584_v5 }
  0xdf   :  { %v627_v26 = vsel %vm626_vm12, %v1078_v46, %v623_v15  ;;  %v1604_v23 = vadd.f32 1.0, %v1084_v18  ;;  %v987_v28 = vmul.f32 -1.442695, %v304_v16  ;;  %v988_v29 = vmul.f32 -1.442695, %v222_v17  ;;  %v1632_v46 = vpop.f32.mrf.mxu3 }
  0xe0   :  { %v632_v58 = vsel %vm1564_vm5, %v631_v52, %v627_v26  ;;  %v638_v32 = vadd.f32 %v1080_v0, %v637_v21  ;;  %v652_v30 = vmul.f32 %v1082_v4, %v651_v22  ;;  %vm655_vm13 = vweird.f32 %v1082_v4 }
  0xe1   :  { %857 = vst [vmem:[%s1767_s3 + $0x68] sm:$0xff] %v632_v58  ;;  %vm644_vm15 = vcmp.eq.f32.partialorder %v643_v53, 8.507059e+37  ;;  %v646_v48 = vor.u32 1.1754944e-38, %v645_v57  ;;  %1089 = vrcp.f32 %v1604_v23  ;;  %v989_v13 = vmul.f32 -1.442695, %v250_v24  ;;  %vm656_vm0 = vmor %vm654_vm10, %vm655_vm13 }
  0xe2   :  { %v642_v33 = vsel %vm641_vm14, %v1080_v0, %v638_v32  ;;  %v653_v34 = vadd.f32 %v1082_v4, %v652_v30  ;;  %1091 = vpow2.f32 %v987_v28  ;;  %v278_v35 = vadd.f32 %v277_v12, %v1584_v5 }
  0xe3   :  { %v1086_v36 = vpop.eup %1085  ;;  %v647_v37 = vsel %vm644_vm15, %v646_v48, %v642_v33  ;;  %v661_v25 = vor.u32 1.1754944e-38, %v660_v7  ;;  %1093 = vpow2.f32 %v988_v29  ;;  %vm659_vm1 = vcmp.eq.f32.partialorder %v658_v62, 8.507059e+37 }
  0xe4   :  { %v1088_v38 = vpop.eup %1087  ;;  %858 = vst [vmem:[%s1767_s3 + $0x70] sm:$0xff] %v647_v37  ;;  %v657_v10 = vsel %vm656_vm0, %v1082_v4, %v653_v34  ;;  %v673_v40 = vand.u32 2147483647, %v1604_v23  ;;  %v1622_v43 = vadd.f32 1.0, %v1086_v36  ;;  %1095 = vpow2.f32 %v989_v13  ;;  %v282_v31 = vpop.f32.mrf.mxu2 }
  0xe5   :  { %v662_v44 = vsel %vm659_vm1, %v661_v25, %v657_v10  ;;  %v1624_v39 = vadd.f32 1.0, %v1088_v38  ;;  %v990_v45 = vmul.f32 -1.442695, %v278_v35  ;;  %v675_v49 = vand.u32 2147483648, %v1604_v23 }
  0xe6   :  { %859 = vst [vmem:[%s1767_s3 + $0x78] sm:$0xff] %v662_v44  ;;  %1097 = vrcp.f32 %v1622_v43  ;;  %v306_v50 = vadd.f32 %v305_v14, %v1584_v5  ;;  %v225_v53 = vadd.f32 %v1529_v19, %v1635_v42  ;;  %vm669_vm2 = vweird.f32 %v1604_v23 }
  0xe7   :  { %v1090_v47 = vpop.eup %1089  ;;  %1099 = vrcp.f32 %v1624_v39  ;;  %vm1643_vm3 = vcmp.eq.f32.partialorder %v673_v40, 8.507059e+37  ;;  %v688_v63 = vand.u32 2147483647, %v1622_v43  ;;  %v690_v0 = vand.u32 2147483648, %v1622_v43  ;;  %v310_v11 = vpop.f32.mrf.mxu3 }
  0xe8   :  { %v1092_v41 = vpop.eup %1091  ;;  %v665_v52 = vmul.f32 %v1090_v47, %v1604_v23  ;;  %1101 = vpow2.f32 %v990_v45  ;;  %v676_v51 = vor.u32 1.1754944e-38, %v675_v49  ;;  %v703_v19 = vand.u32 2147483647, %v1624_v39 }
  0xe9   :  { %v1094_v55 = vpop.eup %1093  ;;  %v1647_v59 = vadd.f32 1.0, %v1092_v41  ;;  %v991_v3 = vmul.f32 -1.442695, %v306_v50  ;;  %vm670_vm4 = vweird.f32 %v1090_v47  ;;  %v992_v62 = vmul.f32 -1.442695, %v225_v53 }
  0xea   :  { %v666_v60 = vsub.f32 1.0, %v665_v52  ;;  %v1651_v1 = vadd.f32 1.0, %v1094_v55  ;;  %v1096_v2 = vpop.eup %1095  ;;  %vm684_vm5 = vweird.f32 %v1622_v43  ;;  %vm699_vm6 = vweird.f32 %v1624_v39  ;;  %vm671_vm8 = vmor %vm669_vm2, %vm670_vm4 }
  0xeb   :  { %1103 = vrcp.f32 %v1647_v59  ;;  %v705_v54 = vand.u32 2147483648, %v1624_v39  ;;  %vm1660_vm7 = vcmp.eq.f32.partialorder %v688_v63, 8.507059e+37  ;;  %v691_v8 = vor.u32 1.1754944e-38, %v690_v0 }
  0xec   :  { %v1098_v56 = vpop.eup %1097  ;;  %v667_v61 = vmul.f32 %v1090_v47, %v666_v60  ;;  %1105 = vrcp.f32 %v1651_v1  ;;  %vm1668_vm9 = vcmp.eq.f32.partialorder %v703_v19, 8.507059e+37  ;;  %v1672_v16 = vadd.f32 1.0, %v1096_v2 }
  0xed   :  { %v1100_v5 = vpop.eup %1099  ;;  %v680_v4 = vmul.f32 %v1098_v56, %v1622_v43  ;;  %1107 = vpow2.f32 %v991_v3  ;;  %vm685_vm10 = vweird.f32 %v1098_v56  ;;  %v706_v29 = vor.u32 1.1754944e-38, %v705_v54 }
  0xee   :  { %v668_v6 = vadd.f32 %v1090_v47, %v667_v61  ;;  %v695_v9 = vmul.f32 %v1100_v5, %v1624_v39  ;;  %v1102_v12 = vpop.eup %1101  ;;  %1109 = vpow2.f32 %v992_v62  ;;  %vm700_vm11 = vweird.f32 %v1100_v5  ;;  %vm686_vm13 = vmor %vm684_vm5, %vm685_vm10 }
  0xef   :  { %v681_v14 = vsub.f32 1.0, %v680_v4  ;;  %v1674_v21 = vadd.f32 1.0, %v1102_v12  ;;  %1111 = vrcp.f32 %v1672_v16  ;;  %vm714_vm12 = vweird.f32 %v1647_v59  ;;  %vm701_vm14 = vmor %vm699_vm6, %vm700_vm11 }
  0xf0   :  { %v672_v17 = vsel %vm671_vm8, %v1090_v47, %v668_v6  ;;  %v696_v18 = vsub.f32 1.0, %v695_v9  ;;  %v718_v30 = vand.u32 2147483647, %v1647_v59  ;;  %v720_v34 = vand.u32 2147483648, %v1647_v59 }
  0xf1   :  { %v1104_v22 = vpop.eup %1103  ;;  %v677_v24 = vsel %vm1643_vm3, %v676_v51, %v672_v17  ;;  %v682_v26 = vmul.f32 %v1098_v56, %v681_v14  ;;  %1113 = vrcp.f32 %v1674_v21  ;;  %vm729_vm15 = vweird.f32 %v1651_v1 }
  0xf2   :  { %v1106_v23 = vpop.eup %1105  ;;  %860 = vst [vmem:[%s1767_s3 + $0x80] sm:$0xff] %v677_v24  ;;  %v697_v28 = vmul.f32 %v1100_v5, %v696_v18  ;;  %v710_v58 = vmul.f32 %v1104_v22, %v1647_v59  ;;  %v735_v25 = vand.u32 2147483648, %v1651_v1  ;;  %vm715_vm0 = vweird.f32 %v1104_v22 }
  0xf3   :  { %v683_v32 = vadd.f32 %v1098_v56, %v682_v26  ;;  %v725_v48 = vmul.f32 %v1106_v23, %v1651_v1  ;;  %v1108_v35 = vpop.eup %1107  ;;  %vm730_vm1 = vweird.f32 %v1106_v23  ;;  %v733_v47 = vand.u32 2147483647, %v1651_v1  ;;  %vm716_vm3 = vmor %vm714_vm12, %vm715_vm0 }
  0xf4   :  { %v698_v13 = vadd.f32 %v1100_v5, %v697_v28  ;;  %v711_v33 = vsub.f32 1.0, %v710_v58  ;;  %v1110_v38 = vpop.eup %1109  ;;  %vm719_vm2 = vcmp.eq.f32.partialorder %v718_v30, 8.507059e+37  ;;  %v1706_v41 = vadd.f32 1.0, %v1108_v35  ;;  %vm731_vm4 = vmor %vm729_vm15, %vm730_vm1 }
  0xf5   :  { %v687_v36 = vsel %vm686_vm13, %v1098_v56, %v683_v32  ;;  %v726_v37 = vsub.f32 1.0, %v725_v48  ;;  %v1112_v44 = vpop.eup %1111  ;;  %v721_v52 = vor.u32 1.1754944e-38, %v720_v34  ;;  %v736_v55 = vor.u32 1.1754944e-38, %v735_v25 }
  0xf6   :  { %v692_v10 = vsel %vm1660_vm7, %v691_v8, %v687_v36  ;;  %v702_v40 = vsel %vm701_vm14, %v1100_v5, %v698_v13  ;;  %v712_v43 = vmul.f32 %v1104_v22, %v711_v33  ;;  %v740_v50 = vmul.f32 %v1112_v44, %v1672_v16 }
  0xf7   :  { %861 = vst [vmem:[%s1767_s3 + $0x88] sm:$0xff] %v692_v10  ;;  %v707_v39 = vsel %vm1668_vm9, %v706_v29, %v702_v40  ;;  %v727_v45 = vmul.f32 %v1106_v23, %v726_v37  ;;  %v1710_v57 = vadd.f32 1.0, %v1110_v38  ;;  %v1114_v60 = vpop.eup %1113  ;;  %v750_v2 = vand.u32 2147483648, %v1672_v16 }
  0xf8   :  { %862 = vst [vmem:[%s1767_s3 + $0x90] sm:$0xff] %v707_v39  ;;  %v713_v49 = vadd.f32 %v1104_v22, %v712_v43  ;;  %v741_v0 = vsub.f32 1.0, %v740_v50  ;;  %1115 = vrcp.f32 %v1706_v41  ;;  %vm734_vm5 = vcmp.eq.f32.partialorder %v733_v47, 8.507059e+37 }
  0xf9   :  { %v728_v53 = vadd.f32 %v1106_v23, %v727_v45  ;;  %v755_v59 = vmul.f32 %v1114_v60, %v1674_v21  ;;  %vm745_vm6 = vweird.f32 %v1112_v44  ;;  %v748_v1 = vand.u32 2147483647, %v1672_v16 }
  0xfa   :  { %v717_v63 = vsel %vm716_vm3, %v1104_v22, %v713_v49  ;;  %v742_v56 = vmul.f32 %v1112_v44, %v741_v0  ;;  %vm744_vm7 = vweird.f32 %v1672_v16  ;;  %1117 = vrcp.f32 %v1710_v57 }
  0xfb   :  { %v722_v51 = vsel %vm719_vm2, %v721_v52, %v717_v63  ;;  %v732_v19 = vsel %vm731_vm4, %v1106_v23, %v728_v53  ;;  %v756_v61 = vsub.f32 1.0, %v755_v59  ;;  %v751_v5 = vor.u32 1.1754944e-38, %v750_v2  ;;  %vm746_vm8 = vmor %vm744_vm7, %vm745_vm6 }
  0xfc   :  { %863 = vst [vmem:[%s1767_s3 + $0x98] sm:$0xff] %v722_v51  ;;  %v737_v3 = vsel %vm734_vm5, %v736_v55, %v732_v19  ;;  %v743_v62 = vadd.f32 %v1112_v44, %v742_v56  ;;  %v763_v4 = vand.u32 2147483647, %v1674_v21  ;;  %v765_v54 = vand.u32 2147483648, %v1674_v21 }
  0xfd   :  { %864 = vst [vmem:[%s1767_s3 + $0xa0] sm:$0xff] %v737_v3  ;;  %v757_v6 = vmul.f32 %v1114_v60, %v756_v61  ;;  %vm760_vm9 = vweird.f32 %v1114_v60  ;;  %v253_v7 = vadd.f32 %v1531_v20, %v1635_v42  ;;  %v281_v8 = vadd.f32 %v1630_v27, %v1635_v42 }
  0xfe   :  { %v1116_v9 = vpop.eup %1115  ;;  %v747_v31 = vsel %vm746_vm8, %v1112_v44, %v743_v62  ;;  %vm749_vm10 = vcmp.eq.f32.partialorder %v748_v1, 8.507059e+37  ;;  %v309_v11 = vadd.f32 %v1632_v46, %v1635_v42  ;;  %vm759_vm11 = vweird.f32 %v1674_v21 }
  0xff   :  { %v752_v12 = vsel %vm749_vm10, %v751_v5, %v747_v31  ;;  %v758_v14 = vadd.f32 %v1114_v60, %v757_v6  ;;  %v770_v15 = vmul.f32 %v1116_v9, %v1706_v41  ;;  %vm761_vm12 = vmor %vm759_vm11, %vm760_vm9  ;;  %v766_v20 = vor.u32 1.1754944e-38, %v765_v54 }
 0x100   :  { %865 = vst [vmem:[%s1767_s3 + $0xa8] sm:$0xff] %v752_v12  ;;  %v993_v16 = vmul.f32 -1.442695, %v253_v7  ;;  %v994_v27 = vmul.f32 -1.442695, %v281_v8  ;;  %v1118_v17 = vpop.eup %1117  ;;  %vm764_vm13 = vcmp.eq.f32.partialorder %v763_v4, 8.507059e+37  ;;  %vm775_vm14 = vweird.f32 %v1116_v9 }
 0x101   :  { %v762_v18 = vsel %vm761_vm12, %v1114_v60, %v758_v14  ;;  %v771_v22 = vsub.f32 1.0, %v770_v15  ;;  %v995_v24 = vmul.f32 -1.442695, %v309_v11  ;;  %v780_v42 = vand.u32 2147483648, %v1706_v41 }
 0x102   :  { %v767_v46 = vsel %vm764_vm13, %v766_v20, %v762_v18  ;;  %v785_v21 = vmul.f32 %v1118_v17, %v1710_v57  ;;  %1119 = vpow2.f32 %v993_v16  ;;  %v778_v23 = vand.u32 2147483647, %v1706_v41 }
 0x103   :  { %866 = vst [vmem:[%s1767_s3 + $0xb0] sm:$0xff] %v767_v46  ;;  %v772_v26 = vmul.f32 %v1116_v9, %v771_v22  ;;  %1121 = vpow2.f32 %v994_v27  ;;  %vm774_vm15 = vweird.f32 %v1706_v41  ;;  %v795_v58 = vand.u32 2147483648, %v1710_v57 }
 0x104   :  { %v786_v28 = vsub.f32 1.0, %v785_v21  ;;  %1123 = vpow2.f32 %v995_v24  ;;  %vm776_vm0 = vmor %vm774_vm15, %vm775_vm14  ;;  %v781_v32 = vor.u32 1.1754944e-38, %v780_v42  ;;  %vm790_vm1 = vweird.f32 %v1118_v17 }
 0x105   :  { %v773_v29 = vadd.f32 %v1116_v9, %v772_v26  ;;  %v793_v48 = vand.u32 2147483647, %v1710_v57  ;;  %vm779_vm2 = vcmp.eq.f32.partialorder %v778_v23, 8.507059e+37  ;;  %vm789_vm3 = vweird.f32 %v1710_v57 }
 0x106   :  { %v787_v30 = vmul.f32 %v1118_v17, %v786_v28  ;;  %vm791_vm4 = vmor %vm789_vm3, %vm790_vm1  ;;  %v796_v37 = vor.u32 1.1754944e-38, %v795_v58 }
 0x107   :  { %v777_v13 = vsel %vm776_vm0, %v1116_v9, %v773_v29  ;;  %vm794_vm5 = vcmp.eq.f32.partialorder %v793_v48, 8.507059e+37 }
 0x108   :  { %v1120_v33 = vpop.eup %1119  ;;  %v782_v34 = vsel %vm779_vm2, %v781_v32, %v777_v13  ;;  %v788_v35 = vadd.f32 %v1118_v17, %v787_v30 }
 0x109   :  { %v1122_v36 = vpop.eup %1121  ;;  %867 = vst [vmem:[%s1767_s3 + $0xb8] sm:$0xff] %v782_v34  ;;  %v421_v25 = vadd.f32 1.0, %v1120_v33 }
 0x10a   :  { %v1124_v38 = vpop.eup %1123  ;;  %v792_v10 = vsel %vm791_vm4, %v1118_v17, %v788_v35  ;;  %v422_v40 = vadd.f32 1.0, %v1122_v36 }
 0x10b   :  { %v797_v43 = vsel %vm794_vm5, %v796_v37, %v792_v10  ;;  %1125 = vrcp.f32 %v421_v25  ;;  %v423_v44 = vadd.f32 1.0, %v1124_v38  ;;  %v808_v41 = vand.u32 2147483647, %v421_v25 }
 0x10c   :  { %868 = vst [vmem:[%s1767_s3 + $0xc0] sm:$0xff] %v797_v43  ;;  %1127 = vrcp.f32 %v422_v40  ;;  %v810_v53 = vand.u32 2147483648, %v421_v25  ;;  %v825_v57 = vand.u32 2147483648, %v422_v40  ;;  %vm804_vm7 = vweird.f32 %v421_v25 }
 0x10d   :  { %1129 = vrcp.f32 %v423_v44  ;;  %v823_v2 = vand.u32 2147483647, %v422_v40  ;;  %vm809_vm9 = vcmp.eq.f32.partialorder %v808_v41, 8.507059e+37  ;;  %vm819_vm10 = vweird.f32 %v422_v40 }
 0x10e   :  { %v811_v59 = vor.u32 1.1754944e-38, %v810_v53  ;;  %v826_v56 = vor.u32 1.1754944e-38, %v825_v57  ;;  %v840_v1 = vand.u32 2147483648, %v423_v44  ;;  %v838_v5 = vand.u32 2147483647, %v423_v44 }
 0x10f   :  { %vm824_vm14 = vcmp.eq.f32.partialorder %v823_v2, 8.507059e+37  ;;  %vm834_vm15 = vweird.f32 %v423_v44 }
 0x110   :  { %v841_v8 = vor.u32 1.1754944e-38, %v840_v1  ;;  %vm839_vm1 = vcmp.eq.f32.partialorder %v838_v5, 8.507059e+37 }
 0x111   :  { %v1126_v39 = vpop.eup %1125 }
 0x112   :  { %v1128_v45 = vpop.eup %1127  ;;  %v800_v47 = vmul.f32 %v1126_v39, %v421_v25  ;;  %vm805_vm6 = vweird.f32 %v1126_v39 }
 0x113   :  { %v815_v49 = vmul.f32 %v1128_v45, %v422_v40  ;;  %v1130_v52 = vpop.eup %1129  ;;  %vm820_vm8 = vweird.f32 %v1128_v45  ;;  %vm806_vm11 = vmor %vm804_vm7, %vm805_vm6 }
 0x114   :  { %v801_v50 = vsub.f32 1.0, %v800_v47  ;;  %v830_v63 = vmul.f32 %v1130_v52, %v423_v44  ;;  %vm821_vm12 = vmor %vm819_vm10, %vm820_vm8  ;;  %vm835_vm13 = vweird.f32 %v1130_v52 }
 0x115   :  { %v816_v55 = vsub.f32 1.0, %v815_v49  ;;  %vm836_vm0 = vmor %vm834_vm15, %vm835_vm13 }
 0x116   :  { %v802_v60 = vmul.f32 %v1126_v39, %v801_v50  ;;  %v831_v19 = vsub.f32 1.0, %v830_v63 }
 0x117   :  { %v817_v0 = vmul.f32 %v1128_v45, %v816_v55 }
 0x118   :  { %v803_v51 = vadd.f32 %v1126_v39, %v802_v60  ;;  %v832_v62 = vmul.f32 %v1130_v52, %v831_v19 }
 0x119   :  { %v818_v3 = vadd.f32 %v1128_v45, %v817_v0 }
 0x11a   :  { %v807_v61 = vsel %vm806_vm11, %v1126_v39, %v803_v51  ;;  %v833_v7 = vadd.f32 %v1130_v52, %v832_v62 }
 0x11b   :  { %v812_v4 = vsel %vm809_vm9, %v811_v59, %v807_v61  ;;  %v822_v54 = vsel %vm821_vm12, %v1128_v45, %v818_v3 }
 0x11c   :  { %869 = vst [vmem:[%s1767_s3 + $0xc8] sm:$0xff] %v812_v4  ;;  %v827_v6 = vsel %vm824_vm14, %v826_v56, %v822_v54  ;;  %v837_v9 = vsel %vm836_vm0, %v1130_v52, %v833_v7 }
 0x11d   :  { %870 = vst [vmem:[%s1767_s3 + $0xd0] sm:$0xff] %v827_v6  ;;  %v842_v31 = vsel %vm839_vm1, %v841_v8, %v837_v9 }
 0x11e   :  { %871 = vst [vmem:[%s1767_s3 + $0xd8] sm:$0xff] %v842_v31 }

</bundles_post_ra>
